<compile_context>
chip_gen: v5e
topology: v5e:2x2
jax: 0.10.0
libtpu: 0.0.40
codegen_flags: <defaults>
</compile_context>

<pallas_src>
import functools

import jax
import jax.numpy as jnp
from jax.experimental import pallas as pl
from jax.experimental.pallas import tpu as pltpu


# ----------------------------------------------------------------------------
# Fused decoder-layer kernel (one grid step == one batch element)
# ----------------------------------------------------------------------------

def _decoder_layer_kernel(
    tgt_ref, mem_ref,
    win_ref, bin_ref, wout3_ref, bout_ref, ln1g_ref, ln1b_ref,
    wqp_ref, bqp_ref, wv_ref, bv_ref, wo3_ref, bo_ref,
    gmat_ref, ln2g_ref, ln2b_ref,
    w1_ref, b1_ref, w2_ref, b2_ref, ln3g_ref, ln3b_ref,
    o_ref,
    *, n_heads, n_points, h, w):
    x = tgt_ref[0]                                   # (Q, D)
    mem = mem_ref[0]                                 # (HW, D)
    Q, D = x.shape
    HW = mem.shape[0]
    H, P = n_heads, n_points
    HP = H * P
    dh = D // H

    def layer_norm(y, g_ref, b_ref):
        m = jnp.mean(y, axis=-1, keepdims=True)
        c = y - m
        v = jnp.mean(c * c, axis=-1, keepdims=True)
        return c * jax.lax.rsqrt(v + 1e-5) * g_ref[0] + b_ref[0]

    # ---------------- self attention (per-head 2-D matmuls, concat folded into out-proj) -----
    # 1/sqrt(dh) is pre-folded into win/bin's Q columns in the wrapper.
    qkv = jnp.dot(x, win_ref[...], preferred_element_type=jnp.float32) + bin_ref[0]   # (Q, 3D)
    sa = None
    for hh in range(H):
        qh = qkv[:, hh * dh:(hh + 1) * dh]
        kh = qkv[:, D + hh * dh:D + (hh + 1) * dh]
        vh = qkv[:, 2 * D + hh * dh:2 * D + (hh + 1) * dh]
        s = jnp.einsum('qd,kd->qk', qh, kh, preferred_element_type=jnp.float32)       # (Q, Q)
        s = s - jnp.max(s, axis=-1, keepdims=True)
        e = jnp.exp(s)
        p_att = e / jnp.sum(e, axis=-1, keepdims=True)                                # exact div
        ctx = jnp.dot(p_att, vh, preferred_element_type=jnp.float32)                  # (Q, dh)
        contrib = jnp.dot(ctx, wout3_ref[hh], preferred_element_type=jnp.float32)     # (Q, D)
        sa = contrib if sa is None else sa + contrib
    t1 = layer_norm(x + sa + bout_ref[0], ln1g_ref, ln1b_ref)

    # ---------------- deformable cross attention --------------------------------------------
    # one packed lane-dense projection: [ref_xy | off_x | off_y | attn_logits]
    proj = jnp.dot(t1, wqp_ref[...], preferred_element_type=jnp.float32) + bqp_ref[0]  # (Q, 2+3HP)
    refxy = jax.nn.sigmoid(proj[:, 0:2])
    ref_x = refxy[:, 0:1]
    ref_y = refxy[:, 1:2]
    off_x = proj[:, 2:2 + HP]                          # (Q, HP)
    off_y = proj[:, 2 + HP:2 + 2 * HP]
    att_logits = proj[:, 2 + 2 * HP:2 + 3 * HP]

    vals = jnp.dot(mem, wv_ref[...], preferred_element_type=jnp.float32) + bv_ref[0]   # (HW, D)

    # per-head point softmax in one lane-dense pass (group sums via gmat matmul), exact division
    e_att = jnp.exp(att_logits - jnp.max(att_logits, axis=-1, keepdims=True))
    gsum = jnp.dot(e_att, gmat_ref[...], preferred_element_type=jnp.float32)
    a = e_att / gsum                                                                    # (Q, HP)

    lx = jnp.clip(ref_x + off_x, 0.0, 1.0) * float(w - 1)                               # (Q, HP)
    ly = jnp.clip(ref_y + off_y, 0.0, 1.0) * float(h - 1)
    x0 = jnp.floor(lx)
    y0 = jnp.floor(ly)
    x0i = jnp.clip(x0, 0, w - 1).astype(jnp.int32)
    x1i = jnp.clip(x0 + 1.0, 0, w - 1).astype(jnp.int32)
    y0i = jnp.clip(y0, 0, h - 1).astype(jnp.int32)
    y1i = jnp.clip(y0 + 1.0, 0, h - 1).astype(jnp.int32)
    wx1 = lx - x0
    wx0 = 1.0 - wx1
    wy1 = ly - y0
    wy0 = 1.0 - wy1

    # point-softmax weights folded into the bilinear corner coefficients
    c00 = a * wx0 * wy0
    c01 = a * wx0 * wy1
    c10 = a * wx1 * wy0
    c11 = a * wx1 * wy1
    i00 = y0i * w + x0i
    i01 = y1i * w + x0i
    i10 = y0i * w + x1i
    i11 = y1i * w + x1i

    iota = jax.lax.broadcasted_iota(jnp.int32, (1, 1, HW), 2)
    # TODO(synk): for production HW (~1e4) replace these dense one-hot rows with a 4-corner
    #             jnp.take / scalar-prefetch DMA gather of `vals` (dense is fine at HW=16).
    ca = None
    for hh in range(H):
        sl = slice(hh * P, (hh + 1) * P)

        def corner(idx, coef):
            return jnp.where(iota == idx[:, sl, None], coef[:, sl, None], 0.0)         # (Q, P, HW)

        ws_h = corner(i00, c00) + corner(i01, c01) + corner(i10, c10) + corner(i11, c11)
        a_h = jnp.sum(ws_h, axis=1)                                                     # (Q, HW)
        s_h = jnp.dot(a_h, vals[:, hh * dh:(hh + 1) * dh],
                      preferred_element_type=jnp.float32)                               # (Q, dh)
        contrib = jnp.dot(s_h, wo3_ref[hh], preferred_element_type=jnp.float32)         # (Q, D)
        ca = contrib if ca is None else ca + contrib
    t2 = layer_norm(t1 + ca + bo_ref[0], ln2g_ref, ln2b_ref)

    # ---------------- FFN --------------------------------------------------------------------
    hdn = jnp.maximum(jnp.dot(t2, w1_ref[...], preferred_element_type=jnp.float32) + b1_ref[0], 0.0)
    ff = jnp.dot(hdn, w2_ref[...], preferred_element_type=jnp.float32) + b2_ref[0]
    o_ref[0] = layer_norm(t2 + ff, ln3g_ref, ln3b_ref).astype(o_ref.dtype)


# ----------------------------------------------------------------------------
# pallas_call wrapper
# ----------------------------------------------------------------------------

def _batch_spec(shape):
    nd = len(shape)
    return pl.BlockSpec((1,) + tuple(shape[1:]), lambda b: (b,) + (0,) * (nd - 1))


def _rep_spec(shape):
    nd = len(shape)
    return pl.BlockSpec(tuple(shape), lambda b: (0,) * nd)


def deformable_decoder_layer(tgt, memory, params, n_heads, n_points):
    B, Q, D = tgt.shape
    HW = memory.shape[1]
    h = w = int(round(HW ** 0.5))
    assert h * w == HW, "demo assumes square feature map"
    dh = D // n_heads
    HP = n_heads * n_points

    # wrapper-side (pure-JAX, one-time) weight repacking
    scale = 1.0 / (dh ** 0.5)
    win = params["win"].at[:, :D].multiply(scale)        # fold q-scaling into packed in-proj
    bin_q = params["bin"].at[:, :D].multiply(scale)
    wout3 = params["wout"].reshape(n_heads, dh, D)        # fold head-concat into out-proj
    wo3 = params["wo_ca"].reshape(n_heads, dh, D)
    wqp = jnp.concatenate([params["wrp"], params["woffx"], params["woffy"], params["watt"]], axis=1)
    bqp = jnp.concatenate([params["brp"], params["boffx"], params["boffy"], params["batt"]], axis=1)
    head_of_point = jnp.arange(HP, dtype=jnp.int32) // n_points
    gmat = (head_of_point[:, None] == head_of_point[None, :]).astype(jnp.float32)     # (HP, HP)

    batched = [tgt, memory]
    rep = [win, bin_q, wout3, params["bout"], params["ln1_g"], params["ln1_b"],
           wqp, bqp, params["wv"], params["bv"], wo3, params["bo_ca"],
           gmat, params["ln2_g"], params["ln2_b"],
           params["w1"], params["b1"], params["w2"], params["b2"],
           params["ln3_g"], params["ln3_b"]]

    kernel = functools.partial(_decoder_layer_kernel,
                               n_heads=n_heads, n_points=n_points, h=h, w=w)
    return pl.pallas_call(
        kernel,
        out_shape=jax.ShapeDtypeStruct((B, Q, D), tgt.dtype),
        grid=(B,),
        in_specs=[_batch_spec(a.shape) for a in batched] + [_rep_spec(a.shape) for a in rep],
        out_specs=_batch_spec((B, Q, D)),
        compiler_params=pltpu.CompilerParams(dimension_semantics=("parallel",)),
    )(*batched, *rep)


# ----------------------------------------------------------------------------
# Pure-JAX reference (mirrors the PyTorch forward, eval mode)
# ----------------------------------------------------------------------------

def ref_forward(tgt, memory, p, n_heads, n_points):
    B, Q, D = tgt.shape
    HW = memory.shape[1]
    h = w = int(round(HW ** 0.5))
    dh = D // n_heads
    P = n_points

    def ln(x, g, b):
        m = x.mean(-1, keepdims=True)
        v = ((x - m) ** 2).mean(-1, keepdims=True)
        return (x - m) / jnp.sqrt(v + 1e-5) * g[0] + b[0]

    # self attention
    qkv = tgt @ p["win"] + p["bin"][0]
    q, k, v = qkv[..., :D], qkv[..., D:2 * D], qkv[..., 2 * D:]
    sh = lambda t: t.reshape(B, Q, n_heads, dh).transpose(0, 2, 1, 3)
    qh, kh, vh = sh(q), sh(k), sh(v)
    s = jnp.einsum("bhqd,bhkd->bhqk", qh, kh) / (dh ** 0.5)
    a = jax.nn.softmax(s, axis=-1)
    sa = jnp.einsum("bhqk,bhkd->bhqd", a, vh).transpose(0, 2, 1, 3).reshape(B, Q, D)
    sa = sa @ p["wout"] + p["bout"][0]
    t1 = ln(tgt + sa, p["ln1_g"], p["ln1_b"])

    # deformable cross attention
    refxy = jax.nn.sigmoid(t1 @ p["wrp"] + p["brp"][0])
    off_x = t1 @ p["woffx"] + p["boffx"][0]
    off_y = t1 @ p["woffy"] + p["boffy"][0]
    att = jax.nn.softmax((t1 @ p["watt"] + p["batt"][0]).reshape(B, Q, n_heads, P), axis=-1)
    vals = (memory @ p["wv"] + p["bv"][0]).reshape(B, HW, n_heads, dh)
    lx = jnp.clip(refxy[..., 0:1] + off_x, 0.0, 1.0) * (w - 1)
    ly = jnp.clip(refxy[..., 1:2] + off_y, 0.0, 1.0) * (h - 1)
    x0 = jnp.floor(lx); y0 = jnp.floor(ly)
    x0i = jnp.clip(x0, 0, w - 1).astype(jnp.int32)
    x1i = jnp.clip(x0 + 1, 0, w - 1).astype(jnp.int32)
    y0i = jnp.clip(y0, 0, h - 1).astype(jnp.int32)
    y1i = jnp.clip(y0 + 1, 0, h - 1).astype(jnp.int32)
    wx1 = lx - x0; wx0 = 1 - wx1
    wy1 = ly - y0; wy0 = 1 - wy1

    r4 = lambda t: t.reshape(B, Q, n_heads, P).transpose(0, 2, 1, 3)   # (B,H,Q,P)
    vals_t = vals.transpose(0, 2, 1, 3)                                # (B,H,HW,dh)

    def gather(idx):
        idx_t = r4(idx)
        g_bh = lambda vbh, ibh: vbh[ibh]
        return jax.vmap(jax.vmap(g_bh))(vals_t, idx_t)                 # (B,H,Q,P,dh)

    res = (gather(y0i * w + x0i) * r4(wx0 * wy0)[..., None]
           + gather(y1i * w + x0i) * r4(wx0 * wy1)[..., None]
           + gather(y0i * w + x1i) * r4(wx1 * wy0)[..., None]
           + gather(y1i * w + x1i) * r4(wx1 * wy1)[..., None])
    att_t = att.transpose(0, 2, 1, 3)
    ca = jnp.sum(res * att_t[..., None], axis=3)                       # (B,H,Q,dh)
    ca = ca.transpose(0, 2, 1, 3).reshape(B, Q, D)
    ca = ca @ p["wo_ca"] + p["bo_ca"][0]
    t2 = ln(t1 + ca, p["ln2_g"], p["ln2_b"])

    # FFN
    ff = jnp.maximum(t2 @ p["w1"] + p["b1"][0], 0.0) @ p["w2"] + p["b2"][0]
    return ln(t2 + ff, p["ln3_g"], p["ln3_b"])


# ----------------------------------------------------------------------------
# Parameter construction + demo
# ----------------------------------------------------------------------------

def make_params(key, d_model, n_heads, n_points, dim_ff):
    D, H, P, F = d_model, n_heads, n_points, dim_ff
    keys = iter(jax.random.split(key, 16))

    def xavier(k, fin, fout):
        bound = (6.0 / (fin + fout)) ** 0.5
        return jax.random.uniform(k, (fin, fout), jnp.float32, -bound, bound)

    z = lambda *s: jnp.zeros(s, jnp.float32)
    o = lambda *s: jnp.ones(s, jnp.float32)

    p = {}
    # self attention (nn.MultiheadAttention: packed in_proj + out_proj)
    p["win"] = xavier(next(keys), D, 3 * D); p["bin"] = z(1, 3 * D)
    p["wout"] = xavier(next(keys), D, D);    p["bout"] = z(1, D)
    p["ln1_g"] = o(1, D); p["ln1_b"] = z(1, D)
    # reference point projection
    p["wrp"] = xavier(next(keys), D, 2); p["brp"] = z(1, 2)
    # deformable cross attention (offsets split into x / y column groups, small nonzero init
    # so the bilinear-sampling path is actually exercised; PyTorch inits these to zero)
    p["woffx"] = 0.1 * xavier(next(keys), D, H * P)
    p["woffy"] = 0.1 * xavier(next(keys), D, H * P)
    p["boffx"] = 0.05 * jax.random.normal(next(keys), (1, H * P), jnp.float32)
    p["boffy"] = 0.05 * jax.random.normal(next(keys), (1, H * P), jnp.float32)
    p["watt"] = xavier(next(keys), D, H * P); p["batt"] = z(1, H * P)
    p["wv"] = xavier(next(keys), D, D);       p["bv"] = z(1, D)
    p["wo_ca"] = xavier(next(keys), D, D);    p["bo_ca"] = z(1, D)
    p["ln2_g"] = o(1, D); p["ln2_b"] = z(1, D)
    # FFN
    p["w1"] = xavier(next(keys), D, F); p["b1"] = z(1, F)
    p["w2"] = xavier(next(keys), F, D); p["b2"] = z(1, D)
    p["ln3_g"] = o(1, D); p["ln3_b"] = z(1, D)
    return p


if __name__ == "__main__":
    B, Q, D = 2, 8, 32
    H, P, FF = 4, 4, 64
    HW = 16  # 4 x 4 feature map

    key = jax.random.PRNGKey(0)
    kp, kt, km = jax.random.split(key, 3)
    params = make_params(kp, D, H, P, FF)
    tgt = jax.random.normal(kt, (B, Q, D), jnp.float32)
    memory = jax.random.normal(km, (B, HW, D), jnp.float32)

    fwd = jax.jit(functools.partial(deformable_decoder_layer, n_heads=H, n_points=P))
    out = jax.block_until_ready(fwd(tgt, memory, params))

    with jax.default_matmul_precision("highest"):
        ref = ref_forward(tgt, memory, params, H, P)
    assert out.shape == (B, Q, D)
    assert bool(jnp.isfinite(out).all())
    err = float(jnp.max(jnp.abs(out - ref)))
    # exact-division softmaxes (no EUP approx reciprocal) keep the kernel close to the f32
    # reference; 2e-3 leaves margin for MXU f32 matmul rounding vs the XLA reference.
    assert err < 2e-3, f"mismatch vs reference: {err}"

    print("KERNEL_OK")
</pallas_src>

<mosaic_0001>
module attributes {stable_mosaic.version = 11 : i64} {
  func.func @_decoder_layer_kernel(%arg0: i32, %arg1: memref<1x8x32xf32, #tpu.memory_space<vmem>>, %arg2: memref<1x16x32xf32, #tpu.memory_space<vmem>>, %arg3: memref<32x96xf32, #tpu.memory_space<vmem>>, %arg4: memref<1x96xf32, #tpu.memory_space<vmem>>, %arg5: memref<4x8x32xf32, #tpu.memory_space<vmem>>, %arg6: memref<1x32xf32, #tpu.memory_space<vmem>>, %arg7: memref<1x32xf32, #tpu.memory_space<vmem>>, %arg8: memref<1x32xf32, #tpu.memory_space<vmem>>, %arg9: memref<32x50xf32, #tpu.memory_space<vmem>>, %arg10: memref<1x50xf32, #tpu.memory_space<vmem>>, %arg11: memref<32x32xf32, #tpu.memory_space<vmem>>, %arg12: memref<1x32xf32, #tpu.memory_space<vmem>>, %arg13: memref<4x8x32xf32, #tpu.memory_space<vmem>>, %arg14: memref<1x32xf32, #tpu.memory_space<vmem>>, %arg15: memref<16x16xf32, #tpu.memory_space<vmem>>, %arg16: memref<1x32xf32, #tpu.memory_space<vmem>>, %arg17: memref<1x32xf32, #tpu.memory_space<vmem>>, %arg18: memref<32x64xf32, #tpu.memory_space<vmem>>, %arg19: memref<1x64xf32, #tpu.memory_space<vmem>>, %arg20: memref<64x32xf32, #tpu.memory_space<vmem>>, %arg21: memref<1x32xf32, #tpu.memory_space<vmem>>, %arg22: memref<1x32xf32, #tpu.memory_space<vmem>>, %arg23: memref<1x32xf32, #tpu.memory_space<vmem>>, %arg24: memref<1x8x32xf32, #tpu.memory_space<vmem>>) attributes {dimension_semantics = [#tpu.dimension_semantics<parallel>], iteration_bounds = array<i64: 2>, scalar_prefetch = 0 : i64, scratch_operands = 0 : i64, tpu.core_type = #tpu.core_type<tc>, window_params = [{transform_indices = @transform_0, window_bounds = array<i64: 1, 8, 32>}, {transform_indices = @transform_1, window_bounds = array<i64: 1, 16, 32>}, {pipeline_mode = #tpu.pipeline_mode<synchronous>, transform_indices = @transform_2, window_bounds = array<i64: 32, 96>}, {pipeline_mode = #tpu.pipeline_mode<synchronous>, transform_indices = @transform_3, window_bounds = array<i64: 1, 96>}, {pipeline_mode = #tpu.pipeline_mode<synchronous>, transform_indices = @transform_4, window_bounds = array<i64: 4, 8, 32>}, {pipeline_mode = #tpu.pipeline_mode<synchronous>, transform_indices = @transform_5, window_bounds = array<i64: 1, 32>}, {pipeline_mode = #tpu.pipeline_mode<synchronous>, transform_indices = @transform_6, window_bounds = array<i64: 1, 32>}, {pipeline_mode = #tpu.pipeline_mode<synchronous>, transform_indices = @transform_7, window_bounds = array<i64: 1, 32>}, {pipeline_mode = #tpu.pipeline_mode<synchronous>, transform_indices = @transform_8, window_bounds = array<i64: 32, 50>}, {pipeline_mode = #tpu.pipeline_mode<synchronous>, transform_indices = @transform_9, window_bounds = array<i64: 1, 50>}, {pipeline_mode = #tpu.pipeline_mode<synchronous>, transform_indices = @transform_10, window_bounds = array<i64: 32, 32>}, {pipeline_mode = #tpu.pipeline_mode<synchronous>, transform_indices = @transform_11, window_bounds = array<i64: 1, 32>}, {pipeline_mode = #tpu.pipeline_mode<synchronous>, transform_indices = @transform_12, window_bounds = array<i64: 4, 8, 32>}, {pipeline_mode = #tpu.pipeline_mode<synchronous>, transform_indices = @transform_13, window_bounds = array<i64: 1, 32>}, {pipeline_mode = #tpu.pipeline_mode<synchronous>, transform_indices = @transform_14, window_bounds = array<i64: 16, 16>}, {pipeline_mode = #tpu.pipeline_mode<synchronous>, transform_indices = @transform_15, window_bounds = array<i64: 1, 32>}, {pipeline_mode = #tpu.pipeline_mode<synchronous>, transform_indices = @transform_16, window_bounds = array<i64: 1, 32>}, {pipeline_mode = #tpu.pipeline_mode<synchronous>, transform_indices = @transform_17, window_bounds = array<i64: 32, 64>}, {pipeline_mode = #tpu.pipeline_mode<synchronous>, transform_indices = @transform_18, window_bounds = array<i64: 1, 64>}, {pipeline_mode = #tpu.pipeline_mode<synchronous>, transform_indices = @transform_19, window_bounds = array<i64: 64, 32>}, {pipeline_mode = #tpu.pipeline_mode<synchronous>, transform_indices = @transform_20, window_bounds = array<i64: 1, 32>}, {pipeline_mode = #tpu.pipeline_mode<synchronous>, transform_indices = @transform_21, window_bounds = array<i64: 1, 32>}, {pipeline_mode = #tpu.pipeline_mode<synchronous>, transform_indices = @transform_22, window_bounds = array<i64: 1, 32>}, {transform_indices = @transform_23, window_bounds = array<i64: 1, 8, 32>}]} {
    %c0 = arith.constant 0 : index
    %c0_0 = arith.constant 0 : index
    %c0_1 = arith.constant 0 : index
    %0 = vector.load %arg1[%c0, %c0_0, %c0_1] : memref<1x8x32xf32, #tpu.memory_space<vmem>>, vector<1x8x32xf32>
    %1 = vector.shape_cast %0 : vector<1x8x32xf32> to vector<8x32xf32>
    %c0_2 = arith.constant 0 : index
    %c0_3 = arith.constant 0 : index
    %c0_4 = arith.constant 0 : index
    %2 = vector.load %arg2[%c0_2, %c0_3, %c0_4] : memref<1x16x32xf32, #tpu.memory_space<vmem>>, vector<1x16x32xf32>
    %3 = vector.shape_cast %2 : vector<1x16x32xf32> to vector<16x32xf32>
    %c0_5 = arith.constant 0 : index
    %c0_6 = arith.constant 0 : index
    %4 = vector.load %arg3[%c0_5, %c0_6] : memref<32x96xf32, #tpu.memory_space<vmem>>, vector<32x96xf32>
    %cst = arith.constant dense<0.000000e+00> : vector<8x96xf32>
    %5 = tpu.matmul %1, %4, %cst {dimension_numbers = #tpu.dot_dimension_numbers<[1], [0], [0], [1], [0, 0, 1, 1], [], []>} : vector<8x32xf32>, vector<32x96xf32>, vector<8x96xf32> -> vector<8x96xf32>
    %c0_7 = arith.constant 0 : index
    %c0_8 = arith.constant 0 : index
    %6 = vector.load %arg4[%c0_7, %c0_8] : memref<1x96xf32, #tpu.memory_space<vmem>>, vector<1x96xf32>
    %7 = vector.shape_cast %6 : vector<1x96xf32> to vector<96xf32>
    %8 = vector.shape_cast %7 : vector<96xf32> to vector<1x96xf32>
    %9 = vector.broadcast %8 : vector<1x96xf32> to vector<8x96xf32>
    %10 = arith.addf %5, %9 : vector<8x96xf32>
    %11 = vector.extract_strided_slice %10 {offsets = [0, 0], sizes = [8, 8], strides = [1, 1]} : vector<8x96xf32> to vector<8x8xf32>
    %12 = vector.extract_strided_slice %10 {offsets = [0, 32], sizes = [8, 8], strides = [1, 1]} : vector<8x96xf32> to vector<8x8xf32>
    %13 = vector.extract_strided_slice %10 {offsets = [0, 64], sizes = [8, 8], strides = [1, 1]} : vector<8x96xf32> to vector<8x8xf32>
    "tpu.trace_start"() <{level = 10 : i32, message = "qd,kd->qk"}> : () -> ()
    %cst_9 = arith.constant dense<0.000000e+00> : vector<8x8xf32>
    %14 = tpu.matmul %11, %12, %cst_9 {dimension_numbers = #tpu.dot_dimension_numbers<[1], [1], [0], [0], [0, 0, 1, 0], [], []>} : vector<8x8xf32>, vector<8x8xf32>, vector<8x8xf32> -> vector<8x8xf32>
    "tpu.trace_stop"() : () -> ()
    %cst_10 = arith.constant dense<0xFF800000> : vector<8xf32>
    %15 = vector.multi_reduction <maximumf>, %14, %cst_10 [1] : vector<8x8xf32> to vector<8xf32>
    %16 = vector.shape_cast %15 : vector<8xf32> to vector<8x1xf32>
    %17 = vector.broadcast %16 : vector<8x1xf32> to vector<8x8xf32>
    %18 = arith.subf %14, %17 : vector<8x8xf32>
    %19 = math.exp %18 : vector<8x8xf32>
    %cst_11 = arith.constant dense<0.000000e+00> : vector<8xf32>
    %20 = vector.multi_reduction <add>, %19, %cst_11 [1] : vector<8x8xf32> to vector<8xf32>
    %21 = vector.shape_cast %20 : vector<8xf32> to vector<8x1xf32>
    %22 = vector.broadcast %21 : vector<8x1xf32> to vector<8x8xf32>
    %23 = arith.divf %19, %22 : vector<8x8xf32>
    %cst_12 = arith.constant dense<0.000000e+00> : vector<8x8xf32>
    %24 = tpu.matmul %23, %13, %cst_12 {dimension_numbers = #tpu.dot_dimension_numbers<[1], [0], [0], [1], [0, 0, 1, 1], [], []>} : vector<8x8xf32>, vector<8x8xf32>, vector<8x8xf32> -> vector<8x8xf32>
    %c0_13 = arith.constant 0 : index
    %c0_14 = arith.constant 0 : index
    %c0_15 = arith.constant 0 : index
    %25 = vector.load %arg5[%c0_13, %c0_14, %c0_15] : memref<4x8x32xf32, #tpu.memory_space<vmem>>, vector<1x8x32xf32>
    %26 = vector.shape_cast %25 : vector<1x8x32xf32> to vector<8x32xf32>
    %cst_16 = arith.constant dense<0.000000e+00> : vector<8x32xf32>
    %27 = tpu.matmul %24, %26, %cst_16 {dimension_numbers = #tpu.dot_dimension_numbers<[1], [0], [0], [1], [0, 0, 1, 1], [], []>} : vector<8x8xf32>, vector<8x32xf32>, vector<8x32xf32> -> vector<8x32xf32>
    %28 = vector.extract_strided_slice %10 {offsets = [0, 8], sizes = [8, 8], strides = [1, 1]} : vector<8x96xf32> to vector<8x8xf32>
    %29 = vector.extract_strided_slice %10 {offsets = [0, 40], sizes = [8, 8], strides = [1, 1]} : vector<8x96xf32> to vector<8x8xf32>
    %30 = vector.extract_strided_slice %10 {offsets = [0, 72], sizes = [8, 8], strides = [1, 1]} : vector<8x96xf32> to vector<8x8xf32>
    "tpu.trace_start"() <{level = 10 : i32, message = "qd,kd->qk"}> : () -> ()
    %cst_17 = arith.constant dense<0.000000e+00> : vector<8x8xf32>
    %31 = tpu.matmul %28, %29, %cst_17 {dimension_numbers = #tpu.dot_dimension_numbers<[1], [1], [0], [0], [0, 0, 1, 0], [], []>} : vector<8x8xf32>, vector<8x8xf32>, vector<8x8xf32> -> vector<8x8xf32>
    "tpu.trace_stop"() : () -> ()
    %cst_18 = arith.constant dense<0xFF800000> : vector<8xf32>
    %32 = vector.multi_reduction <maximumf>, %31, %cst_18 [1] : vector<8x8xf32> to vector<8xf32>
    %33 = vector.shape_cast %32 : vector<8xf32> to vector<8x1xf32>
    %34 = vector.broadcast %33 : vector<8x1xf32> to vector<8x8xf32>
    %35 = arith.subf %31, %34 : vector<8x8xf32>
    %36 = math.exp %35 : vector<8x8xf32>
    %cst_19 = arith.constant dense<0.000000e+00> : vector<8xf32>
    %37 = vector.multi_reduction <add>, %36, %cst_19 [1] : vector<8x8xf32> to vector<8xf32>
    %38 = vector.shape_cast %37 : vector<8xf32> to vector<8x1xf32>
    %39 = vector.broadcast %38 : vector<8x1xf32> to vector<8x8xf32>
    %40 = arith.divf %36, %39 : vector<8x8xf32>
    %cst_20 = arith.constant dense<0.000000e+00> : vector<8x8xf32>
    %41 = tpu.matmul %40, %30, %cst_20 {dimension_numbers = #tpu.dot_dimension_numbers<[1], [0], [0], [1], [0, 0, 1, 1], [], []>} : vector<8x8xf32>, vector<8x8xf32>, vector<8x8xf32> -> vector<8x8xf32>
    %c1 = arith.constant 1 : index
    %c0_21 = arith.constant 0 : index
    %c0_22 = arith.constant 0 : index
    %42 = vector.load %arg5[%c1, %c0_21, %c0_22] : memref<4x8x32xf32, #tpu.memory_space<vmem>>, vector<1x8x32xf32>
    %43 = vector.shape_cast %42 : vector<1x8x32xf32> to vector<8x32xf32>
    %cst_23 = arith.constant dense<0.000000e+00> : vector<8x32xf32>
    %44 = tpu.matmul %41, %43, %cst_23 {dimension_numbers = #tpu.dot_dimension_numbers<[1], [0], [0], [1], [0, 0, 1, 1], [], []>} : vector<8x8xf32>, vector<8x32xf32>, vector<8x32xf32> -> vector<8x32xf32>
    %45 = arith.addf %27, %44 : vector<8x32xf32>
    %46 = vector.extract_strided_slice %10 {offsets = [0, 16], sizes = [8, 8], strides = [1, 1]} : vector<8x96xf32> to vector<8x8xf32>
    %47 = vector.extract_strided_slice %10 {offsets = [0, 48], sizes = [8, 8], strides = [1, 1]} : vector<8x96xf32> to vector<8x8xf32>
    %48 = vector.extract_strided_slice %10 {offsets = [0, 80], sizes = [8, 8], strides = [1, 1]} : vector<8x96xf32> to vector<8x8xf32>
    "tpu.trace_start"() <{level = 10 : i32, message = "qd,kd->qk"}> : () -> ()
    %cst_24 = arith.constant dense<0.000000e+00> : vector<8x8xf32>
    %49 = tpu.matmul %46, %47, %cst_24 {dimension_numbers = #tpu.dot_dimension_numbers<[1], [1], [0], [0], [0, 0, 1, 0], [], []>} : vector<8x8xf32>, vector<8x8xf32>, vector<8x8xf32> -> vector<8x8xf32>
    "tpu.trace_stop"() : () -> ()
    %cst_25 = arith.constant dense<0xFF800000> : vector<8xf32>
    %50 = vector.multi_reduction <maximumf>, %49, %cst_25 [1] : vector<8x8xf32> to vector<8xf32>
    %51 = vector.shape_cast %50 : vector<8xf32> to vector<8x1xf32>
    %52 = vector.broadcast %51 : vector<8x1xf32> to vector<8x8xf32>
    %53 = arith.subf %49, %52 : vector<8x8xf32>
    %54 = math.exp %53 : vector<8x8xf32>
    %cst_26 = arith.constant dense<0.000000e+00> : vector<8xf32>
    %55 = vector.multi_reduction <add>, %54, %cst_26 [1] : vector<8x8xf32> to vector<8xf32>
    %56 = vector.shape_cast %55 : vector<8xf32> to vector<8x1xf32>
    %57 = vector.broadcast %56 : vector<8x1xf32> to vector<8x8xf32>
    %58 = arith.divf %54, %57 : vector<8x8xf32>
    %cst_27 = arith.constant dense<0.000000e+00> : vector<8x8xf32>
    %59 = tpu.matmul %58, %48, %cst_27 {dimension_numbers = #tpu.dot_dimension_numbers<[1], [0], [0], [1], [0, 0, 1, 1], [], []>} : vector<8x8xf32>, vector<8x8xf32>, vector<8x8xf32> -> vector<8x8xf32>
    %c2 = arith.constant 2 : index
    %c0_28 = arith.constant 0 : index
    %c0_29 = arith.constant 0 : index
    %60 = vector.load %arg5[%c2, %c0_28, %c0_29] : memref<4x8x32xf32, #tpu.memory_space<vmem>>, vector<1x8x32xf32>
    %61 = vector.shape_cast %60 : vector<1x8x32xf32> to vector<8x32xf32>
    %cst_30 = arith.constant dense<0.000000e+00> : vector<8x32xf32>
    %62 = tpu.matmul %59, %61, %cst_30 {dimension_numbers = #tpu.dot_dimension_numbers<[1], [0], [0], [1], [0, 0, 1, 1], [], []>} : vector<8x8xf32>, vector<8x32xf32>, vector<8x32xf32> -> vector<8x32xf32>
    %63 = arith.addf %45, %62 : vector<8x32xf32>
    %64 = vector.extract_strided_slice %10 {offsets = [0, 24], sizes = [8, 8], strides = [1, 1]} : vector<8x96xf32> to vector<8x8xf32>
    %65 = vector.extract_strided_slice %10 {offsets = [0, 56], sizes = [8, 8], strides = [1, 1]} : vector<8x96xf32> to vector<8x8xf32>
    %66 = vector.extract_strided_slice %10 {offsets = [0, 88], sizes = [8, 8], strides = [1, 1]} : vector<8x96xf32> to vector<8x8xf32>
    "tpu.trace_start"() <{level = 10 : i32, message = "qd,kd->qk"}> : () -> ()
    %cst_31 = arith.constant dense<0.000000e+00> : vector<8x8xf32>
    %67 = tpu.matmul %64, %65, %cst_31 {dimension_numbers = #tpu.dot_dimension_numbers<[1], [1], [0], [0], [0, 0, 1, 0], [], []>} : vector<8x8xf32>, vector<8x8xf32>, vector<8x8xf32> -> vector<8x8xf32>
    "tpu.trace_stop"() : () -> ()
    %cst_32 = arith.constant dense<0xFF800000> : vector<8xf32>
    %68 = vector.multi_reduction <maximumf>, %67, %cst_32 [1] : vector<8x8xf32> to vector<8xf32>
    %69 = vector.shape_cast %68 : vector<8xf32> to vector<8x1xf32>
    %70 = vector.broadcast %69 : vector<8x1xf32> to vector<8x8xf32>
    %71 = arith.subf %67, %70 : vector<8x8xf32>
    %72 = math.exp %71 : vector<8x8xf32>
    %cst_33 = arith.constant dense<0.000000e+00> : vector<8xf32>
    %73 = vector.multi_reduction <add>, %72, %cst_33 [1] : vector<8x8xf32> to vector<8xf32>
    %74 = vector.shape_cast %73 : vector<8xf32> to vector<8x1xf32>
    %75 = vector.broadcast %74 : vector<8x1xf32> to vector<8x8xf32>
    %76 = arith.divf %72, %75 : vector<8x8xf32>
    %cst_34 = arith.constant dense<0.000000e+00> : vector<8x8xf32>
    %77 = tpu.matmul %76, %66, %cst_34 {dimension_numbers = #tpu.dot_dimension_numbers<[1], [0], [0], [1], [0, 0, 1, 1], [], []>} : vector<8x8xf32>, vector<8x8xf32>, vector<8x8xf32> -> vector<8x8xf32>
    %c3 = arith.constant 3 : index
    %c0_35 = arith.constant 0 : index
    %c0_36 = arith.constant 0 : index
    %78 = vector.load %arg5[%c3, %c0_35, %c0_36] : memref<4x8x32xf32, #tpu.memory_space<vmem>>, vector<1x8x32xf32>
    %79 = vector.shape_cast %78 : vector<1x8x32xf32> to vector<8x32xf32>
    %cst_37 = arith.constant dense<0.000000e+00> : vector<8x32xf32>
    %80 = tpu.matmul %77, %79, %cst_37 {dimension_numbers = #tpu.dot_dimension_numbers<[1], [0], [0], [1], [0, 0, 1, 1], [], []>} : vector<8x8xf32>, vector<8x32xf32>, vector<8x32xf32> -> vector<8x32xf32>
    %81 = arith.addf %63, %80 : vector<8x32xf32>
    %82 = arith.addf %1, %81 : vector<8x32xf32>
    %c0_38 = arith.constant 0 : index
    %c0_39 = arith.constant 0 : index
    %83 = vector.load %arg6[%c0_38, %c0_39] : memref<1x32xf32, #tpu.memory_space<vmem>>, vector<1x32xf32>
    %84 = vector.shape_cast %83 : vector<1x32xf32> to vector<32xf32>
    %85 = vector.shape_cast %84 : vector<32xf32> to vector<1x32xf32>
    %86 = vector.broadcast %85 : vector<1x32xf32> to vector<8x32xf32>
    %87 = arith.addf %82, %86 : vector<8x32xf32>
    %cst_40 = arith.constant dense<0.000000e+00> : vector<8xf32>
    %88 = vector.multi_reduction <add>, %87, %cst_40 [1] : vector<8x32xf32> to vector<8xf32>
    %89 = vector.shape_cast %88 : vector<8xf32> to vector<8x1xf32>
    %cst_41 = arith.constant 3.200000e+01 : f32
    %90 = vector.broadcast %cst_41 : f32 to vector<8x1xf32>
    %91 = arith.divf %89, %90 : vector<8x1xf32>
    %92 = vector.broadcast %91 : vector<8x1xf32> to vector<8x32xf32>
    %93 = arith.subf %87, %92 : vector<8x32xf32>
    %94 = arith.mulf %93, %93 : vector<8x32xf32>
    %cst_42 = arith.constant dense<0.000000e+00> : vector<8xf32>
    %95 = vector.multi_reduction <add>, %94, %cst_42 [1] : vector<8x32xf32> to vector<8xf32>
    %96 = vector.shape_cast %95 : vector<8xf32> to vector<8x1xf32>
    %cst_43 = arith.constant 3.200000e+01 : f32
    %97 = vector.broadcast %cst_43 : f32 to vector<8x1xf32>
    %98 = arith.divf %96, %97 : vector<8x1xf32>
    %cst_44 = arith.constant 9.99999974E-6 : f32
    %99 = vector.broadcast %cst_44 : f32 to vector<8x1xf32>
    %100 = arith.addf %98, %99 : vector<8x1xf32>
    %101 = math.rsqrt %100 : vector<8x1xf32>
    %102 = vector.broadcast %101 : vector<8x1xf32> to vector<8x32xf32>
    %103 = arith.mulf %93, %102 : vector<8x32xf32>
    %c0_45 = arith.constant 0 : index
    %c0_46 = arith.constant 0 : index
    %104 = vector.load %arg7[%c0_45, %c0_46] : memref<1x32xf32, #tpu.memory_space<vmem>>, vector<1x32xf32>
    %105 = vector.shape_cast %104 : vector<1x32xf32> to vector<32xf32>
    %106 = vector.shape_cast %105 : vector<32xf32> to vector<1x32xf32>
    %107 = vector.broadcast %106 : vector<1x32xf32> to vector<8x32xf32>
    %108 = arith.mulf %103, %107 : vector<8x32xf32>
    %c0_47 = arith.constant 0 : index
    %c0_48 = arith.constant 0 : index
    %109 = vector.load %arg8[%c0_47, %c0_48] : memref<1x32xf32, #tpu.memory_space<vmem>>, vector<1x32xf32>
    %110 = vector.shape_cast %109 : vector<1x32xf32> to vector<32xf32>
    %111 = vector.shape_cast %110 : vector<32xf32> to vector<1x32xf32>
    %112 = vector.broadcast %111 : vector<1x32xf32> to vector<8x32xf32>
    %113 = arith.addf %108, %112 : vector<8x32xf32>
    %c0_49 = arith.constant 0 : index
    %c0_50 = arith.constant 0 : index
    %114 = vector.load %arg9[%c0_49, %c0_50] : memref<32x50xf32, #tpu.memory_space<vmem>>, vector<32x50xf32>
    %cst_51 = arith.constant dense<0.000000e+00> : vector<8x50xf32>
    %115 = tpu.matmul %113, %114, %cst_51 {dimension_numbers = #tpu.dot_dimension_numbers<[1], [0], [0], [1], [0, 0, 1, 1], [], []>} : vector<8x32xf32>, vector<32x50xf32>, vector<8x50xf32> -> vector<8x50xf32>
    %c0_52 = arith.constant 0 : index
    %c0_53 = arith.constant 0 : index
    %116 = vector.load %arg10[%c0_52, %c0_53] : memref<1x50xf32, #tpu.memory_space<vmem>>, vector<1x50xf32>
    %117 = vector.shape_cast %116 : vector<1x50xf32> to vector<50xf32>
    %118 = vector.shape_cast %117 : vector<50xf32> to vector<1x50xf32>
    %119 = vector.broadcast %118 : vector<1x50xf32> to vector<8x50xf32>
    %120 = arith.addf %115, %119 : vector<8x50xf32>
    %121 = vector.extract_strided_slice %120 {offsets = [0, 0], sizes = [8, 2], strides = [1, 1]} : vector<8x50xf32> to vector<8x2xf32>
    %122 = arith.negf %121 : vector<8x2xf32>
    %123 = math.exp %122 : vector<8x2xf32>
    %cst_54 = arith.constant 1.000000e+00 : f32
    %124 = vector.broadcast %cst_54 : f32 to vector<8x2xf32>
    %125 = arith.addf %124, %123 : vector<8x2xf32>
    %126 = arith.divf %124, %125 : vector<8x2xf32>
    %127 = vector.extract_strided_slice %126 {offsets = [0, 0], sizes = [8, 1], strides = [1, 1]} : vector<8x2xf32> to vector<8x1xf32>
    %128 = vector.extract_strided_slice %126 {offsets = [0, 1], sizes = [8, 1], strides = [1, 1]} : vector<8x2xf32> to vector<8x1xf32>
    %129 = vector.extract_strided_slice %120 {offsets = [0, 2], sizes = [8, 16], strides = [1, 1]} : vector<8x50xf32> to vector<8x16xf32>
    %130 = vector.extract_strided_slice %120 {offsets = [0, 18], sizes = [8, 16], strides = [1, 1]} : vector<8x50xf32> to vector<8x16xf32>
    %131 = vector.extract_strided_slice %120 {offsets = [0, 34], sizes = [8, 16], strides = [1, 1]} : vector<8x50xf32> to vector<8x16xf32>
    %c0_55 = arith.constant 0 : index
    %c0_56 = arith.constant 0 : index
    %132 = vector.load %arg11[%c0_55, %c0_56] : memref<32x32xf32, #tpu.memory_space<vmem>>, vector<32x32xf32>
    %cst_57 = arith.constant dense<0.000000e+00> : vector<16x32xf32>
    %133 = tpu.matmul %3, %132, %cst_57 {dimension_numbers = #tpu.dot_dimension_numbers<[1], [0], [0], [1], [0, 0, 1, 1], [], []>} : vector<16x32xf32>, vector<32x32xf32>, vector<16x32xf32> -> vector<16x32xf32>
    %c0_58 = arith.constant 0 : index
    %c0_59 = arith.constant 0 : index
    %134 = vector.load %arg12[%c0_58, %c0_59] : memref<1x32xf32, #tpu.memory_space<vmem>>, vector<1x32xf32>
    %135 = vector.shape_cast %134 : vector<1x32xf32> to vector<32xf32>
    %136 = vector.shape_cast %135 : vector<32xf32> to vector<1x32xf32>
    %137 = vector.broadcast %136 : vector<1x32xf32> to vector<16x32xf32>
    %138 = arith.addf %133, %137 : vector<16x32xf32>
    %cst_60 = arith.constant dense<0xFF800000> : vector<8xf32>
    %139 = vector.multi_reduction <maximumf>, %131, %cst_60 [1] : vector<8x16xf32> to vector<8xf32>
    %140 = vector.shape_cast %139 : vector<8xf32> to vector<8x1xf32>
    %141 = vector.broadcast %140 : vector<8x1xf32> to vector<8x16xf32>
    %142 = arith.subf %131, %141 : vector<8x16xf32>
    %143 = math.exp %142 : vector<8x16xf32>
    %c0_61 = arith.constant 0 : index
    %c0_62 = arith.constant 0 : index
    %144 = vector.load %arg15[%c0_61, %c0_62] : memref<16x16xf32, #tpu.memory_space<vmem>>, vector<16x16xf32>
    %cst_63 = arith.constant dense<0.000000e+00> : vector<8x16xf32>
    %145 = tpu.matmul %143, %144, %cst_63 {dimension_numbers = #tpu.dot_dimension_numbers<[1], [0], [0], [1], [0, 0, 1, 1], [], []>} : vector<8x16xf32>, vector<16x16xf32>, vector<8x16xf32> -> vector<8x16xf32>
    %146 = arith.divf %143, %145 : vector<8x16xf32>
    %147 = vector.broadcast %127 : vector<8x1xf32> to vector<8x16xf32>
    %148 = arith.addf %147, %129 : vector<8x16xf32>
    %cst_64 = arith.constant 0.000000e+00 : f32
    %cst_65 = arith.constant 1.000000e+00 : f32
    %149 = vector.broadcast %cst_64 : f32 to vector<8x16xf32>
    %150 = arith.maximumf %149, %148 : vector<8x16xf32>
    %151 = vector.broadcast %cst_65 : f32 to vector<8x16xf32>
    %152 = arith.minimumf %151, %150 : vector<8x16xf32>
    %cst_66 = arith.constant 3.000000e+00 : f32
    %153 = vector.broadcast %cst_66 : f32 to vector<8x16xf32>
    %154 = arith.mulf %152, %153 : vector<8x16xf32>
    %155 = vector.broadcast %128 : vector<8x1xf32> to vector<8x16xf32>
    %156 = arith.addf %155, %130 : vector<8x16xf32>
    %cst_67 = arith.constant 0.000000e+00 : f32
    %cst_68 = arith.constant 1.000000e+00 : f32
    %157 = vector.broadcast %cst_67 : f32 to vector<8x16xf32>
    %158 = arith.maximumf %157, %156 : vector<8x16xf32>
    %159 = vector.broadcast %cst_68 : f32 to vector<8x16xf32>
    %160 = arith.minimumf %159, %158 : vector<8x16xf32>
    %cst_69 = arith.constant 3.000000e+00 : f32
    %161 = vector.broadcast %cst_69 : f32 to vector<8x16xf32>
    %162 = arith.mulf %160, %161 : vector<8x16xf32>
    %163 = math.floor %154 : vector<8x16xf32>
    %164 = math.floor %162 : vector<8x16xf32>
    %c0_i32 = arith.constant 0 : i32
    %c3_i32 = arith.constant 3 : i32
    %165 = arith.sitofp %c0_i32 : i32 to f32
    %166 = vector.broadcast %165 : f32 to vector<8x16xf32>
    %167 = arith.maximumf %166, %163 : vector<8x16xf32>
    %168 = arith.sitofp %c3_i32 : i32 to f32
    %169 = vector.broadcast %168 : f32 to vector<8x16xf32>
    %170 = arith.minimumf %169, %167 : vector<8x16xf32>
    %171 = arith.fptosi %170 : vector<8x16xf32> to vector<8x16xi32>
    %cst_70 = arith.constant 1.000000e+00 : f32
    %172 = vector.broadcast %cst_70 : f32 to vector<8x16xf32>
    %173 = arith.addf %163, %172 : vector<8x16xf32>
    %c0_i32_71 = arith.constant 0 : i32
    %c3_i32_72 = arith.constant 3 : i32
    %174 = arith.sitofp %c0_i32_71 : i32 to f32
    %175 = vector.broadcast %174 : f32 to vector<8x16xf32>
    %176 = arith.maximumf %175, %173 : vector<8x16xf32>
    %177 = arith.sitofp %c3_i32_72 : i32 to f32
    %178 = vector.broadcast %177 : f32 to vector<8x16xf32>
    %179 = arith.minimumf %178, %176 : vector<8x16xf32>
    %180 = arith.fptosi %179 : vector<8x16xf32> to vector<8x16xi32>
    %c0_i32_73 = arith.constant 0 : i32
    %c3_i32_74 = arith.constant 3 : i32
    %181 = arith.sitofp %c0_i32_73 : i32 to f32
    %182 = vector.broadcast %181 : f32 to vector<8x16xf32>
    %183 = arith.maximumf %182, %164 : vector<8x16xf32>
    %184 = arith.sitofp %c3_i32_74 : i32 to f32
    %185 = vector.broadcast %184 : f32 to vector<8x16xf32>
    %186 = arith.minimumf %185, %183 : vector<8x16xf32>
    %187 = arith.fptosi %186 : vector<8x16xf32> to vector<8x16xi32>
    %cst_75 = arith.constant 1.000000e+00 : f32
    %188 = vector.broadcast %cst_75 : f32 to vector<8x16xf32>
    %189 = arith.addf %164, %188 : vector<8x16xf32>
    %c0_i32_76 = arith.constant 0 : i32
    %c3_i32_77 = arith.constant 3 : i32
    %190 = arith.sitofp %c0_i32_76 : i32 to f32
    %191 = vector.broadcast %190 : f32 to vector<8x16xf32>
    %192 = arith.maximumf %191, %189 : vector<8x16xf32>
    %193 = arith.sitofp %c3_i32_77 : i32 to f32
    %194 = vector.broadcast %193 : f32 to vector<8x16xf32>
    %195 = arith.minimumf %194, %192 : vector<8x16xf32>
    %196 = arith.fptosi %195 : vector<8x16xf32> to vector<8x16xi32>
    %197 = arith.subf %154, %163 : vector<8x16xf32>
    %cst_78 = arith.constant 1.000000e+00 : f32
    %198 = vector.broadcast %cst_78 : f32 to vector<8x16xf32>
    %199 = arith.subf %198, %197 : vector<8x16xf32>
    %200 = arith.subf %162, %164 : vector<8x16xf32>
    %cst_79 = arith.constant 1.000000e+00 : f32
    %201 = vector.broadcast %cst_79 : f32 to vector<8x16xf32>
    %202 = arith.subf %201, %200 : vector<8x16xf32>
    %203 = arith.mulf %146, %199 : vector<8x16xf32>
    %204 = arith.mulf %203, %202 : vector<8x16xf32>
    %205 = arith.mulf %146, %199 : vector<8x16xf32>
    %206 = arith.mulf %205, %200 : vector<8x16xf32>
    %207 = arith.mulf %146, %197 : vector<8x16xf32>
    %208 = arith.mulf %207, %202 : vector<8x16xf32>
    %209 = arith.mulf %146, %197 : vector<8x16xf32>
    %210 = arith.mulf %209, %200 : vector<8x16xf32>
    %c4_i32 = arith.constant 4 : i32
    %211 = vector.broadcast %c4_i32 : i32 to vector<8x16xi32>
    %212 = arith.muli %187, %211 : vector<8x16xi32>
    %213 = arith.addi %212, %171 : vector<8x16xi32>
    %c4_i32_80 = arith.constant 4 : i32
    %214 = vector.broadcast %c4_i32_80 : i32 to vector<8x16xi32>
    %215 = arith.muli %196, %214 : vector<8x16xi32>
    %216 = arith.addi %215, %171 : vector<8x16xi32>
    %c4_i32_81 = arith.constant 4 : i32
    %217 = vector.broadcast %c4_i32_81 : i32 to vector<8x16xi32>
    %218 = arith.muli %187, %217 : vector<8x16xi32>
    %219 = arith.addi %218, %180 : vector<8x16xi32>
    %c4_i32_82 = arith.constant 4 : i32
    %220 = vector.broadcast %c4_i32_82 : i32 to vector<8x16xi32>
    %221 = arith.muli %196, %220 : vector<8x16xi32>
    %222 = arith.addi %221, %180 : vector<8x16xi32>
    %223 = tpu.iota {dimensions = array<i32: 2>} : vector<1x1x16xi32>
    %224 = vector.extract_strided_slice %213 {offsets = [0, 0], sizes = [8, 4], strides = [1, 1]} : vector<8x16xi32> to vector<8x4xi32>
    %225 = vector.shape_cast %224 : vector<8x4xi32> to vector<8x4x1xi32>
    %226 = vector.broadcast %223 : vector<1x1x16xi32> to vector<8x4x16xi32>
    %227 = vector.broadcast %225 : vector<8x4x1xi32> to vector<8x4x16xi32>
    %228 = arith.cmpi eq, %226, %227 : vector<8x4x16xi32>
    %229 = vector.extract_strided_slice %204 {offsets = [0, 0], sizes = [8, 4], strides = [1, 1]} : vector<8x16xf32> to vector<8x4xf32>
    %230 = vector.shape_cast %229 : vector<8x4xf32> to vector<8x4x1xf32>
    %cst_83 = arith.constant 0.000000e+00 : f32
    %231 = vector.shape_cast %230 : vector<8x4x1xf32> to vector<8x4x1xf32>
    %232 = vector.broadcast %231 : vector<8x4x1xf32> to vector<8x4x16xf32>
    %233 = vector.broadcast %cst_83 : f32 to vector<8x4x16xf32>
    %234 = arith.select %228, %232, %233 : vector<8x4x16xi1>, vector<8x4x16xf32>
    %235 = vector.extract_strided_slice %216 {offsets = [0, 0], sizes = [8, 4], strides = [1, 1]} : vector<8x16xi32> to vector<8x4xi32>
    %236 = vector.shape_cast %235 : vector<8x4xi32> to vector<8x4x1xi32>
    %237 = vector.broadcast %223 : vector<1x1x16xi32> to vector<8x4x16xi32>
    %238 = vector.broadcast %236 : vector<8x4x1xi32> to vector<8x4x16xi32>
    %239 = arith.cmpi eq, %237, %238 : vector<8x4x16xi32>
    %240 = vector.extract_strided_slice %206 {offsets = [0, 0], sizes = [8, 4], strides = [1, 1]} : vector<8x16xf32> to vector<8x4xf32>
    %241 = vector.shape_cast %240 : vector<8x4xf32> to vector<8x4x1xf32>
    %cst_84 = arith.constant 0.000000e+00 : f32
    %242 = vector.shape_cast %241 : vector<8x4x1xf32> to vector<8x4x1xf32>
    %243 = vector.broadcast %242 : vector<8x4x1xf32> to vector<8x4x16xf32>
    %244 = vector.broadcast %cst_84 : f32 to vector<8x4x16xf32>
    %245 = arith.select %239, %243, %244 : vector<8x4x16xi1>, vector<8x4x16xf32>
    %246 = arith.addf %234, %245 : vector<8x4x16xf32>
    %247 = vector.extract_strided_slice %219 {offsets = [0, 0], sizes = [8, 4], strides = [1, 1]} : vector<8x16xi32> to vector<8x4xi32>
    %248 = vector.shape_cast %247 : vector<8x4xi32> to vector<8x4x1xi32>
    %249 = vector.broadcast %223 : vector<1x1x16xi32> to vector<8x4x16xi32>
    %250 = vector.broadcast %248 : vector<8x4x1xi32> to vector<8x4x16xi32>
    %251 = arith.cmpi eq, %249, %250 : vector<8x4x16xi32>
    %252 = vector.extract_strided_slice %208 {offsets = [0, 0], sizes = [8, 4], strides = [1, 1]} : vector<8x16xf32> to vector<8x4xf32>
    %253 = vector.shape_cast %252 : vector<8x4xf32> to vector<8x4x1xf32>
    %cst_85 = arith.constant 0.000000e+00 : f32
    %254 = vector.shape_cast %253 : vector<8x4x1xf32> to vector<8x4x1xf32>
    %255 = vector.broadcast %254 : vector<8x4x1xf32> to vector<8x4x16xf32>
    %256 = vector.broadcast %cst_85 : f32 to vector<8x4x16xf32>
    %257 = arith.select %251, %255, %256 : vector<8x4x16xi1>, vector<8x4x16xf32>
    %258 = arith.addf %246, %257 : vector<8x4x16xf32>
    %259 = vector.extract_strided_slice %222 {offsets = [0, 0], sizes = [8, 4], strides = [1, 1]} : vector<8x16xi32> to vector<8x4xi32>
    %260 = vector.shape_cast %259 : vector<8x4xi32> to vector<8x4x1xi32>
    %261 = vector.broadcast %223 : vector<1x1x16xi32> to vector<8x4x16xi32>
    %262 = vector.broadcast %260 : vector<8x4x1xi32> to vector<8x4x16xi32>
    %263 = arith.cmpi eq, %261, %262 : vector<8x4x16xi32>
    %264 = vector.extract_strided_slice %210 {offsets = [0, 0], sizes = [8, 4], strides = [1, 1]} : vector<8x16xf32> to vector<8x4xf32>
    %265 = vector.shape_cast %264 : vector<8x4xf32> to vector<8x4x1xf32>
    %cst_86 = arith.constant 0.000000e+00 : f32
    %266 = vector.shape_cast %265 : vector<8x4x1xf32> to vector<8x4x1xf32>
    %267 = vector.broadcast %266 : vector<8x4x1xf32> to vector<8x4x16xf32>
    %268 = vector.broadcast %cst_86 : f32 to vector<8x4x16xf32>
    %269 = arith.select %263, %267, %268 : vector<8x4x16xi1>, vector<8x4x16xf32>
    %270 = arith.addf %258, %269 : vector<8x4x16xf32>
    %cst_87 = arith.constant dense<0.000000e+00> : vector<8x16xf32>
    %271 = vector.multi_reduction <add>, %270, %cst_87 [1] : vector<8x4x16xf32> to vector<8x16xf32>
    %272 = vector.extract_strided_slice %138 {offsets = [0, 0], sizes = [16, 8], strides = [1, 1]} : vector<16x32xf32> to vector<16x8xf32>
    %cst_88 = arith.constant dense<0.000000e+00> : vector<8x8xf32>
    %273 = tpu.matmul %271, %272, %cst_88 {dimension_numbers = #tpu.dot_dimension_numbers<[1], [0], [0], [1], [0, 0, 1, 1], [], []>} : vector<8x16xf32>, vector<16x8xf32>, vector<8x8xf32> -> vector<8x8xf32>
    %c0_89 = arith.constant 0 : index
    %c0_90 = arith.constant 0 : index
    %c0_91 = arith.constant 0 : index
    %274 = vector.load %arg13[%c0_89, %c0_90, %c0_91] : memref<4x8x32xf32, #tpu.memory_space<vmem>>, vector<1x8x32xf32>
    %275 = vector.shape_cast %274 : vector<1x8x32xf32> to vector<8x32xf32>
    %cst_92 = arith.constant dense<0.000000e+00> : vector<8x32xf32>
    %276 = tpu.matmul %273, %275, %cst_92 {dimension_numbers = #tpu.dot_dimension_numbers<[1], [0], [0], [1], [0, 0, 1, 1], [], []>} : vector<8x8xf32>, vector<8x32xf32>, vector<8x32xf32> -> vector<8x32xf32>
    %277 = vector.extract_strided_slice %213 {offsets = [0, 4], sizes = [8, 4], strides = [1, 1]} : vector<8x16xi32> to vector<8x4xi32>
    %278 = vector.shape_cast %277 : vector<8x4xi32> to vector<8x4x1xi32>
    %279 = vector.broadcast %223 : vector<1x1x16xi32> to vector<8x4x16xi32>
    %280 = vector.broadcast %278 : vector<8x4x1xi32> to vector<8x4x16xi32>
    %281 = arith.cmpi eq, %279, %280 : vector<8x4x16xi32>
    %282 = vector.extract_strided_slice %204 {offsets = [0, 4], sizes = [8, 4], strides = [1, 1]} : vector<8x16xf32> to vector<8x4xf32>
    %283 = vector.shape_cast %282 : vector<8x4xf32> to vector<8x4x1xf32>
    %cst_93 = arith.constant 0.000000e+00 : f32
    %284 = vector.shape_cast %283 : vector<8x4x1xf32> to vector<8x4x1xf32>
    %285 = vector.broadcast %284 : vector<8x4x1xf32> to vector<8x4x16xf32>
    %286 = vector.broadcast %cst_93 : f32 to vector<8x4x16xf32>
    %287 = arith.select %281, %285, %286 : vector<8x4x16xi1>, vector<8x4x16xf32>
    %288 = vector.extract_strided_slice %216 {offsets = [0, 4], sizes = [8, 4], strides = [1, 1]} : vector<8x16xi32> to vector<8x4xi32>
    %289 = vector.shape_cast %288 : vector<8x4xi32> to vector<8x4x1xi32>
    %290 = vector.broadcast %223 : vector<1x1x16xi32> to vector<8x4x16xi32>
    %291 = vector.broadcast %289 : vector<8x4x1xi32> to vector<8x4x16xi32>
    %292 = arith.cmpi eq, %290, %291 : vector<8x4x16xi32>
    %293 = vector.extract_strided_slice %206 {offsets = [0, 4], sizes = [8, 4], strides = [1, 1]} : vector<8x16xf32> to vector<8x4xf32>
    %294 = vector.shape_cast %293 : vector<8x4xf32> to vector<8x4x1xf32>
    %cst_94 = arith.constant 0.000000e+00 : f32
    %295 = vector.shape_cast %294 : vector<8x4x1xf32> to vector<8x4x1xf32>
    %296 = vector.broadcast %295 : vector<8x4x1xf32> to vector<8x4x16xf32>
    %297 = vector.broadcast %cst_94 : f32 to vector<8x4x16xf32>
    %298 = arith.select %292, %296, %297 : vector<8x4x16xi1>, vector<8x4x16xf32>
    %299 = arith.addf %287, %298 : vector<8x4x16xf32>
    %300 = vector.extract_strided_slice %219 {offsets = [0, 4], sizes = [8, 4], strides = [1, 1]} : vector<8x16xi32> to vector<8x4xi32>
    %301 = vector.shape_cast %300 : vector<8x4xi32> to vector<8x4x1xi32>
    %302 = vector.broadcast %223 : vector<1x1x16xi32> to vector<8x4x16xi32>
    %303 = vector.broadcast %301 : vector<8x4x1xi32> to vector<8x4x16xi32>
    %304 = arith.cmpi eq, %302, %303 : vector<8x4x16xi32>
    %305 = vector.extract_strided_slice %208 {offsets = [0, 4], sizes = [8, 4], strides = [1, 1]} : vector<8x16xf32> to vector<8x4xf32>
    %306 = vector.shape_cast %305 : vector<8x4xf32> to vector<8x4x1xf32>
    %cst_95 = arith.constant 0.000000e+00 : f32
    %307 = vector.shape_cast %306 : vector<8x4x1xf32> to vector<8x4x1xf32>
    %308 = vector.broadcast %307 : vector<8x4x1xf32> to vector<8x4x16xf32>
    %309 = vector.broadcast %cst_95 : f32 to vector<8x4x16xf32>
    %310 = arith.select %304, %308, %309 : vector<8x4x16xi1>, vector<8x4x16xf32>
    %311 = arith.addf %299, %310 : vector<8x4x16xf32>
    %312 = vector.extract_strided_slice %222 {offsets = [0, 4], sizes = [8, 4], strides = [1, 1]} : vector<8x16xi32> to vector<8x4xi32>
    %313 = vector.shape_cast %312 : vector<8x4xi32> to vector<8x4x1xi32>
    %314 = vector.broadcast %223 : vector<1x1x16xi32> to vector<8x4x16xi32>
    %315 = vector.broadcast %313 : vector<8x4x1xi32> to vector<8x4x16xi32>
    %316 = arith.cmpi eq, %314, %315 : vector<8x4x16xi32>
    %317 = vector.extract_strided_slice %210 {offsets = [0, 4], sizes = [8, 4], strides = [1, 1]} : vector<8x16xf32> to vector<8x4xf32>
    %318 = vector.shape_cast %317 : vector<8x4xf32> to vector<8x4x1xf32>
    %cst_96 = arith.constant 0.000000e+00 : f32
    %319 = vector.shape_cast %318 : vector<8x4x1xf32> to vector<8x4x1xf32>
    %320 = vector.broadcast %319 : vector<8x4x1xf32> to vector<8x4x16xf32>
    %321 = vector.broadcast %cst_96 : f32 to vector<8x4x16xf32>
    %322 = arith.select %316, %320, %321 : vector<8x4x16xi1>, vector<8x4x16xf32>
    %323 = arith.addf %311, %322 : vector<8x4x16xf32>
    %cst_97 = arith.constant dense<0.000000e+00> : vector<8x16xf32>
    %324 = vector.multi_reduction <add>, %323, %cst_97 [1] : vector<8x4x16xf32> to vector<8x16xf32>
    %325 = vector.extract_strided_slice %138 {offsets = [0, 8], sizes = [16, 8], strides = [1, 1]} : vector<16x32xf32> to vector<16x8xf32>
    %cst_98 = arith.constant dense<0.000000e+00> : vector<8x8xf32>
    %326 = tpu.matmul %324, %325, %cst_98 {dimension_numbers = #tpu.dot_dimension_numbers<[1], [0], [0], [1], [0, 0, 1, 1], [], []>} : vector<8x16xf32>, vector<16x8xf32>, vector<8x8xf32> -> vector<8x8xf32>
    %c1_99 = arith.constant 1 : index
    %c0_100 = arith.constant 0 : index
    %c0_101 = arith.constant 0 : index
    %327 = vector.load %arg13[%c1_99, %c0_100, %c0_101] : memref<4x8x32xf32, #tpu.memory_space<vmem>>, vector<1x8x32xf32>
    %328 = vector.shape_cast %327 : vector<1x8x32xf32> to vector<8x32xf32>
    %cst_102 = arith.constant dense<0.000000e+00> : vector<8x32xf32>
    %329 = tpu.matmul %326, %328, %cst_102 {dimension_numbers = #tpu.dot_dimension_numbers<[1], [0], [0], [1], [0, 0, 1, 1], [], []>} : vector<8x8xf32>, vector<8x32xf32>, vector<8x32xf32> -> vector<8x32xf32>
    %330 = arith.addf %276, %329 : vector<8x32xf32>
    %331 = vector.extract_strided_slice %213 {offsets = [0, 8], sizes = [8, 4], strides = [1, 1]} : vector<8x16xi32> to vector<8x4xi32>
    %332 = vector.shape_cast %331 : vector<8x4xi32> to vector<8x4x1xi32>
    %333 = vector.broadcast %223 : vector<1x1x16xi32> to vector<8x4x16xi32>
    %334 = vector.broadcast %332 : vector<8x4x1xi32> to vector<8x4x16xi32>
    %335 = arith.cmpi eq, %333, %334 : vector<8x4x16xi32>
    %336 = vector.extract_strided_slice %204 {offsets = [0, 8], sizes = [8, 4], strides = [1, 1]} : vector<8x16xf32> to vector<8x4xf32>
    %337 = vector.shape_cast %336 : vector<8x4xf32> to vector<8x4x1xf32>
    %cst_103 = arith.constant 0.000000e+00 : f32
    %338 = vector.shape_cast %337 : vector<8x4x1xf32> to vector<8x4x1xf32>
    %339 = vector.broadcast %338 : vector<8x4x1xf32> to vector<8x4x16xf32>
    %340 = vector.broadcast %cst_103 : f32 to vector<8x4x16xf32>
    %341 = arith.select %335, %339, %340 : vector<8x4x16xi1>, vector<8x4x16xf32>
    %342 = vector.extract_strided_slice %216 {offsets = [0, 8], sizes = [8, 4], strides = [1, 1]} : vector<8x16xi32> to vector<8x4xi32>
    %343 = vector.shape_cast %342 : vector<8x4xi32> to vector<8x4x1xi32>
    %344 = vector.broadcast %223 : vector<1x1x16xi32> to vector<8x4x16xi32>
    %345 = vector.broadcast %343 : vector<8x4x1xi32> to vector<8x4x16xi32>
    %346 = arith.cmpi eq, %344, %345 : vector<8x4x16xi32>
    %347 = vector.extract_strided_slice %206 {offsets = [0, 8], sizes = [8, 4], strides = [1, 1]} : vector<8x16xf32> to vector<8x4xf32>
    %348 = vector.shape_cast %347 : vector<8x4xf32> to vector<8x4x1xf32>
    %cst_104 = arith.constant 0.000000e+00 : f32
    %349 = vector.shape_cast %348 : vector<8x4x1xf32> to vector<8x4x1xf32>
    %350 = vector.broadcast %349 : vector<8x4x1xf32> to vector<8x4x16xf32>
    %351 = vector.broadcast %cst_104 : f32 to vector<8x4x16xf32>
    %352 = arith.select %346, %350, %351 : vector<8x4x16xi1>, vector<8x4x16xf32>
    %353 = arith.addf %341, %352 : vector<8x4x16xf32>
    %354 = vector.extract_strided_slice %219 {offsets = [0, 8], sizes = [8, 4], strides = [1, 1]} : vector<8x16xi32> to vector<8x4xi32>
    %355 = vector.shape_cast %354 : vector<8x4xi32> to vector<8x4x1xi32>
    %356 = vector.broadcast %223 : vector<1x1x16xi32> to vector<8x4x16xi32>
    %357 = vector.broadcast %355 : vector<8x4x1xi32> to vector<8x4x16xi32>
    %358 = arith.cmpi eq, %356, %357 : vector<8x4x16xi32>
    %359 = vector.extract_strided_slice %208 {offsets = [0, 8], sizes = [8, 4], strides = [1, 1]} : vector<8x16xf32> to vector<8x4xf32>
    %360 = vector.shape_cast %359 : vector<8x4xf32> to vector<8x4x1xf32>
    %cst_105 = arith.constant 0.000000e+00 : f32
    %361 = vector.shape_cast %360 : vector<8x4x1xf32> to vector<8x4x1xf32>
    %362 = vector.broadcast %361 : vector<8x4x1xf32> to vector<8x4x16xf32>
    %363 = vector.broadcast %cst_105 : f32 to vector<8x4x16xf32>
    %364 = arith.select %358, %362, %363 : vector<8x4x16xi1>, vector<8x4x16xf32>
    %365 = arith.addf %353, %364 : vector<8x4x16xf32>
    %366 = vector.extract_strided_slice %222 {offsets = [0, 8], sizes = [8, 4], strides = [1, 1]} : vector<8x16xi32> to vector<8x4xi32>
    %367 = vector.shape_cast %366 : vector<8x4xi32> to vector<8x4x1xi32>
    %368 = vector.broadcast %223 : vector<1x1x16xi32> to vector<8x4x16xi32>
    %369 = vector.broadcast %367 : vector<8x4x1xi32> to vector<8x4x16xi32>
    %370 = arith.cmpi eq, %368, %369 : vector<8x4x16xi32>
    %371 = vector.extract_strided_slice %210 {offsets = [0, 8], sizes = [8, 4], strides = [1, 1]} : vector<8x16xf32> to vector<8x4xf32>
    %372 = vector.shape_cast %371 : vector<8x4xf32> to vector<8x4x1xf32>
    %cst_106 = arith.constant 0.000000e+00 : f32
    %373 = vector.shape_cast %372 : vector<8x4x1xf32> to vector<8x4x1xf32>
    %374 = vector.broadcast %373 : vector<8x4x1xf32> to vector<8x4x16xf32>
    %375 = vector.broadcast %cst_106 : f32 to vector<8x4x16xf32>
    %376 = arith.select %370, %374, %375 : vector<8x4x16xi1>, vector<8x4x16xf32>
    %377 = arith.addf %365, %376 : vector<8x4x16xf32>
    %cst_107 = arith.constant dense<0.000000e+00> : vector<8x16xf32>
    %378 = vector.multi_reduction <add>, %377, %cst_107 [1] : vector<8x4x16xf32> to vector<8x16xf32>
    %379 = vector.extract_strided_slice %138 {offsets = [0, 16], sizes = [16, 8], strides = [1, 1]} : vector<16x32xf32> to vector<16x8xf32>
    %cst_108 = arith.constant dense<0.000000e+00> : vector<8x8xf32>
    %380 = tpu.matmul %378, %379, %cst_108 {dimension_numbers = #tpu.dot_dimension_numbers<[1], [0], [0], [1], [0, 0, 1, 1], [], []>} : vector<8x16xf32>, vector<16x8xf32>, vector<8x8xf32> -> vector<8x8xf32>
    %c2_109 = arith.constant 2 : index
    %c0_110 = arith.constant 0 : index
    %c0_111 = arith.constant 0 : index
    %381 = vector.load %arg13[%c2_109, %c0_110, %c0_111] : memref<4x8x32xf32, #tpu.memory_space<vmem>>, vector<1x8x32xf32>
    %382 = vector.shape_cast %381 : vector<1x8x32xf32> to vector<8x32xf32>
    %cst_112 = arith.constant dense<0.000000e+00> : vector<8x32xf32>
    %383 = tpu.matmul %380, %382, %cst_112 {dimension_numbers = #tpu.dot_dimension_numbers<[1], [0], [0], [1], [0, 0, 1, 1], [], []>} : vector<8x8xf32>, vector<8x32xf32>, vector<8x32xf32> -> vector<8x32xf32>
    %384 = arith.addf %330, %383 : vector<8x32xf32>
    %385 = vector.extract_strided_slice %213 {offsets = [0, 12], sizes = [8, 4], strides = [1, 1]} : vector<8x16xi32> to vector<8x4xi32>
    %386 = vector.shape_cast %385 : vector<8x4xi32> to vector<8x4x1xi32>
    %387 = vector.broadcast %223 : vector<1x1x16xi32> to vector<8x4x16xi32>
    %388 = vector.broadcast %386 : vector<8x4x1xi32> to vector<8x4x16xi32>
    %389 = arith.cmpi eq, %387, %388 : vector<8x4x16xi32>
    %390 = vector.extract_strided_slice %204 {offsets = [0, 12], sizes = [8, 4], strides = [1, 1]} : vector<8x16xf32> to vector<8x4xf32>
    %391 = vector.shape_cast %390 : vector<8x4xf32> to vector<8x4x1xf32>
    %cst_113 = arith.constant 0.000000e+00 : f32
    %392 = vector.shape_cast %391 : vector<8x4x1xf32> to vector<8x4x1xf32>
    %393 = vector.broadcast %392 : vector<8x4x1xf32> to vector<8x4x16xf32>
    %394 = vector.broadcast %cst_113 : f32 to vector<8x4x16xf32>
    %395 = arith.select %389, %393, %394 : vector<8x4x16xi1>, vector<8x4x16xf32>
    %396 = vector.extract_strided_slice %216 {offsets = [0, 12], sizes = [8, 4], strides = [1, 1]} : vector<8x16xi32> to vector<8x4xi32>
    %397 = vector.shape_cast %396 : vector<8x4xi32> to vector<8x4x1xi32>
    %398 = vector.broadcast %223 : vector<1x1x16xi32> to vector<8x4x16xi32>
    %399 = vector.broadcast %397 : vector<8x4x1xi32> to vector<8x4x16xi32>
    %400 = arith.cmpi eq, %398, %399 : vector<8x4x16xi32>
    %401 = vector.extract_strided_slice %206 {offsets = [0, 12], sizes = [8, 4], strides = [1, 1]} : vector<8x16xf32> to vector<8x4xf32>
    %402 = vector.shape_cast %401 : vector<8x4xf32> to vector<8x4x1xf32>
    %cst_114 = arith.constant 0.000000e+00 : f32
    %403 = vector.shape_cast %402 : vector<8x4x1xf32> to vector<8x4x1xf32>
    %404 = vector.broadcast %403 : vector<8x4x1xf32> to vector<8x4x16xf32>
    %405 = vector.broadcast %cst_114 : f32 to vector<8x4x16xf32>
    %406 = arith.select %400, %404, %405 : vector<8x4x16xi1>, vector<8x4x16xf32>
    %407 = arith.addf %395, %406 : vector<8x4x16xf32>
    %408 = vector.extract_strided_slice %219 {offsets = [0, 12], sizes = [8, 4], strides = [1, 1]} : vector<8x16xi32> to vector<8x4xi32>
    %409 = vector.shape_cast %408 : vector<8x4xi32> to vector<8x4x1xi32>
    %410 = vector.broadcast %223 : vector<1x1x16xi32> to vector<8x4x16xi32>
    %411 = vector.broadcast %409 : vector<8x4x1xi32> to vector<8x4x16xi32>
    %412 = arith.cmpi eq, %410, %411 : vector<8x4x16xi32>
    %413 = vector.extract_strided_slice %208 {offsets = [0, 12], sizes = [8, 4], strides = [1, 1]} : vector<8x16xf32> to vector<8x4xf32>
    %414 = vector.shape_cast %413 : vector<8x4xf32> to vector<8x4x1xf32>
    %cst_115 = arith.constant 0.000000e+00 : f32
    %415 = vector.shape_cast %414 : vector<8x4x1xf32> to vector<8x4x1xf32>
    %416 = vector.broadcast %415 : vector<8x4x1xf32> to vector<8x4x16xf32>
    %417 = vector.broadcast %cst_115 : f32 to vector<8x4x16xf32>
    %418 = arith.select %412, %416, %417 : vector<8x4x16xi1>, vector<8x4x16xf32>
    %419 = arith.addf %407, %418 : vector<8x4x16xf32>
    %420 = vector.extract_strided_slice %222 {offsets = [0, 12], sizes = [8, 4], strides = [1, 1]} : vector<8x16xi32> to vector<8x4xi32>
    %421 = vector.shape_cast %420 : vector<8x4xi32> to vector<8x4x1xi32>
    %422 = vector.broadcast %223 : vector<1x1x16xi32> to vector<8x4x16xi32>
    %423 = vector.broadcast %421 : vector<8x4x1xi32> to vector<8x4x16xi32>
    %424 = arith.cmpi eq, %422, %423 : vector<8x4x16xi32>
    %425 = vector.extract_strided_slice %210 {offsets = [0, 12], sizes = [8, 4], strides = [1, 1]} : vector<8x16xf32> to vector<8x4xf32>
    %426 = vector.shape_cast %425 : vector<8x4xf32> to vector<8x4x1xf32>
    %cst_116 = arith.constant 0.000000e+00 : f32
    %427 = vector.shape_cast %426 : vector<8x4x1xf32> to vector<8x4x1xf32>
    %428 = vector.broadcast %427 : vector<8x4x1xf32> to vector<8x4x16xf32>
    %429 = vector.broadcast %cst_116 : f32 to vector<8x4x16xf32>
    %430 = arith.select %424, %428, %429 : vector<8x4x16xi1>, vector<8x4x16xf32>
    %431 = arith.addf %419, %430 : vector<8x4x16xf32>
    %cst_117 = arith.constant dense<0.000000e+00> : vector<8x16xf32>
    %432 = vector.multi_reduction <add>, %431, %cst_117 [1] : vector<8x4x16xf32> to vector<8x16xf32>
    %433 = vector.extract_strided_slice %138 {offsets = [0, 24], sizes = [16, 8], strides = [1, 1]} : vector<16x32xf32> to vector<16x8xf32>
    %cst_118 = arith.constant dense<0.000000e+00> : vector<8x8xf32>
    %434 = tpu.matmul %432, %433, %cst_118 {dimension_numbers = #tpu.dot_dimension_numbers<[1], [0], [0], [1], [0, 0, 1, 1], [], []>} : vector<8x16xf32>, vector<16x8xf32>, vector<8x8xf32> -> vector<8x8xf32>
    %c3_119 = arith.constant 3 : index
    %c0_120 = arith.constant 0 : index
    %c0_121 = arith.constant 0 : index
    %435 = vector.load %arg13[%c3_119, %c0_120, %c0_121] : memref<4x8x32xf32, #tpu.memory_space<vmem>>, vector<1x8x32xf32>
    %436 = vector.shape_cast %435 : vector<1x8x32xf32> to vector<8x32xf32>
    %cst_122 = arith.constant dense<0.000000e+00> : vector<8x32xf32>
    %437 = tpu.matmul %434, %436, %cst_122 {dimension_numbers = #tpu.dot_dimension_numbers<[1], [0], [0], [1], [0, 0, 1, 1], [], []>} : vector<8x8xf32>, vector<8x32xf32>, vector<8x32xf32> -> vector<8x32xf32>
    %438 = arith.addf %384, %437 : vector<8x32xf32>
    %439 = arith.addf %113, %438 : vector<8x32xf32>
    %c0_123 = arith.constant 0 : index
    %c0_124 = arith.constant 0 : index
    %440 = vector.load %arg14[%c0_123, %c0_124] : memref<1x32xf32, #tpu.memory_space<vmem>>, vector<1x32xf32>
    %441 = vector.shape_cast %440 : vector<1x32xf32> to vector<32xf32>
    %442 = vector.shape_cast %441 : vector<32xf32> to vector<1x32xf32>
    %443 = vector.broadcast %442 : vector<1x32xf32> to vector<8x32xf32>
    %444 = arith.addf %439, %443 : vector<8x32xf32>
    %cst_125 = arith.constant dense<0.000000e+00> : vector<8xf32>
    %445 = vector.multi_reduction <add>, %444, %cst_125 [1] : vector<8x32xf32> to vector<8xf32>
    %446 = vector.shape_cast %445 : vector<8xf32> to vector<8x1xf32>
    %cst_126 = arith.constant 3.200000e+01 : f32
    %447 = vector.broadcast %cst_126 : f32 to vector<8x1xf32>
    %448 = arith.divf %446, %447 : vector<8x1xf32>
    %449 = vector.broadcast %448 : vector<8x1xf32> to vector<8x32xf32>
    %450 = arith.subf %444, %449 : vector<8x32xf32>
    %451 = arith.mulf %450, %450 : vector<8x32xf32>
    %cst_127 = arith.constant dense<0.000000e+00> : vector<8xf32>
    %452 = vector.multi_reduction <add>, %451, %cst_127 [1] : vector<8x32xf32> to vector<8xf32>
    %453 = vector.shape_cast %452 : vector<8xf32> to vector<8x1xf32>
    %cst_128 = arith.constant 3.200000e+01 : f32
    %454 = vector.broadcast %cst_128 : f32 to vector<8x1xf32>
    %455 = arith.divf %453, %454 : vector<8x1xf32>
    %cst_129 = arith.constant 9.99999974E-6 : f32
    %456 = vector.broadcast %cst_129 : f32 to vector<8x1xf32>
    %457 = arith.addf %455, %456 : vector<8x1xf32>
    %458 = math.rsqrt %457 : vector<8x1xf32>
    %459 = vector.broadcast %458 : vector<8x1xf32> to vector<8x32xf32>
    %460 = arith.mulf %450, %459 : vector<8x32xf32>
    %c0_130 = arith.constant 0 : index
    %c0_131 = arith.constant 0 : index
    %461 = vector.load %arg16[%c0_130, %c0_131] : memref<1x32xf32, #tpu.memory_space<vmem>>, vector<1x32xf32>
    %462 = vector.shape_cast %461 : vector<1x32xf32> to vector<32xf32>
    %463 = vector.shape_cast %462 : vector<32xf32> to vector<1x32xf32>
    %464 = vector.broadcast %463 : vector<1x32xf32> to vector<8x32xf32>
    %465 = arith.mulf %460, %464 : vector<8x32xf32>
    %c0_132 = arith.constant 0 : index
    %c0_133 = arith.constant 0 : index
    %466 = vector.load %arg17[%c0_132, %c0_133] : memref<1x32xf32, #tpu.memory_space<vmem>>, vector<1x32xf32>
    %467 = vector.shape_cast %466 : vector<1x32xf32> to vector<32xf32>
    %468 = vector.shape_cast %467 : vector<32xf32> to vector<1x32xf32>
    %469 = vector.broadcast %468 : vector<1x32xf32> to vector<8x32xf32>
    %470 = arith.addf %465, %469 : vector<8x32xf32>
    %c0_134 = arith.constant 0 : index
    %c0_135 = arith.constant 0 : index
    %471 = vector.load %arg18[%c0_134, %c0_135] : memref<32x64xf32, #tpu.memory_space<vmem>>, vector<32x64xf32>
    %cst_136 = arith.constant dense<0.000000e+00> : vector<8x64xf32>
    %472 = tpu.matmul %470, %471, %cst_136 {dimension_numbers = #tpu.dot_dimension_numbers<[1], [0], [0], [1], [0, 0, 1, 1], [], []>} : vector<8x32xf32>, vector<32x64xf32>, vector<8x64xf32> -> vector<8x64xf32>
    %c0_137 = arith.constant 0 : index
    %c0_138 = arith.constant 0 : index
    %473 = vector.load %arg19[%c0_137, %c0_138] : memref<1x64xf32, #tpu.memory_space<vmem>>, vector<1x64xf32>
    %474 = vector.shape_cast %473 : vector<1x64xf32> to vector<64xf32>
    %475 = vector.shape_cast %474 : vector<64xf32> to vector<1x64xf32>
    %476 = vector.broadcast %475 : vector<1x64xf32> to vector<8x64xf32>
    %477 = arith.addf %472, %476 : vector<8x64xf32>
    %cst_139 = arith.constant 0.000000e+00 : f32
    %478 = vector.broadcast %cst_139 : f32 to vector<8x64xf32>
    %479 = arith.maximumf %477, %478 : vector<8x64xf32>
    %c0_140 = arith.constant 0 : index
    %c0_141 = arith.constant 0 : index
    %480 = vector.load %arg20[%c0_140, %c0_141] : memref<64x32xf32, #tpu.memory_space<vmem>>, vector<64x32xf32>
    %cst_142 = arith.constant dense<0.000000e+00> : vector<8x32xf32>
    %481 = tpu.matmul %479, %480, %cst_142 {dimension_numbers = #tpu.dot_dimension_numbers<[1], [0], [0], [1], [0, 0, 1, 1], [], []>} : vector<8x64xf32>, vector<64x32xf32>, vector<8x32xf32> -> vector<8x32xf32>
    %c0_143 = arith.constant 0 : index
    %c0_144 = arith.constant 0 : index
    %482 = vector.load %arg21[%c0_143, %c0_144] : memref<1x32xf32, #tpu.memory_space<vmem>>, vector<1x32xf32>
    %483 = vector.shape_cast %482 : vector<1x32xf32> to vector<32xf32>
    %484 = vector.shape_cast %483 : vector<32xf32> to vector<1x32xf32>
    %485 = vector.broadcast %484 : vector<1x32xf32> to vector<8x32xf32>
    %486 = arith.addf %481, %485 : vector<8x32xf32>
    %487 = arith.addf %470, %486 : vector<8x32xf32>
    %cst_145 = arith.constant dense<0.000000e+00> : vector<8xf32>
    %488 = vector.multi_reduction <add>, %487, %cst_145 [1] : vector<8x32xf32> to vector<8xf32>
    %489 = vector.shape_cast %488 : vector<8xf32> to vector<8x1xf32>
    %cst_146 = arith.constant 3.200000e+01 : f32
    %490 = vector.broadcast %cst_146 : f32 to vector<8x1xf32>
    %491 = arith.divf %489, %490 : vector<8x1xf32>
    %492 = vector.broadcast %491 : vector<8x1xf32> to vector<8x32xf32>
    %493 = arith.subf %487, %492 : vector<8x32xf32>
    %494 = arith.mulf %493, %493 : vector<8x32xf32>
    %cst_147 = arith.constant dense<0.000000e+00> : vector<8xf32>
    %495 = vector.multi_reduction <add>, %494, %cst_147 [1] : vector<8x32xf32> to vector<8xf32>
    %496 = vector.shape_cast %495 : vector<8xf32> to vector<8x1xf32>
    %cst_148 = arith.constant 3.200000e+01 : f32
    %497 = vector.broadcast %cst_148 : f32 to vector<8x1xf32>
    %498 = arith.divf %496, %497 : vector<8x1xf32>
    %cst_149 = arith.constant 9.99999974E-6 : f32
    %499 = vector.broadcast %cst_149 : f32 to vector<8x1xf32>
    %500 = arith.addf %498, %499 : vector<8x1xf32>
    %501 = math.rsqrt %500 : vector<8x1xf32>
    %502 = vector.broadcast %501 : vector<8x1xf32> to vector<8x32xf32>
    %503 = arith.mulf %493, %502 : vector<8x32xf32>
    %c0_150 = arith.constant 0 : index
    %c0_151 = arith.constant 0 : index
    %504 = vector.load %arg22[%c0_150, %c0_151] : memref<1x32xf32, #tpu.memory_space<vmem>>, vector<1x32xf32>
    %505 = vector.shape_cast %504 : vector<1x32xf32> to vector<32xf32>
    %506 = vector.shape_cast %505 : vector<32xf32> to vector<1x32xf32>
    %507 = vector.broadcast %506 : vector<1x32xf32> to vector<8x32xf32>
    %508 = arith.mulf %503, %507 : vector<8x32xf32>
    %c0_152 = arith.constant 0 : index
    %c0_153 = arith.constant 0 : index
    %509 = vector.load %arg23[%c0_152, %c0_153] : memref<1x32xf32, #tpu.memory_space<vmem>>, vector<1x32xf32>
    %510 = vector.shape_cast %509 : vector<1x32xf32> to vector<32xf32>
    %511 = vector.shape_cast %510 : vector<32xf32> to vector<1x32xf32>
    %512 = vector.broadcast %511 : vector<1x32xf32> to vector<8x32xf32>
    %513 = arith.addf %508, %512 : vector<8x32xf32>
    %c0_154 = arith.constant 0 : index
    %c0_155 = arith.constant 0 : index
    %c0_156 = arith.constant 0 : index
    %514 = vector.load %arg24[%c0_154, %c0_155, %c0_156] : memref<1x8x32xf32, #tpu.memory_space<vmem>>, vector<1x8x32xf32>
    %515 = vector.shape_cast %514 : vector<1x8x32xf32> to vector<8x32xf32>
    %516 = vector.shape_cast %513 : vector<8x32xf32> to vector<1x8x32xf32>
    tpu.vector_store %arg24[%c0_154, %c0_155, %c0_156], %516 {strides = array<i32>} : memref<1x8x32xf32, #tpu.memory_space<vmem>>, vector<1x8x32xf32>,
    return
  }
  func.func @transform_0(%arg0: i32) -> (i32, i32, i32) {
    %c0_i32 = arith.constant 0 : i32
    %c0_i32_0 = arith.constant 0 : i32
    %c0_i32_1 = arith.constant 0 : i32
    return %arg0, %c0_i32, %c0_i32_0 : i32, i32, i32
  }
  func.func @transform_1(%arg0: i32) -> (i32, i32, i32) {
    %c0_i32 = arith.constant 0 : i32
    %c0_i32_0 = arith.constant 0 : i32
    %c0_i32_1 = arith.constant 0 : i32
    return %arg0, %c0_i32, %c0_i32_0 : i32, i32, i32
  }
  func.func @transform_2(%arg0: i32) -> (i32, i32) {
    %c0_i32 = arith.constant 0 : i32
    %c0_i32_0 = arith.constant 0 : i32
    %c0_i32_1 = arith.constant 0 : i32
    return %c0_i32, %c0_i32_0 : i32, i32
  }
  func.func @transform_3(%arg0: i32) -> (i32, i32) {
    %c0_i32 = arith.constant 0 : i32
    %c0_i32_0 = arith.constant 0 : i32
    %c0_i32_1 = arith.constant 0 : i32
    return %c0_i32, %c0_i32_0 : i32, i32
  }
  func.func @transform_4(%arg0: i32) -> (i32, i32, i32) {
    %c0_i32 = arith.constant 0 : i32
    %c0_i32_0 = arith.constant 0 : i32
    %c0_i32_1 = arith.constant 0 : i32
    %c0_i32_2 = arith.constant 0 : i32
    return %c0_i32, %c0_i32_0, %c0_i32_1 : i32, i32, i32
  }
  func.func @transform_5(%arg0: i32) -> (i32, i32) {
    %c0_i32 = arith.constant 0 : i32
    %c0_i32_0 = arith.constant 0 : i32
    %c0_i32_1 = arith.constant 0 : i32
    return %c0_i32, %c0_i32_0 : i32, i32
  }
  func.func @transform_6(%arg0: i32) -> (i32, i32) {
    %c0_i32 = arith.constant 0 : i32
    %c0_i32_0 = arith.constant 0 : i32
    %c0_i32_1 = arith.constant 0 : i32
    return %c0_i32, %c0_i32_0 : i32, i32
  }
  func.func @transform_7(%arg0: i32) -> (i32, i32) {
    %c0_i32 = arith.constant 0 : i32
    %c0_i32_0 = arith.constant 0 : i32
    %c0_i32_1 = arith.constant 0 : i32
    return %c0_i32, %c0_i32_0 : i32, i32
  }
  func.func @transform_8(%arg0: i32) -> (i32, i32) {
    %c0_i32 = arith.constant 0 : i32
    %c0_i32_0 = arith.constant 0 : i32
    %c0_i32_1 = arith.constant 0 : i32
    return %c0_i32, %c0_i32_0 : i32, i32
  }
  func.func @transform_9(%arg0: i32) -> (i32, i32) {
    %c0_i32 = arith.constant 0 : i32
    %c0_i32_0 = arith.constant 0 : i32
    %c0_i32_1 = arith.constant 0 : i32
    return %c0_i32, %c0_i32_0 : i32, i32
  }
  func.func @transform_10(%arg0: i32) -> (i32, i32) {
    %c0_i32 = arith.constant 0 : i32
    %c0_i32_0 = arith.constant 0 : i32
    %c0_i32_1 = arith.constant 0 : i32
    return %c0_i32, %c0_i32_0 : i32, i32
  }
  func.func @transform_11(%arg0: i32) -> (i32, i32) {
    %c0_i32 = arith.constant 0 : i32
    %c0_i32_0 = arith.constant 0 : i32
    %c0_i32_1 = arith.constant 0 : i32
    return %c0_i32, %c0_i32_0 : i32, i32
  }
  func.func @transform_12(%arg0: i32) -> (i32, i32, i32) {
    %c0_i32 = arith.constant 0 : i32
    %c0_i32_0 = arith.constant 0 : i32
    %c0_i32_1 = arith.constant 0 : i32
    %c0_i32_2 = arith.constant 0 : i32
    return %c0_i32, %c0_i32_0, %c0_i32_1 : i32, i32, i32
  }
  func.func @transform_13(%arg0: i32) -> (i32, i32) {
    %c0_i32 = arith.constant 0 : i32
    %c0_i32_0 = arith.constant 0 : i32
    %c0_i32_1 = arith.constant 0 : i32
    return %c0_i32, %c0_i32_0 : i32, i32
  }
  func.func @transform_14(%arg0: i32) -> (i32, i32) {
    %c0_i32 = arith.constant 0 : i32
    %c0_i32_0 = arith.constant 0 : i32
    %c0_i32_1 = arith.constant 0 : i32
    return %c0_i32, %c0_i32_0 : i32, i32
  }
  func.func @transform_15(%arg0: i32) -> (i32, i32) {
    %c0_i32 = arith.constant 0 : i32
    %c0_i32_0 = arith.constant 0 : i32
    %c0_i32_1 = arith.constant 0 : i32
    return %c0_i32, %c0_i32_0 : i32, i32
  }
  func.func @transform_16(%arg0: i32) -> (i32, i32) {
    %c0_i32 = arith.constant 0 : i32
    %c0_i32_0 = arith.constant 0 : i32
    %c0_i32_1 = arith.constant 0 : i32
    return %c0_i32, %c0_i32_0 : i32, i32
  }
  func.func @transform_17(%arg0: i32) -> (i32, i32) {
    %c0_i32 = arith.constant 0 : i32
    %c0_i32_0 = arith.constant 0 : i32
    %c0_i32_1 = arith.constant 0 : i32
    return %c0_i32, %c0_i32_0 : i32, i32
  }
  func.func @transform_18(%arg0: i32) -> (i32, i32) {
    %c0_i32 = arith.constant 0 : i32
    %c0_i32_0 = arith.constant 0 : i32
    %c0_i32_1 = arith.constant 0 : i32
    return %c0_i32, %c0_i32_0 : i32, i32
  }
  func.func @transform_19(%arg0: i32) -> (i32, i32) {
    %c0_i32 = arith.constant 0 : i32
    %c0_i32_0 = arith.constant 0 : i32
    %c0_i32_1 = arith.constant 0 : i32
    return %c0_i32, %c0_i32_0 : i32, i32
  }
  func.func @transform_20(%arg0: i32) -> (i32, i32) {
    %c0_i32 = arith.constant 0 : i32
    %c0_i32_0 = arith.constant 0 : i32
    %c0_i32_1 = arith.constant 0 : i32
    return %c0_i32, %c0_i32_0 : i32, i32
  }
  func.func @transform_21(%arg0: i32) -> (i32, i32) {
    %c0_i32 = arith.constant 0 : i32
    %c0_i32_0 = arith.constant 0 : i32
    %c0_i32_1 = arith.constant 0 : i32
    return %c0_i32, %c0_i32_0 : i32, i32
  }
  func.func @transform_22(%arg0: i32) -> (i32, i32) {
    %c0_i32 = arith.constant 0 : i32
    %c0_i32_0 = arith.constant 0 : i32
    %c0_i32_1 = arith.constant 0 : i32
    return %c0_i32, %c0_i32_0 : i32, i32
  }
  func.func @transform_23(%arg0: i32) -> (i32, i32, i32) {
    %c0_i32 = arith.constant 0 : i32
    %c0_i32_0 = arith.constant 0 : i32
    %c0_i32_1 = arith.constant 0 : i32
    return %arg0, %c0_i32, %c0_i32_0 : i32, i32, i32
  }
}

</mosaic_0001>

<bundles_post_ra>
// kernel: deformable_decoder_layer.1
= control target key start
LH: loop header
LB: loop body
LE: loop exit
PB: predicated region body
PF: predicated region fallthrough
CT: control target
= control target key end

     0   :  { %s6162_s0 = inlined_call_operand.vmem [shape: f32[2,8,32], index: 0, kind: input, shape index: {}]   ;;  %s6163_s1 = inlined_call_operand.vmem [shape: f32[2,16,32], index: 1, kind: input, shape index: {}]   ;;  %s6164_s2 = inlined_call_operand.vmem [shape: f32[32,96], index: 2, kind: input, shape index: {}]   ;;  %s6165_s3 = inlined_call_operand.vmem [shape: f32[1,96], index: 3, kind: input, shape index: {}]   ;;  %s6166_s4 = inlined_call_operand.vmem [shape: f32[4,8,32], index: 4, kind: input, shape index: {}]   ;;  %s6167_s5 = inlined_call_operand.vmem [shape: f32[1,32], index: 5, kind: input, shape index: {}]   ;;  %s6168_s6 = inlined_call_operand.vmem [shape: f32[1,32], index: 6, kind: input, shape index: {}]   ;;  %s6169_s7 = inlined_call_operand.vmem [shape: f32[1,32], index: 7, kind: input, shape index: {}]   ;;  %s6170_s8 = inlined_call_operand.vmem [shape: f32[32,50], index: 8, kind: input, shape index: {}]   ;;  %s6171_s9 = inlined_call_operand.vmem [shape: f32[1,50], index: 9, kind: input, shape index: {}]   ;;  %s6172_s10 = inlined_call_operand.vmem [shape: f32[32,32], index: 10, kind: input, shape index: {}]   ;;  %s6173_s11 = inlined_call_operand.vmem [shape: f32[1,32], index: 11, kind: input, shape index: {}]   ;;  %s6174_s12 = inlined_call_operand.vmem [shape: f32[4,8,32], index: 12, kind: input, shape index: {}]   ;;  %s6175_s13 = inlined_call_operand.vmem [shape: f32[1,32], index: 13, kind: input, shape index: {}]   ;;  %s6176_s14 = inlined_call_operand.vmem [shape: f32[16,16], index: 14, kind: input, shape index: {}]   ;;  %s6177_s15 = inlined_call_operand.vmem [shape: f32[1,32], index: 15, kind: input, shape index: {}]   ;;  %s6178_s16 = inlined_call_operand.vmem [shape: f32[1,32], index: 16, kind: input, shape index: {}]   ;;  %s6179_s17 = inlined_call_operand.vmem [shape: f32[32,64], index: 17, kind: input, shape index: {}]   ;;  %s6180_s18 = inlined_call_operand.vmem [shape: f32[1,64], index: 18, kind: input, shape index: {}]   ;;  %s6181_s19 = inlined_call_operand.vmem [shape: f32[64,32], index: 19, kind: input, shape index: {}]   ;;  %s6182_s20 = inlined_call_operand.vmem [shape: f32[1,32], index: 20, kind: input, shape index: {}]   ;;  %s6183_s21 = inlined_call_operand.vmem [shape: f32[1,32], index: 21, kind: input, shape index: {}]   ;;  %s6184_s22 = inlined_call_operand.vmem [shape: f32[1,32], index: 22, kind: input, shape index: {}]   ;;  %s6185_s23 = inlined_call_operand.hbm [shape: f32[2,8,32], index: 23, kind: output, shape index: {}]  }
   0x1   :  { %6250 = sst [smem:[#allocation141_spill]] %s6162_s0 }
   0x2   :  { %6251 = sst [smem:[#allocation142_spill]] %s6163_s1 }
   0x3   :  { %6252 = sst [smem:[#allocation143_spill]] %s6164_s2 }
   0x4   :  { %6253 = sst [smem:[#allocation144_spill]] %s6165_s3 }
   0x5   :  { %6254 = sst [smem:[#allocation145_spill]] %s6166_s4 }
   0x6   :  { %6255 = sst [smem:[#allocation146_spill]] %s6167_s5 }
   0x7   :  { %6256 = sst [smem:[#allocation147_spill]] %s6168_s6 }
   0x8   :  { %6257 = sst [smem:[#allocation148_spill]] %s6169_s7 }
   0x9   :  { %6258 = sst [smem:[#allocation149_spill]] %s6170_s8 }
   0xa   :  { %6259 = sst [smem:[#allocation150_spill]] %s6184_s22 }
   0xb   :  { %6260 = sst [smem:[#allocation151_spill]] %s6185_s23 }
   0xc   :  { %28 = vsyncpa [#allocation3], 0 }
   0xd   :  { %30 = vsyncpa [#allocation3 + $0x1], 0  ;;  %s4583_s4 = smov 0   ;;  %s4585_s30 = smov 0  }
   0xe   :  { %s4587_s24 = smov 0   ;;  %s4589_s25 = smov 0  }
   0xf LB: > { %6261 = sst [smem:[#allocation5_spill]] %s4431_s4  ;;  %s4604_s5 = sadd.s32 4294967295, %s4443_s25   ;;  %s4443_s25 = sphi %s4589_s25, %s6547_s25   ;;  %s4439_s24 = sphi %s4587_s24, %s6549_s24   ;;  %s4435_s30 = sphi %s4585_s30, %s6551_s30   ;;  %s4431_s4 = sphi %s4583_s4, %s6550_s4  }
  0x10   : > { %6262 = sst [smem:[#allocation6_spill]] %s4439_s24  ;;  %s4111_s1 = sadd.s32 4294967294, %s4443_s25  }
  0x11   : > { %6263 = sst [smem:[#allocation7_spill]] %s4443_s25  ;;  %s4608_s26 = sadd.s32 1, %s4443_s25  }
  0x12   : > { %6264 = sst [smem:[#allocation8_spill]] %s4608_s26  ;;  %s536_s2 = sadd.s32 1, %s4439_s24 }
  0x13   : > { %s533_s6 = ssub.s32 %s4443_s25, %s4608_s26  ;;  %p546_p0 = scmp.ne.s32.totalorder %s4439_s24, %s4435_s30 }
  0x14   : > { %p534_p1 = scmp.eq.s32.totalorder %s533_s6, 0  ;;  %p547_p2 = scmp.eq.s32.totalorder %s4604_s5, 1 }
  0x15   : > { %p552_p3 = scmp.ne.s32.totalorder %s4435_s30, %s4431_s4  ;;  %p553_p4 = scmp.eq.s32.totalorder %s4111_s1, 1 }
  0x16   : > { %s4619_s27 = scalar_select %p534_p1, %s4439_s24, %s536_s2  }
  0x17   : > { %p4621_p5 = por %p547_p2, %p546_p0  ;;  %p4625_p6 = por %p553_p4, %p552_p3 }
  0x18   : > { %6265 = sst [smem:[#allocation9_spill]] %s4619_s27  ;;  %p4114_p7 = scmp.ge.s32.totalorder %s4443_s25, 1 }
  0x19   : > { %s6266_s7 = scalar_select %p4621_p5, 1, 0 }
  0x1a   : > { %s6268_s28 = scalar_select %p4625_p6, 1, 0 }
  0x1b   : > { %6267 = sst [smem:[#allocation10_spill]] %s6266_s7  ;;  %p649_p8 = scmp.lt.s32.totalorder %s4443_s25, 3 }
  0x1c   : > { %6269 = sst [smem:[#allocation11_spill]] %s6268_s28 }
  0x1d   : > { %p650_p9 = pnand %p4114_p7, %p649_p8 }
  0x1f   : > { %653 = sbr.rel (%p650_p9) target bundleno = 4549 (0x11c5), region = 112 }
  0x24   : > { %s6270_s0 = sld [smem:[#allocation143_spill]]  ;;  %p717_p10 = scmp.lt.s32.totalorder %s4604_s5, 1  ;;  %vm737_vm0 = vcmask 261120   ;;  %vm764_vm1 = vcmask 64512  }
  0x25   : > { %s6271_s2 = sld [smem:[#allocation141_spill]]  ;;  %s4445_s26 = smov 88  }
  0x26   : > { %s4642_s24 = scalar_select %p717_p10, %s4604_s5, 1 }
  0x27   : > { %s6272_s25 = sld [smem:[#allocation144_spill]]  ;;  %s4446_s29 = smov 96  }
  0x28   : > { %s4116_s3 = sshll.u32 %s4642_s24, 3  ;;  %s6196_s28 = smov 120  }
  0x29   : > { %s6273_s27 = sld [smem:[#allocation145_spill]]  ;;  %s4451_s6 = smov 56  }
  0x2a   : > { %v732_v0 = vld [vmem:[%s6270_s0 + $0x18] sm:$0xff]  ;;  %v731_v1 = vld [vmem:[%s6270_s0 + $0x10] sm:$0xff]  ;;  %v730_v2 = vld [vmem:[%s6270_s0 + $0x8] sm:$0xff]  ;;  %s4161_s1 = sshll.u32 %s4642_s24, 4  ;;  %s6276_s7 = smov 120  }
  0x2b   : > { %753 = vmatpush.msra.mxu0 %v732_v0  ;;  %v729_v3 = vld [vmem:[%s6270_s0] sm:$0xff]  ;;  %s720_s4 = scalar_lea.vmem %s6271_s2, %s4116_s3  ;;  %s6195_s3 = smov 104  }
  0x2c   : > { %v4651_v4 = vld [vmem:[%s720_s4] sm:$0xff]  ;;  %s4448_s4 = smov 72   ;;  %s6278_s8 = sld [smem:[#allocation149_spill]] }
  0x2d   : > { %754 = vmatpush.msra.mxu0 %v731_v1  ;;  %v4336_v5 = vld [vmem:[%s6272_s25] ss:$0 sm:$0xff]  ;;  %s4450_s25 = smov 80   ;;  %s4460_s24 = smov 16  }
  0x2e   : > { %s4461_s22 = smov 32   ;;  %s4462_s23 = smov 34  }
  0x2f   : > { %755 = vmatpush.msra.mxu0 %v730_v2  ;;  %v839_v8 = vld [vmem:[%s6273_s27] sm:$0xff] }
  0x30   : > { %961 = vmatpush.msra.mxu3 %v839_v8 }
  0x31   : > { %756 = vmatpush.msra.mxu0 %v729_v3 }
  0x32   : > { %4119 = vmatmul.msk.f32.vlgmr.msra.gmra.mxu0 %vm737_vm0, %v4651_v4 }
  0xaf   : > { %v758_v6 = vpop.f32.mrf.mxu0 }
  0xb0   : > { %v4658_v7 = vadd.f32 %v4336_v5, %v758_v6 }
  0xb2   : > { %842 = vrot.lane.b32.xlu2 %v4658_v7, %s4445_s26  ;;  %762 = vrot.lane.b32.xlu0 %v4658_v7, %s4446_s29  ;;  %s4452_s26 = smov 64   ;;  %s6194_s29 = smov 112  }
  0xba   : > { %840 = vrot.lane.b32.xlu2 %v4658_v7, %s6196_s28  ;;  %s714_s28 = sand.u32 1, %s4435_s30  }
  0xc2   : > { %1072 = vrot.lane.b32.xlu2 %v4658_v7, %s4448_s4  ;;  %s4454_s4 = smov 40  }
  0xca   : > { %1070 = vrot.lane.b32.xlu2 %v4658_v7, %s6195_s3  ;;  %s6277_s3 = sld [smem:[#allocation146_spill]] }
  0xd2   : > { %968 = vrot.lane.b32.xlu2 %v4658_v7, %s4450_s25  ;;  %s4455_s25 = smov 48  }
 0x10c   : > { %v843_v9 = vpop.permute.xlu2 %842 }
 0x10d   : > { %4123 = vmatpush.xpose.msk.msrb.mxu0 %vm764_vm1, %v843_v9 }
 0x114   : > { %v841_v10 = vpop.permute.xlu2 %840 }
 0x115   : > { %4124 = vmatmul.msk.f32.vlgmr.msrb.gmra.mxu0 %vm764_vm1, %v841_v10 }
 0x11c   : > { %v1073_v11 = vpop.permute.xlu2 %1072 }
 0x11d   : > { %4134 = vmatpush.xpose.msk.msrb.mxu3 %vm764_vm1, %v1073_v11 }
 0x124   : > { %v1071_v12 = vpop.permute.xlu2 %1070  ;;  %v763_v13 = vpop.permute.xlu0 %762 }
 0x125   : > { %4120 = vmatpush.xpose.msk.msra.mxu1 %vm764_vm1, %v763_v13 }
 0x128   : > { %4121 = vmatmul.msk.f32.vlgmr.msra.gmra.mxu1 %vm764_vm1, %v4658_v7 }
 0x12c   : > { %v969_v14 = vpop.permute.xlu2 %968 }
 0x12d   : > { %4129 = vmatpush.xpose.msk.msra.mxu0 %vm764_vm1, %v969_v14  ;;  %v4126_v14 = vld [vmem:[%s6273_s27 + $0x8] sm:$0xff] }
 0x12e   : > { %938 = vmatpush.msrb.mxu1 %v4126_v14 }
 0x192   : > { %v865_v15 = vpop.f32.mrf.mxu0 }
 0x193   : > { %v868_v16 = vsel %vm764_vm1, %v865_v15, -inf }
 0x194   : > { %869 = vmax.xlane.f32.xlu2 %v868_v16 }
 0x1a5   : > { %v786_v17 = vpop.f32.mrf.mxu1 }
 0x1a6   : > { %v789_v18 = vsel %vm764_vm1, %v786_v17, -inf }
 0x1a7   : > { %790 = vmax.xlane.f32.xlu0 %v789_v18 }
 0x1ac   : > { %892 = vrot.lane.b32.xlu2 %v4658_v7, %s4451_s6  ;;  %s6274_s6 = sld [smem:[#allocation142_spill]] }
 0x207   : > { %v870_v31 = vpop.xlane.xlu2 %869 }
 0x208   : > { %v871_v43 = vsub.f32 %v865_v15, %v870_v31 }
 0x20a   : > { %v872_v46 = vmul.f32 1.442695, %v871_v43 }
 0x20f   : > { %v893_v38 = vpop.permute.xlu2 %892 }
 0x21a   : > { %v791_v19 = vpop.xlane.xlu0 %790 }
 0x21b   : > { %v792_v20 = vsub.f32 %v786_v17, %v791_v19 }
 0x21d   : > { %v793_v21 = vmul.f32 1.442695, %v792_v20 }
 0x21f   : > { %4349 = vpow2.f32 %v793_v21 }
 0x225   : > { %v4350_v22 = vpop.eup %4349 }
 0x226   : > { %v795_v23 = vsel %vm764_vm1, %v4350_v22, 0.0 }
 0x227   : > { %796 = vadd.xlane.f32.xlu1 %v795_v23 }
 0x240   : > { %813 = vrot.lane.b32.xlu1 %v4658_v7, %s4452_s26  ;;  %s725_s26 = scalar_lea.vmem %s6274_s6, %s4161_s1  ;;  %s4459_s1 = smov 94  }
 0x241   : > { %v727_v43 = vld [vmem:[%s725_s26] sm:$0xff] }
 0x248   : > { %966 = vrot.lane.b32.xlu1 %v4658_v7, %s6194_s29  ;;  %s4158_s29 = sshll.u32 %s4604_s5, 3 }
 0x29a   : > { %v797_v24 = vpop.xlane.xlu1 %796 }
 0x29b   : > { %4351 = vrcp.f32 %v797_v24  ;;  %v809_v30 = vand.u32 2147483648, %v797_v24  ;;  %vm803_vm3 = vweird.f32 %v797_v24  ;;  %v807_v32 = vand.u32 2147483647, %v797_v24 }
 0x29c   : > { %4353 = vpow2.f32 %v872_v46 }
 0x29d   : > { %v810_v34 = vor.u32 1.1754944e-38, %v809_v30  ;;  %vm808_vm5 = vcmp.eq.f32.partialorder %v807_v32, 8.507059e+37 }
 0x2a1   : > { %v4352_v25 = vpop.eup %4351 }
 0x2a2   : > { %v799_v26 = vmul.f32 %v4352_v25, %v797_v24  ;;  %vm804_vm2 = vweird.f32 %v4352_v25  ;;  %v4354_v52 = vpop.eup %4353 }
 0x2a3   : > { %vm805_vm4 = vmor %vm803_vm3, %vm804_vm2  ;;  %v874_v53 = vsel %vm764_vm1, %v4354_v52, 0.0 }
 0x2a4   : > { %v800_v27 = vsub.f32 1.0, %v799_v26 }
 0x2a6   : > { %v801_v28 = vmul.f32 %v4352_v25, %v800_v27 }
 0x2a8   : > { %v802_v29 = vadd.f32 %v4352_v25, %v801_v28 }
 0x2aa   : > { %v806_v33 = vsel %vm805_vm4, %v4352_v25, %v802_v29 }
 0x2ab   : > { %v811_v35 = vsel %vm808_vm5, %v810_v34, %v806_v33 }
 0x2ac   : > { %v812_v37 = vmul.f32 %v4350_v22, %v811_v35 }
 0x2b2   : > { %v814_v36 = vpop.permute.xlu1 %813 }
 0x2b3   : > { %834 = vmatpush.msra.mxu2 %v814_v36 }
 0x2b4   : > { %4122 = vmatmul.msk.f32.vlgmr.msra.gmra.mxu2 %vm764_vm1, %v812_v37  ;;  %v4137_v37 = vld [vmem:[%s6273_s27 + $0x18] sm:$0xff] }
 0x2b5   : > { %913 = vmatpush.msrb.mxu2 %v893_v38  ;;  %v4132_v38 = vld [vmem:[%s6273_s27 + $0x10] sm:$0xff] }
 0x2b6   : > { %1064 = vmatpush.msra.mxu1 %v4132_v38 }
 0x2ba   : > { %v967_v39 = vpop.permute.xlu1 %966 }
 0x2bb   : > { %4130 = vmatmul.msk.f32.vlgmr.msra.gmra.mxu0 %vm764_vm1, %v967_v39  ;;  %v1272_v39 = vld [vmem:[%s6172_s10 + $0x18] sm:$0xff] }
 0x337   : > { %v836_v40 = vpop.f32.mrf.mxu2 }
 0x338   : > { %4128 = vmatmul.msk.f32.vlgmr.msra.gmra.mxu3 %vm764_vm1, %v836_v40  ;;  %v991_v41 = vpop.f32.mrf.mxu0  ;;  %v1271_v40 = vld [vmem:[%s6172_s10 + $0x10] sm:$0xff] }
 0x339   : > { %v994_v42 = vsel %vm764_vm1, %v991_v41, -inf  ;;  %1295 = vmatpush.msra.mxu3 %v1272_v39 }
 0x33a   : > { %995 = vmax.xlane.f32.xlu1 %v994_v42  ;;  %v1269_v42 = vld [vmem:[%s6172_s10] sm:$0xff] }
 0x33b   : > { %1296 = vmatpush.msra.mxu3 %v1271_v40 }
 0x340   : > { %4135 = vmatmul.msk.f32.vlgmr.msrb.gmra.mxu3 %vm764_vm1, %v1071_v12 }
 0x353   : > { %1122 = vrot.lane.b32.xlu1 %v4658_v7, %s4454_s4 }
 0x3ad   : > { %v996_v45 = vpop.xlane.xlu1 %995 }
 0x3ae   : > { %v997_v47 = vsub.f32 %v991_v41, %v996_v45  ;;  %v1270_v41 = vld [vmem:[%s6172_s10 + $0x8] sm:$0xff] }
 0x3af   : > { %1297 = vmatpush.msra.mxu3 %v1270_v41  ;;  %v728_v45 = vld [vmem:[%s725_s26 + $0x8] sm:$0xff]  ;;  %s6541_s26 = sld [smem:[#allocation151_spill]] }
 0x3b0   : > { %v998_v51 = vmul.f32 1.442695, %v997_v47 }
 0x3b1   : > { %1298 = vmatpush.msra.mxu3 %v1269_v42 }
 0x3b2   : > { %4355 = vpow2.f32 %v998_v51  ;;  %4141 = vmatmul.msk.f32.vlgmr.msra.gmra.mxu3 %vm737_vm0, %v727_v43 }
 0x3b5   : > { %s4035_s4 = scalar_lea.hbm %s6541_s26, %s4158_s29 }
 0x3b8   : > { %v4695_v54 = vpop.eup %4355 }
 0x3b9   : > { %v1000_v55 = vsel %vm764_vm1, %v4695_v54, 0.0 }
 0x3ba   : > { %4142 = vmatmul.msk.f32.gmra.mxu3 %vm737_vm0, %v728_v45 }
 0x3bb   : > { %v4691_v44 = vpop.f32.mrf.mxu3 }
 0x3c3   : > { %v1095_v48 = vpop.f32.mrf.mxu3 }
 0x3c4   : > { %v1098_v49 = vsel %vm764_vm1, %v1095_v48, -inf }
 0x3c5   : > { %1099 = vmax.xlane.f32.xlu0 %v1098_v49  ;;  %v1123_v50 = vpop.permute.xlu1 %1122  ;;  %v4338_v49 = vld [vmem:[%s6173_s11] ss:$0 sm:$0xff] }
 0x3c6   : > { %1143 = vmatpush.msrb.mxu0 %v1123_v50 }
 0x3cd   : > { %875 = vadd.xlane.f32.xlu0 %v874_v53 }
 0x3d5   : > { %1001 = vadd.xlane.f32.xlu0 %v1000_v55 }
 0x438   : > { %v1100_v56 = vpop.xlane.xlu0 %1099 }
 0x439   : > { %v1101_v57 = vsub.f32 %v1095_v48, %v1100_v56  ;;  %v1300_v48 = vpop.f32.mrf.mxu3 }
 0x43a   : > { %v1301_v51 = vadd.f32 %v4338_v49, %v1300_v48 }
 0x43b   : > { %v1102_v58 = vmul.f32 1.442695, %v1101_v57 }
 0x43d   : > { %4357 = vpow2.f32 %v1102_v58 }
 0x440   : > { %v876_v59 = vpop.xlane.xlu0 %875 }
 0x441   : > { %4359 = vrcp.f32 %v876_v59  ;;  %v888_v1 = vand.u32 2147483648, %v876_v59  ;;  %v886_v3 = vand.u32 2147483647, %v876_v59  ;;  %vm882_vm7 = vweird.f32 %v876_v59 }
 0x443   : > { %v4358_v60 = vpop.eup %4357  ;;  %v889_v6 = vor.u32 1.1754944e-38, %v888_v1  ;;  %vm887_vm9 = vcmp.eq.f32.partialorder %v886_v3, 8.507059e+37  ;;  %v1221_v1 = vld [vmem:[%s6278_s8 + $0x10] sm:$0xff] }
 0x444   : > { %v1104_v61 = vsel %vm764_vm1, %v4358_v60, 0.0 }
 0x445   : > { %1105 = vadd.xlane.f32.xlu0 %v1104_v61 }
 0x447   : > { %v4360_v62 = vpop.eup %4359 }
 0x448   : > { %v878_v63 = vmul.f32 %v4360_v62, %v876_v59  ;;  %vm883_vm6 = vweird.f32 %v4360_v62  ;;  %v1002_v11 = vpop.xlane.xlu0 %1001 }
 0x449   : > { %vm884_vm8 = vmor %vm882_vm7, %vm883_vm6  ;;  %4361 = vrcp.f32 %v1002_v11  ;;  %v1014_v21 = vand.u32 2147483648, %v1002_v11  ;;  %vm1008_vm11 = vweird.f32 %v1002_v11 }
 0x44a   : > { %v879_v0 = vsub.f32 1.0, %v878_v63 }
 0x44b   : > { %v1015_v27 = vor.u32 1.1754944e-38, %v1014_v21 }
 0x44c   : > { %v880_v2 = vmul.f32 %v4360_v62, %v879_v0  ;;  %v4456_v0 = vmov 32.0  }
 0x44e   : > { %v881_v5 = vadd.f32 %v4360_v62, %v880_v2 }
 0x44f   : > { %v4362_v12 = vpop.eup %4361 }
 0x450   : > { %v885_v8 = vsel %vm884_vm8, %v4360_v62, %v881_v5  ;;  %v1004_v13 = vmul.f32 %v4362_v12, %v1002_v11  ;;  %vm1009_vm10 = vweird.f32 %v4362_v12  ;;  %vm1306_vm8 = vcmask 408848  }
 0x451   : > { %v890_v9 = vsel %vm887_vm9, %v889_v6, %v885_v8  ;;  %vm1010_vm12 = vmor %vm1008_vm11, %vm1009_vm10  ;;  %v1219_v6 = vld [vmem:[%s6278_s8] sm:$0xff] }
 0x452   : > { %v891_v10 = vmul.f32 %v4354_v52, %v890_v9  ;;  %v1005_v16 = vsub.f32 1.0, %v1004_v13  ;;  %v1303_v52 = vpop.f32.mrf.mxu3 }
 0x453   : > { %v1304_v53 = vadd.f32 %v4338_v49, %v1303_v52 }
 0x454   : > { %4125 = vmatmul.msk.f32.vlgmr.msrb.gmra.mxu2 %vm764_vm1, %v891_v10  ;;  %v1006_v17 = vmul.f32 %v4362_v12, %v1005_v16 }
 0x456   : > { %v1007_v20 = vadd.f32 %v4362_v12, %v1006_v17 }
 0x458   : > { %v1011_v26 = vsel %vm1010_vm12, %v4362_v12, %v1007_v20 }
 0x459   : > { %1018 = vrot.lane.b32.xlu0 %v4658_v7, %s4455_s25  ;;  %v1012_v7 = vand.u32 2147483647, %v1002_v11  ;;  %s6508_s25 = smov 112  }
 0x45b   : > { %vm1013_vm15 = vcmp.eq.f32.partialorder %v1012_v7, 8.507059e+37 }
 0x45c   : > { %v1016_v31 = vsel %vm1013_vm15, %v1015_v27, %v1011_v26 }
 0x45d   : > { %v1017_v35 = vmul.f32 %v4695_v54, %v1016_v31  ;;  %v4738_v54 = vpack.i.bf16 %v1301_v51, %v1304_v53 }
 0x45f   : > { %6275 = vst [vmem:[#allocation12_spill] sm:$0xff] %v4738_v54  ;;  %4234 = vrot.lane.b32.xlu2 %v4738_v54, %s6276_s7  ;;  %s6280_s7 = sld [smem:[#allocation147_spill]] }
 0x465   : > { %v4339_v27 = vld [vmem:[%s6280_s7] ss:$0 sm:$0xff]  ;;  %s6442_s7 = smov 104  }
 0x4b8   : > { %v1106_v15 = vpop.xlane.xlu0 %1105 }
 0x4b9   : > { %4363 = vrcp.f32 %v1106_v15  ;;  %v1118_v23 = vand.u32 2147483648, %v1106_v15  ;;  %v1116_v25 = vand.u32 2147483647, %v1106_v15  ;;  %vm1112_vm14 = vweird.f32 %v1106_v15  ;;  %v4235_v2 = vpop.permute.xlu2 %4234 }
 0x4ba   : > { %4365 = vrcp.f32 %v4456_v0  ;;  %v4236_v5 = vunpack.i.l.bf16 %v4235_v2  ;;  %v4237_v9 = vunpack.i.h.bf16 %v4235_v2 }
 0x4bb   : > { %v1119_v29 = vor.u32 1.1754944e-38, %v1118_v23  ;;  %vm1117_vm3 = vcmp.eq.f32.partialorder %v1116_v25, 8.507059e+37 }
 0x4bf   : > { %v4364_v18 = vpop.eup %4363 }
 0x4c0   : > { %v1108_v19 = vmul.f32 %v4364_v18, %v1106_v15  ;;  %vm1113_vm13 = vweird.f32 %v4364_v18  ;;  %v4366_v3 = vpop.eup %4365 }
 0x4c1   : > { %vm1114_vm2 = vmor %vm1112_vm14, %vm1113_vm13  ;;  %v1184_v8 = vmul.f32 32.0, %v4366_v3  ;;  %vm1188_vm4 = vweird.f32 %v4366_v3  ;;  %vm1318_vm14 = vcmask 130048  }
 0x4c2   : > { %v1109_v22 = vsub.f32 1.0, %v1108_v19 }
 0x4c3   : > { %v1185_v10 = vsub.f32 1.0, %v1184_v8 }
 0x4c4   : > { %v1110_v24 = vmul.f32 %v4364_v18, %v1109_v22 }
 0x4c5   : > { %v1186_v11 = vmul.f32 %v4366_v3, %v1185_v10 }
 0x4c6   : > { %v1111_v28 = vadd.f32 %v4364_v18, %v1110_v24 }
 0x4c7   : > { %v1187_v12 = vadd.f32 %v4366_v3, %v1186_v11 }
 0x4c8   : > { %v1115_v30 = vsel %vm1114_vm2, %v4364_v18, %v1111_v28 }
 0x4c9   : > { %v1120_v32 = vsel %vm1117_vm3, %v1119_v29, %v1115_v30  ;;  %v4760_v13 = vsel %vm1188_vm4, %v4366_v3, %v1187_v12 }
 0x4ca   : > { %v1121_v33 = vmul.f32 %v4358_v60, %v1120_v32  ;;  %v4337_v60 = vld [vmem:[%s6277_s3] ss:$0 sm:$0xff]  ;;  %6279 = vst [vmem:[#allocation13_spill] sm:$0xff] %v4760_v13  ;;  %s6281_s3 = sld [smem:[#allocation148_spill]] }
 0x4cb   : > { %v1019_v34 = vpop.permute.xlu0 %1018 }
 0x4cc   : > { %1039 = vmatpush.msra.mxu2 %v1019_v34  ;;  %4136 = vmatmul.msk.f32.vlgmr.msrb.gmra.mxu0 %vm764_vm1, %v1121_v33  ;;  %v4457_v33 = vmov 1   ;;  %v4458_v34 = vmov 0  }
 0x4cd   : > { %4131 = vmatmul.msk.f32.vlgmr.msra.gmra.mxu2 %vm764_vm1, %v1017_v35  ;;  %4239 = vset.pattern.permute.xlu0 %v4457_v33  ;;  %v4341_v35 = vld [vmem:[%s6171_s9] ss:$0 sm:$0xff] }
 0x4ce   : > { %1168 = vmatpush.msrb.mxu2 %v4137_v37  ;;  %4238 = vset.pattern.permute.xlu1 %v4458_v34 }
 0x4d0   : > { %2062 = vmatpush.msra.mxu2 %v1304_v53  ;;  %v4340_v30 = vld [vmem:[%s6281_s3] ss:$0 sm:$0xff]  ;;  %s4115_s3 = sshll.u32 %s714_s28, 3 }
 0x4d1   : > { %s716_s0 = scalar_lea.vmem [#allocation2], %s4115_s3  ;;  %s4401_s3 = scalar_lea.hbm %s6541_s26, 16 }
 0x4d2   : > { %2063 = vmatpush.msra.mxu2 %v1301_v51  ;;  %s4037_s5 = sshll.u32 %s716_s0, 4  ;;  %s4038_s5 = int_to_ptr.vmem [resolvable:$true] %s4037_s5 }
 0x4d7   : > { %v915_v36 = vpop.f32.mrf.mxu2 }
 0x4d8   : > { %4127 = vmatmul.msk.f32.vlgmr.msrb.gmra.mxu1 %vm764_vm1, %v915_v36 }
 0x549   : > { %v1145_v46 = vpop.f32.mrf.mxu0 }
 0x54a   : > { %4138 = vmatmul.msk.f32.vlgmr.msrb.gmra.mxu2 %vm764_vm1, %v1145_v46 }
 0x550   : > { %v1041_v47 = vpop.f32.mrf.mxu2 }
 0x551   : > { %4133 = vmatmul.msk.f32.vlgmr.msra.gmra.mxu1 %vm764_vm1, %v1041_v47 }
 0x555   : > { %v940_v50 = vpop.f32.mrf.mxu1 }
 0x556   : > { %v964_v55 = vadd.f32 %v4691_v44, %v940_v50  ;;  %v1222_v44 = vld [vmem:[%s6278_s8 + $0x18] sm:$0xff] }
 0x557   : > { %1242 = vmatpush.msrb.mxu1 %v1222_v44 }
 0x559   : > { %1243 = vmatpush.msrb.mxu1 %v1221_v1 }
 0x5cd   : > { %v1170_v58 = vpop.f32.mrf.mxu2 }
 0x5ce   : > { %v1066_v56 = vpop.f32.mrf.mxu1 }
 0x5cf   : > { %v1069_v57 = vadd.f32 %v1066_v56, %v964_v55 }
 0x5d1   : > { %v1173_v59 = vadd.f32 %v1170_v58, %v1069_v57  ;;  %v1314_v58 = vld [vmem:[%s6176_s14 + $0x8] sm:$0xff] }
 0x5d2   : > { %1335 = vmatpush.msra.mxu0 %v1314_v58 }
 0x5d3   : > { %v1174_v61 = vadd.f32 %v1173_v59, %v4651_v4  ;;  %v1220_v4 = vld [vmem:[%s6278_s8 + $0x8] sm:$0xff]  ;;  %v1313_v59 = vld [vmem:[%s6176_s14] sm:$0xff]  ;;  %s4039_s8 = sshll.u32 %s4035_s4, 4  ;;  %s4040_s8 = int_to_ptr.hbm [resolvable:$true] %s4039_s8 }
 0x5d4   : > { %1244 = vmatpush.msrb.mxu1 %v1220_v4  ;;  %1336 = vmatpush.msra.mxu0 %v1313_v59 }
 0x5d5   : > { %v1179_v62 = vadd.f32 %v4337_v60, %v1174_v61 }
 0x5d6   : > { %1245 = vmatpush.msrb.mxu1 %v1219_v6 }
 0x5d7   : > { %v1180_v63 = vsel %vm737_vm0, %v1179_v62, 0.0 }
 0x5d8   : > { %1181 = vadd.xlane.f32.xlu0 %v1180_v63  ;;  %2636 = vmatpush.msra.mxu1 %v4236_v5 }
 0x5da   : > { %2637 = vmatpush.msra.mxu1 %v4237_v9 }
 0x64b   : > { %v1182_v14 = vpop.xlane.xlu0 %1181 }
 0x64c   : > { %v1190_v15 = vmul.f32 %v4760_v13, %v1182_v14 }
 0x64e   : > { %v1191_v16 = vsub.f32 %v1179_v62, %v1190_v15 }
 0x650   : > { %v1192_v17 = vmul.f32 %v1191_v16, %v1191_v16 }
 0x652   : > { %v1193_v18 = vsel %vm737_vm0, %v1192_v17, 0.0 }
 0x653   : > { %1194 = vadd.xlane.f32.xlu2 %v1193_v18 }
 0x6c6   : > { %v1195_v19 = vpop.xlane.xlu2 %1194 }
 0x6c7   : > { %v1196_v20 = vmul.f32 %v1195_v19, %v4760_v13 }
 0x6c9   : > { %v1197_v21 = vadd.f32 1e-05, %v1196_v20 }
 0x6cb   : > { %4367 = vrsqrt.f32 %v1197_v21  ;;  %vm1204_vm6 = vweird.f32 %v1197_v21 }
 0x6d1   : > { %v4368_v22 = vpop.eup %4367 }
 0x6d2   : > { %v1199_v7 = vmul.f32 %v4368_v22, %v1197_v21  ;;  %vm1205_vm5 = vweird.f32 %v4368_v22 }
 0x6d3   : > { %vm1206_vm7 = vmor %vm1204_vm6, %vm1205_vm5 }
 0x6d4   : > { %v1200_v23 = vmul.f32 %v4368_v22, %v1199_v7  ;;  %v6201_v7 = vlaneseq }
 0x6d6   : > { %v1201_v24 = vmul.f32 0.5, %v1200_v23  ;;  %v4788_v23 = vshrl.u32 %v6201_v7, 7 }
 0x6d8   : > { %v1202_v25 = vsub.f32 1.5, %v1201_v24  ;;  %v4836_v58 = vadd.s32 22, %v4788_v23 }
 0x6da   : > { %v1203_v26 = vmul.f32 %v4368_v22, %v1202_v25  ;;  %v4792_v25 = vadd.s32 18, %v4788_v23 }
 0x6dc   : > { %v1207_v28 = vsel %vm1206_vm7, %v4368_v22, %v1203_v26  ;;  %4242 = vset.pattern.permute.xlu2 %v4792_v25 }
 0x6dd   : > { %v1208_v29 = vmul.f32 %v1207_v28, %v1191_v16 }
 0x6df   : > { %v1213_v31 = vmul.f32 %v4339_v27, %v1208_v29 }
 0x6e1   : > { %v4771_v32 = vadd.f32 %v4340_v30, %v1213_v31 }
 0x6e3   : > { %6282 = vst [vmem:[#allocation14_spill] sm:$0xff] %v4771_v32  ;;  %4139 = vmatmul.msk.f32.vlgmr.msrb.gmra.mxu1 %vm737_vm0, %v4771_v32 }
 0x760   : > { %v1247_v36 = vpop.f32.mrf.mxu1 }
 0x761   : > { %v1248_v37 = vadd.f32 %v4341_v35, %v1247_v36 }
 0x763   : > { %v4140_v38 = vmul.f32 -1.442695, %v1248_v37  ;;  %v1307_v39 = vsel %vm1306_vm8, %v1248_v37, -inf }
 0x764   : > { %1308 = vmax.xlane.f32.xlu1 %v1307_v39 }
 0x765   : > { %4369 = vpow2.f32 %v4140_v38 }
 0x76b   : > { %v4370_v40 = vpop.eup %4369 }
 0x76c   : > { %v1253_v41 = vadd.f32 1.0, %v4370_v40 }
 0x76e   : > { %4371 = vrcp.f32 %v1253_v41  ;;  %v1265_v46 = vand.u32 2147483648, %v1253_v41  ;;  %v1263_v48 = vand.u32 2147483647, %v1253_v41  ;;  %vm1259_vm10 = vweird.f32 %v1253_v41 }
 0x770   : > { %v1266_v50 = vor.u32 1.1754944e-38, %v1265_v46  ;;  %vm1264_vm12 = vcmp.eq.f32.partialorder %v1263_v48, 8.507059e+37 }
 0x774   : > { %v4372_v42 = vpop.eup %4371 }
 0x775   : > { %v1255_v43 = vmul.f32 %v4372_v42, %v1253_v41  ;;  %vm1260_vm9 = vweird.f32 %v4372_v42 }
 0x776   : > { %vm1261_vm11 = vmor %vm1259_vm10, %vm1260_vm9 }
 0x777   : > { %v1256_v45 = vsub.f32 1.0, %v1255_v43 }
 0x779   : > { %v1257_v47 = vmul.f32 %v4372_v42, %v1256_v45 }
 0x77b   : > { %v1258_v49 = vadd.f32 %v4372_v42, %v1257_v47 }
 0x77d   : > { %v1262_v51 = vsel %vm1261_vm11, %v4372_v42, %v1258_v49 }
 0x77e   : > { %v1267_v52 = vsel %vm1264_vm12, %v1266_v50, %v1262_v51 }
 0x77f   : > { %1370 = vperm.xlu0 %4239, %v1267_v52   ;;  %1362 = vperm.xlu1 %4238, %v1267_v52  }
 0x787   : > { %4240 = vset.pattern.permute.xlu0 %v4792_v25  ;;  %4241 = vset.pattern.permute.xlu1 %v4792_v25 }
 0x7d7   : > { %v1309_v53 = vpop.xlane.xlu1 %1308 }
 0x7d8   : > { %v1310_v55 = vsub.f32 %v1248_v37, %v1309_v53 }
 0x7da   : > { %v1311_v56 = vmul.f32 1.442695, %v1310_v55 }
 0x7dc   : > { %4373 = vpow2.f32 %v1311_v56 }
 0x7e2   : > { %v4778_v57 = vpop.eup %4373 }
 0x7e3   : > { %1316 = vrot.lane.b32.xlu0 %v4778_v57, %s4459_s1  ;;  %s4395_s1 = sshra.s32 %s4040_s8, 4  ;;  %s4396_s1 = int_to_ptr.hbm [resolvable:$true] %s4395_s1 }
 0x7e4   : > { %s4397_s29 = scalar_lea.hbm %s4396_s1, 8  ;;  %p4402_p0 = scmp.lt.s32.totalorder %s4396_s1, %s6541_s26 }
 0x7e5   : > { %p4398_p11 = scmp.ne.s32.totalorder %s4396_s1, %s4397_s29  ;;  %p4403_p1 = scmp.lt.s32.totalorder %s4401_s3, %s4397_s29 }
 0x7e7   : > { %p4399_p12 = pnand %p4398_p11, %p4621_p5  ;;  %p4404_p2 = por %p4403_p1, %p4402_p0 }
 0x7e9   : > { %p4400_p13 = pneg %p4399_p12 }
 0x7eb   : > { %p4405_p3 = pnand %p4404_p2, %p4400_p13 }
 0x7f1   : > { %v1371_v60 = vpop.permute.xlu0 %1370  ;;  %v1363_v61 = vpop.permute.xlu1 %1362 }
 0x7f2   : > { %v1373_v62 = vadd.f32 %v1371_v60, %v1248_v37  ;;  %v1365_v63 = vadd.f32 %v1363_v61, %v1248_v37 }
 0x7f4   : > { %v1374_v0 = vmax.f32 %v1373_v62, 0.0  ;;  %v1366_v44 = vmax.f32 %v1365_v63, 0.0  ;;  %v4855_v63 = vadd.s32 26, %v4788_v23 }
 0x7f6   : > { %v1375_v1 = vmin.f32 %v1374_v0, 1.0  ;;  %v1367_v2 = vmin.f32 %v1366_v44, 1.0  ;;  %v4866_v0 = vadd.s32 30, %v4788_v23 }
 0x7f8   : > { %v1376_v4 = vmul.f32 3.0, %v1375_v1  ;;  %v1368_v3 = vmul.f32 3.0, %v1367_v2 }
 0x7fa   : > { %v1378_v5 = vfloor.f32 %v1376_v4  ;;  %v1377_v6 = vfloor.f32 %v1368_v3 }
 0x7fc   : > { %v1382_v8 = vadd.f32 1.0, %v1377_v6  ;;  %v1395_v9 = vsub.f32 %v1376_v4, %v1378_v5  ;;  %v1393_v10 = vsub.f32 %v1368_v3, %v1377_v6  ;;  %v1379_v14 = vmax.f32 %v1377_v6, 0.0 }
 0x7fd   : > { %v1386_v26 = vmax.f32 %v1378_v5, 0.0  ;;  %v1389_v27 = vadd.f32 1.0, %v1378_v5 }
 0x7fe   : > { %v1383_v11 = vmax.f32 %v1382_v8, 0.0  ;;  %1408 = vrot.lane.b32.xlu2 %v1395_v9, %s4460_s24  ;;  %1413 = vrot.lane.b32.xlu0 %v1393_v10, %s4461_s22  ;;  %v1396_v12 = vsub.f32 1.0, %v1395_v9  ;;  %v1380_v16 = vmin.f32 %v1379_v14, 3.0  ;;  %v1394_v17 = vsub.f32 1.0, %v1393_v10 }
 0x7ff   : > { %v1387_v28 = vmin.f32 %v1386_v26, 3.0  ;;  %v1390_v30 = vmax.f32 %v1389_v27, 0.0 }
 0x800   : > { %1403 = vrot.lane.b32.xlu1 %v1396_v12, %s4460_s24  ;;  %v1384_v15 = vmin.f32 %v1383_v11, 3.0  ;;  %v4163_v20 = vcvt.f32.s32 %v1380_v16 }
 0x801   : > { %v4170_v31 = vcvt.f32.s32 %v1387_v28  ;;  %v1391_v33 = vmin.f32 %v1390_v30, 3.0 }
 0x802   : > { %v4165_v18 = vceil.f32 %v1384_v15  ;;  %v4166_v19 = vfloor.f32 %v1384_v15  ;;  %vm4164_vm13 = vcmp.lt.s32.totalorder %v1384_v15, 0 }
 0x803   : > { %v4799_v34 = vmul.u32 4, %v4170_v31  ;;  %v4172_v37 = vceil.f32 %v1391_v33  ;;  %v4173_v38 = vfloor.f32 %v1391_v33  ;;  %vm4171_vm15 = vcmp.lt.s32.totalorder %v1391_v33, 0 }
 0x804   : > { %v4167_v21 = vsel %vm4164_vm13, %v4165_v18, %v4166_v19 }
 0x805   : > { %v4168_v22 = vcvt.f32.s32 %v4167_v21  ;;  %v4174_v42 = vsel %vm4171_vm15, %v4172_v37, %v4173_v38 }
 0x806   : > { %1398 = vrot.lane.b32.xlu2 %v1394_v17, %s4461_s22  ;;  %v4175_v43 = vcvt.f32.s32 %v4174_v42 }
 0x808   : > { %1420 = vrot.lane.b32.xlu1 %v4163_v20, %s4460_s24  ;;  %v4819_v48 = vmul.u32 4, %v4175_v43 }
 0x80e   : > { %1425 = vrot.lane.b32.xlu2 %v4168_v22, %s4460_s24 }
 0x855   : > { %v1317_v24 = vpop.permute.xlu0 %1316 }
 0x856   : > { %4143 = vmatmul.msk.f32.vlgmr.msra.gmra.mxu0 %vm1318_vm14, %v1317_v24 }
 0x858   : > { %v4877_v44 = vpop.permute.xlu2 %1408 }
 0x860   : > { %v4883_v1 = vpop.permute.xlu2 %1398 }
 0x868   : > { %v1426_v2 = vpop.permute.xlu2 %1425 }
 0x869   : > { %v1427_v8 = vadd.s32 %v1426_v2, %v4799_v34  ;;  %v1428_v12 = vadd.s32 %v1426_v2, %v4819_v48 }
 0x86b   : > { %v4910_v9 = vperm.slane %v1427_v8, 0  ;;  %v4917_v11 = vperm.slane %v1427_v8, 5  ;;  %v4925_v15 = vperm.slane %v1427_v8, 1  ;;  %v4927_v16 = vperm.slane %v1428_v12, 0 }
 0x86c   : > { %v4934_v18 = vperm.slane %v1427_v8, 3  ;;  %v4936_v19 = vperm.slane %v1428_v12, 5  ;;  %v4941_v20 = vperm.slane %v1427_v8, 6  ;;  %v4948_v22 = vperm.slane %v1428_v12, 1 }
 0x86d   : > { %v4955_v26 = vperm.slane %v1428_v12, 3  ;;  %v4962_v28 = vperm.slane %v1428_v12, 6  ;;  %v4972_v31 = vperm.slane %v1427_v8, 2  ;;  %v4974_v33 = vperm.slane %v1428_v12, 4 }
 0x86e   : > { %v1845_v38 = vperm.slane %v1428_v12, 2 }
 0x872   : > { %v4797_v29 = vpop.permute.xlu1 %1403 }
 0x87a   : > { %v1421_v35 = vpop.permute.xlu1 %1420 }
 0x87b   : > { %v1422_v36 = vadd.s32 %v1421_v35, %v4799_v34  ;;  %v1424_v49 = vadd.s32 %v4819_v48, %v1421_v35  ;;  %v1723_v35 = vperm.slane %v1427_v8, 4 }
 0x87d   : > { %v4802_v39 = vperm.slane %v1422_v36, 2  ;;  %v4804_v40 = vperm.slane %v1422_v36, 1  ;;  %v4806_v41 = vperm.slane %v1422_v36, 0  ;;  %v4811_v45 = vperm.slane %v1422_v36, 4 }
 0x87e   : > { %v4813_v46 = vperm.slane %v1422_v36, 3  ;;  %v4815_v47 = vperm.slane %v1422_v36, 5  ;;  %v4823_v50 = vperm.slane %v1422_v36, 7  ;;  %v4825_v51 = vperm.slane %v1422_v36, 6 }
 0x87f   : > { %1450 = vperm.xlu2 %4242, %v4802_v39   ;;  %1443 = vperm.xlu1 %4241, %v4804_v40   ;;  %v1559_v52 = vperm.slane %v1424_v49, 0  ;;  %v4829_v53 = vperm.slane %v1424_v49, 2  ;;  %v1566_v55 = vperm.slane %v1424_v49, 1  ;;  %v4831_v56 = vperm.slane %v1424_v49, 5 }
 0x880   : > { %1436 = vperm.xlu0 %4240, %v4806_v41   ;;  %v1587_v59 = vperm.slane %v1424_v49, 4  ;;  %v1580_v60 = vperm.slane %v1424_v49, 3  ;;  %v4839_v61 = vperm.slane %v1424_v49, 7  ;;  %v4841_v62 = vperm.slane %v1424_v49, 6 }
 0x887   : > { %1464 = vperm.xlu2 %4242, %v4811_v45   ;;  %1457 = vperm.xlu1 %4241, %v4813_v46  }
 0x888   : > { %1471 = vperm.xlu0 %4240, %v4815_v47  }
 0x88f   : > { %1485 = vperm.xlu2 %4242, %v4823_v50   ;;  %1478 = vperm.xlu1 %4241, %v4825_v51  }
 0x890   : > { %1564 = vperm.xlu0 %4240, %v1559_v52  }
 0x897   : > { %1578 = vperm.xlu2 %4242, %v4829_v53   ;;  %1571 = vperm.xlu1 %4241, %v1566_v55  }
 0x898   : > { %1599 = vperm.xlu0 %4240, %v4831_v56  }
 0x89f   : > { %1592 = vperm.xlu2 %4242, %v1587_v59   ;;  %1585 = vperm.xlu1 %4241, %v1580_v60  }
 0x8a0   : > { %4243 = vset.pattern.permute.xlu0 %v4836_v58 }
 0x8a7   : > { %1613 = vperm.xlu2 %4242, %v4839_v61   ;;  %1606 = vperm.xlu1 %4241, %v4841_v62  }
 0x8a8   : > { %2073 = vperm.xlu0 %4243, %v4806_v41  }
 0x8af   : > { %4245 = vset.pattern.permute.xlu2 %v4836_v58  ;;  %4244 = vset.pattern.permute.xlu1 %v4836_v58 }
 0x8b0   : > { %2103 = vperm.xlu0 %4243, %v4815_v47  }
 0x8b7   : > { %2085 = vperm.xlu2 %4245, %v4802_v39   ;;  %2079 = vperm.xlu1 %4244, %v4804_v40  }
 0x8b8   : > { %2185 = vperm.xlu0 %4243, %v1559_v52  }
 0x8bf   : > { %2097 = vperm.xlu2 %4245, %v4811_v45   ;;  %2091 = vperm.xlu1 %4244, %v4813_v46  }
 0x8c0   : > { %2215 = vperm.xlu0 %4243, %v4831_v56  }
 0x8c7   : > { %2115 = vperm.xlu2 %4245, %v4823_v50   ;;  %2109 = vperm.xlu1 %4244, %v4825_v51  }
 0x8c8   : > { %4248 = vset.pattern.permute.xlu0 %v4855_v63 }
 0x8cf   : > { %2197 = vperm.xlu2 %4245, %v4829_v53   ;;  %2191 = vperm.xlu1 %4244, %v1566_v55  }
 0x8d0   : > { %2806 = vperm.xlu0 %4248, %v1559_v52  }
 0x8d7   : > { %2209 = vperm.xlu2 %4245, %v1587_v59   ;;  %2203 = vperm.xlu1 %4244, %v1580_v60  }
 0x8d8   : > { %2818 = vperm.xlu0 %4248, %v4829_v53  }
 0x8d9   : > { %v4890_v4 = vpop.permute.xlu2 %1450 }
 0x8df   : > { %2227 = vperm.xlu2 %4245, %v4839_v61   ;;  %2221 = vperm.xlu1 %4244, %v4841_v62  }
 0x8e0   : > { %2712 = vperm.xlu0 %4248, %v4813_v46  }
 0x8e1   : > { %v4894_v3 = vpop.permute.xlu2 %1464 }
 0x8e7   : > { %4247 = vset.pattern.permute.xlu2 %v4855_v63  ;;  %4246 = vset.pattern.permute.xlu1 %v4855_v63 }
 0x8e8   : > { %4251 = vset.pattern.permute.xlu0 %v4866_v0 }
 0x8e9   : > { %v4899_v5 = vpop.permute.xlu2 %1485 }
 0x8ef   : > { %2700 = vperm.xlu2 %4247, %v4804_v40   ;;  %2694 = vperm.xlu1 %4246, %v4806_v41  }
 0x8f0   : > { %3403 = vperm.xlu0 %4251, %v1559_v52  }
 0x8f1   : > { %v4907_v6 = vpop.permute.xlu2 %1578 }
 0x8f7   : > { %2706 = vperm.xlu2 %4247, %v4802_v39   ;;  %2812 = vperm.xlu1 %4246, %v1566_v55  }
 0x8f8   : > { %4254 = vset.pattern.permute.xlu0 %v4855_v63 }
 0x8f9   : > { %v4915_v10 = vpop.permute.xlu2 %1592 }
 0x8ff   : > { %2824 = vperm.xlu2 %4247, %v1580_v60   ;;  %4249 = vset.pattern.permute.xlu1 %v4866_v0 }
 0x900   : > { %2724 = vperm.xlu0 %4254, %v4815_v47  }
 0x901   : > { %v4923_v14 = vpop.permute.xlu2 %1613 }
 0x907   : > { %4250 = vset.pattern.permute.xlu2 %v4866_v0  ;;  %3291 = vperm.xlu1 %4249, %v4806_v41   ;;  %v4999_v41 = vperm.slane %v1428_v12, 7 }
 0x908   : > { %4256 = vset.pattern.permute.xlu0 %v4866_v0 }
 0x90f   : > { %3297 = vperm.xlu2 %4250, %v4804_v40   ;;  %3409 = vperm.xlu1 %4249, %v1566_v55  }
 0x910   : > { %3421 = vperm.xlu0 %4256, %v1580_v60  }
 0x911   : > { %v4932_v17 = vpop.permute.xlu2 %2085 }
 0x912   : > { %6283 = vst [vmem:[#allocation15_spill] sm:$0xff] %v4932_v17 }
 0x917   : > { %4252 = vset.pattern.permute.xlu2 %v4855_v63  ;;  %3309 = vperm.xlu1 %4249, %v4813_v46   ;;  %v5018_v46 = vpop.permute.xlu1 %1443 }
 0x918   : > { %3427 = vperm.xlu0 %4256, %v1587_v59  }
 0x919   : > { %v4943_v21 = vpop.permute.xlu2 %2097 }
 0x91a   : > { %6284 = vst [vmem:[#allocation16_spill] sm:$0xff] %v4943_v21 }
 0x91f   : > { %2718 = vperm.xlu2 %4252, %v4811_v45   ;;  %4257 = vset.pattern.permute.xlu1 %v4855_v63  ;;  %v5025_v48 = vpop.permute.xlu1 %1457 }
 0x920   : > { %4259 = vset.pattern.permute.xlu0 %v4855_v63 }
 0x921   : > { %v4953_v24 = vpop.permute.xlu2 %2115 }
 0x922   : > { %6285 = vst [vmem:[#allocation17_spill] sm:$0xff] %v4953_v24 }
 0x927   : > { %2830 = vperm.xlu2 %4252, %v1587_v59   ;;  %2842 = vperm.xlu1 %4257, %v4841_v62  }
 0x928   : > { %2736 = vperm.xlu0 %4259, %v4823_v50  }
 0x929   : > { %v4960_v27 = vpop.permute.xlu2 %2197 }
 0x92a   : > { %6286 = vst [vmem:[#allocation18_spill] sm:$0xff] %v4960_v27 }
 0x92f   : > { %4253 = vset.pattern.permute.xlu2 %v4866_v0  ;;  %4258 = vset.pattern.permute.xlu1 %v4866_v0 }
 0x930   : > { %4260 = vset.pattern.permute.xlu0 %v4866_v0 }
 0x931   : > { %v4967_v30 = vpop.permute.xlu2 %2209 }
 0x932   : > { %6287 = vst [vmem:[#allocation19_spill] sm:$0xff] %v4967_v30 }
 0x937   : > { %3303 = vperm.xlu2 %4253, %v4802_v39   ;;  %3315 = vperm.xlu1 %4258, %v4811_v45  }
 0x938   : > { %3433 = vperm.xlu0 %4260, %v4831_v56  }
 0x939   : > { %v4976_v34 = vpop.permute.xlu2 %2227 }
 0x93a   : > { %6288 = vst [vmem:[#allocation20_spill] sm:$0xff] %v4976_v34 }
 0x93f   : > { %3415 = vperm.xlu2 %4253, %v4829_v53   ;;  %3321 = vperm.xlu1 %4258, %v4815_v47  }
 0x940   : > { %4262 = vset.pattern.permute.xlu0 %v4792_v25 }
 0x947   : > { %4255 = vset.pattern.permute.xlu2 %v4855_v63  ;;  %3439 = vperm.xlu1 %4258, %v4841_v62  }
 0x948   : > { %1700 = vperm.xlu0 %4262, %v4910_v9  }
 0x949   : > { %v4981_v36 = vpop.permute.xlu2 %2700 }
 0x94a   : > { %6289 = vst [vmem:[#allocation21_spill] sm:$0xff] %v4981_v36 }
 0x94f   : > { %2836 = vperm.xlu2 %4255, %v4831_v56   ;;  %4263 = vset.pattern.permute.xlu1 %v4792_v25 }
 0x950   : > { %1735 = vperm.xlu0 %4262, %v4917_v11  }
 0x951   : > { %v4990_v37 = vpop.permute.xlu2 %2706 }
 0x952   : > { %6290 = vst [vmem:[#allocation22_spill] sm:$0xff] %v4990_v37 }
 0x957   : > { %2730 = vperm.xlu2 %4255, %v4825_v51   ;;  %1707 = vperm.xlu1 %4263, %v4925_v15  }
 0x958   : > { %1836 = vperm.xlu0 %4262, %v4927_v16  }
 0x959   : > { %v4993_v39 = vpop.permute.xlu2 %2824 }
 0x95a   : > { %6291 = vst [vmem:[#allocation23_spill] sm:$0xff] %v4993_v39 }
 0x95f   : > { %2848 = vperm.xlu2 %4255, %v4839_v61   ;;  %1721 = vperm.xlu1 %4263, %v4934_v18  }
 0x960   : > { %1871 = vperm.xlu0 %4262, %v4936_v19  }
 0x967   : > { %4261 = vset.pattern.permute.xlu2 %v4866_v0  ;;  %1742 = vperm.xlu1 %4263, %v4941_v20  }
 0x968   : > { %4265 = vset.pattern.permute.xlu0 %v4836_v58 }
 0x969   : > { %v4997_v40 = vpop.permute.xlu2 %3297 }
 0x96a   : > { %6292 = vst [vmem:[#allocation24_spill] sm:$0xff] %v4997_v40 }
 0x96f   : > { %3327 = vperm.xlu2 %4261, %v4825_v51   ;;  %1843 = vperm.xlu1 %4263, %v4948_v22  }
 0x970   : > { %2305 = vperm.xlu0 %4265, %v4910_v9  }
 0x977   : > { %3333 = vperm.xlu2 %4261, %v4823_v50   ;;  %1857 = vperm.xlu1 %4263, %v4955_v26   ;;  %v5031_v50 = vpop.permute.xlu1 %1478 }
 0x978   : > { %2335 = vperm.xlu0 %4265, %v4917_v11   ;;  %6298 = vst [vmem:[#allocation30_spill] sm:$0xff] %v5031_v50 }
 0x979   : > { %v5004_v42 = vpop.permute.xlu2 %2718 }
 0x97a   : > { %6293 = vst [vmem:[#allocation25_spill] sm:$0xff] %v5004_v42 }
 0x97f   : > { %3445 = vperm.xlu2 %4261, %v4839_v61   ;;  %1878 = vperm.xlu1 %4263, %v4962_v28   ;;  %v5040_v52 = vpop.permute.xlu1 %1571 }
 0x980   : > { %2431 = vperm.xlu0 %4265, %v4948_v22  }
 0x981   : > { %v5009_v43 = vpop.permute.xlu2 %2830 }
 0x982   : > { %6294 = vst [vmem:[#allocation26_spill] sm:$0xff] %v5009_v43 }
 0x987   : > { %4264 = vset.pattern.permute.xlu2 %v4792_v25  ;;  %4266 = vset.pattern.permute.xlu1 %v4836_v58  ;;  %v4985_v25 = vperm.slane %v1427_v8, 7  ;;  %v5047_v55 = vpop.permute.xlu1 %1585 }
 0x988   : > { %2443 = vperm.xlu0 %4265, %v4955_v26  }
 0x98f   : > { %1714 = vperm.xlu2 %4264, %v4972_v31   ;;  %2311 = vperm.xlu1 %4266, %v4925_v15  }
 0x990   : > { %2449 = vperm.xlu0 %4265, %v4974_v33  }
 0x991   : > { %v5014_v45 = vpop.permute.xlu2 %3303 }
 0x992   : > { %6295 = vst [vmem:[#allocation27_spill] sm:$0xff] %v5014_v45 }
 0x997   : > { %1728 = vperm.xlu2 %4264, %v1723_v35   ;;  %2323 = vperm.xlu1 %4266, %v4934_v18  }
 0x998   : > { %2455 = vperm.xlu0 %4265, %v4936_v19  }
 0x999   : > { %v5020_v47 = vpop.permute.xlu2 %3415 }
 0x99a   : > { %6296 = vst [vmem:[#allocation28_spill] sm:$0xff] %v5020_v47 }
 0x99f   : > { %1749 = vperm.xlu2 %4264, %v4985_v25   ;;  %2341 = vperm.xlu1 %4266, %v4941_v20  }
 0x9a0   : > { %2461 = vperm.xlu0 %4265, %v4962_v28  }
 0x9a7   : > { %1850 = vperm.xlu2 %4264, %v1845_v38   ;;  %2437 = vperm.xlu1 %4266, %v1845_v38  }
 0x9a8   : > { %4273 = vset.pattern.permute.xlu0 %v4855_v63 }
 0x9a9   : > { %v5027_v49 = vpop.permute.xlu2 %2836 }
 0x9aa   : > { %6297 = vst [vmem:[#allocation29_spill] sm:$0xff] %v5027_v49 }
 0x9af   : > { %1864 = vperm.xlu2 %4264, %v4974_v33   ;;  %4268 = vset.pattern.permute.xlu1 %v4855_v63 }
 0x9b0   : > { %3058 = vperm.xlu0 %4273, %v1845_v38  }
 0x9b1   : > { %v5035_v51 = vpop.permute.xlu2 %2730 }
 0x9b2   : > { %6299 = vst [vmem:[#allocation31_spill] sm:$0xff] %v5035_v51 }
 0x9b7   : > { %1885 = vperm.xlu2 %4264, %v4999_v41   ;;  %2926 = vperm.xlu1 %4268, %v4910_v9  }
 0x9b8   : > { %4276 = vset.pattern.permute.xlu0 %v4866_v0 }
 0x9b9   : > { %v5042_v53 = vpop.permute.xlu2 %2848 }
 0x9ba   : > { %6300 = vst [vmem:[#allocation32_spill] sm:$0xff] %v5042_v53 }
 0x9bf   : > { %4267 = vset.pattern.permute.xlu2 %v4836_v58  ;;  %2938 = vperm.xlu1 %4268, %v4972_v31   ;;  %v5053_v58 = vpop.permute.xlu1 %1606 }
 0x9c0   : > { %3649 = vperm.xlu0 %4276, %v4948_v22   ;;  %6302 = vst [vmem:[#allocation34_spill] sm:$0xff] %v5053_v58 }
 0x9c7   : > { %2317 = vperm.xlu2 %4267, %v4972_v31   ;;  %3046 = vperm.xlu1 %4268, %v4927_v16   ;;  %v5059_v60 = vpop.permute.xlu1 %2079 }
 0x9c8   : > { %4277 = vset.pattern.permute.xlu0 %v4855_v63  ;;  %6304 = vst [vmem:[#allocation36_spill] sm:$0xff] %v5059_v60 }
 0x9c9   : > { %v5049_v56 = vpop.permute.xlu2 %3327 }
 0x9ca   : > { %6301 = vst [vmem:[#allocation33_spill] sm:$0xff] %v5049_v56 }
 0x9cf   : > { %2329 = vperm.xlu2 %4267, %v1723_v35   ;;  %4271 = vset.pattern.permute.xlu1 %v4866_v0  ;;  %v5065_v62 = vpop.permute.xlu1 %2091 }
 0x9d0   : > { %2962 = vperm.xlu0 %4277, %v4941_v20   ;;  %6306 = vst [vmem:[#allocation38_spill] sm:$0xff] %v5065_v62 }
 0x9d1   : > { %v5055_v59 = vpop.permute.xlu2 %3333 }
 0x9d2   : > { %6303 = vst [vmem:[#allocation35_spill] sm:$0xff] %v5055_v59 }
 0x9d7   : > { %2347 = vperm.xlu2 %4267, %v4985_v25   ;;  %3529 = vperm.xlu1 %4271, %v4925_v15   ;;  %v5073_v8 = vpop.permute.xlu1 %2109 }
 0x9d8   : > { %4280 = vset.pattern.permute.xlu0 %v4866_v0  ;;  %6307 = vst [vmem:[#allocation39_spill] sm:$0xff] %v5073_v8 }
 0x9d9   : > { %v5061_v61 = vpop.permute.xlu2 %3445 }
 0x9da   : > { %6305 = vst [vmem:[#allocation37_spill] sm:$0xff] %v5061_v61 }
 0x9df   : > { %2425 = vperm.xlu2 %4267, %v4927_v16   ;;  %4272 = vset.pattern.permute.xlu1 %v4855_v63 }
 0x9e0   : > { %3655 = vperm.xlu0 %4280, %v1845_v38  }
 0x9e7   : > { %2467 = vperm.xlu2 %4267, %v4999_v41   ;;  %2950 = vperm.xlu1 %4272, %v1723_v35  }
 0x9e8   : > { %4282 = vset.pattern.permute.xlu0 %v4855_v63 }
 0x9e9   : > { %v5067_v2 = vpop.permute.xlu2 %1714 }
 0x9ef   : > { %4269 = vset.pattern.permute.xlu2 %v4855_v63  ;;  %3064 = vperm.xlu1 %4272, %v4955_v26  }
 0x9f0   : > { %3076 = vperm.xlu0 %4282, %v4936_v19  }
 0x9f1   : > { %v5075_v12 = vpop.permute.xlu2 %1728 }
 0x9f7   : > { %2932 = vperm.xlu2 %4269, %v4925_v15   ;;  %4279 = vset.pattern.permute.xlu1 %v4866_v0  ;;  %v5079_v15 = vpop.permute.xlu1 %2191 }
 0x9f8   : > { %4285 = vset.pattern.permute.xlu0 %v4866_v0  ;;  %6308 = vst [vmem:[#allocation40_spill] sm:$0xff] %v5079_v15 }
 0x9ff   : > { %2944 = vperm.xlu2 %4269, %v4934_v18   ;;  %3547 = vperm.xlu1 %4279, %v1723_v35  }
 0xa00   : > { %3559 = vperm.xlu0 %4285, %v4941_v20   ;;  %v5081_v20 = vpop.permute.xlu2 %1749 }
 0xa07   : > { %3052 = vperm.xlu2 %4269, %v4948_v22   ;;  %4281 = vset.pattern.permute.xlu1 %v4855_v63 }
 0xa08   : > { %v5087_v22 = vpop.permute.xlu2 %1850 }
 0xa0f   : > { %4270 = vset.pattern.permute.xlu2 %v4866_v0  ;;  %2968 = vperm.xlu1 %4281, %v4985_v25  }
 0xa17   : > { %3523 = vperm.xlu2 %4270, %v4910_v9   ;;  %4283 = vset.pattern.permute.xlu1 %v4866_v0  ;;  %v5085_v9 = vpop.permute.xlu1 %2203 }
 0xa18   : > { %6309 = vst [vmem:[#allocation41_spill] sm:$0xff] %v5085_v9 }
 0xa1f   : > { %3535 = vperm.xlu2 %4270, %v4972_v31   ;;  %3553 = vperm.xlu1 %4283, %v4917_v11   ;;  %v5091_v31 = vpop.permute.xlu0 %1413  ;;  %v5093_v35 = vpop.permute.xlu1 %2221 }
 0xa20   : > { %6310 = vst [vmem:[#allocation42_spill] sm:$0xff] %v5093_v35 }
 0xa27   : > { %4274 = vset.pattern.permute.xlu2 %v4855_v63  ;;  %3661 = vperm.xlu1 %4283, %v4955_v26   ;;  %v5095_v26 = vpop.permute.xlu2 %1864  ;;  %v5101_v38 = vpop.permute.xlu1 %2694 }
 0xa28   : > { %6311 = vst [vmem:[#allocation43_spill] sm:$0xff] %v5101_v38 }
 0xa2f   : > { %2956 = vperm.xlu2 %4274, %v4917_v11   ;;  %4284 = vset.pattern.permute.xlu1 %v4855_v63  ;;  %v5099_v11 = vpop.permute.xlu0 %1436  ;;  %v5105_v7 = vpop.permute.xlu2 %1885 }
 0xa30   : > { %v5111_v32 = vpop.permute.xlu1 %2812 }
 0xa31   : > { %6312 = vst [vmem:[#allocation44_spill] sm:$0xff] %v5111_v32 }
 0xa37   : > { %4275 = vset.pattern.permute.xlu2 %v4866_v0  ;;  %3082 = vperm.xlu1 %4284, %v4962_v28   ;;  %v5107_v13 = vpop.permute.xlu0 %1471 }
 0xa3f   : > { %3541 = vperm.xlu2 %4275, %v4934_v18   ;;  %4288 = vset.pattern.permute.xlu1 %v4866_v0  ;;  %v5113_v18 = vpop.permute.xlu2 %2317  ;;  %v5115_v61 = vpop.permute.xlu0 %1564 }
 0xa40   : > { %6313 = vst [vmem:[#allocation45_spill] sm:$0xff] %v5113_v18 }
 0xa47   : > { %3643 = vperm.xlu2 %4275, %v4927_v16   ;;  %3565 = vperm.xlu1 %4288, %v4985_v25   ;;  %v5119_v16 = vpop.permute.xlu1 %3291  ;;  %v5121_v25 = vpop.permute.xlu2 %2329 }
 0xa48   : > { %6314 = vst [vmem:[#allocation46_spill] sm:$0xff] %v5119_v16  ;;  %v5124_v59 = vpop.permute.xlu0 %1599 }
 0xa49   : > { %6315 = vst [vmem:[#allocation47_spill] sm:$0xff] %v5121_v25 }
 0xa4f   : > { %4278 = vset.pattern.permute.xlu2 %v4855_v63  ;;  %3673 = vperm.xlu1 %4288, %v4936_v19   ;;  %v5126_v56 = vpop.permute.xlu1 %3409  ;;  %v5128_v19 = vpop.permute.xlu2 %2347 }
 0xa50   : > { %6316 = vst [vmem:[#allocation48_spill] sm:$0xff] %v5126_v56  ;;  %v5131_v53 = vpop.permute.xlu0 %2073 }
 0xa51   : > { %6317 = vst [vmem:[#allocation49_spill] sm:$0xff] %v5128_v19 }
 0xa52   : > { %6318 = vst [vmem:[#allocation50_spill] sm:$0xff] %v5131_v53 }
 0xa57   : > { %3070 = vperm.xlu2 %4278, %v4974_v33   ;;  %3685 = vperm.xlu1 %4288, %v4999_v41   ;;  %v5133_v51 = vpop.permute.xlu1 %3309  ;;  %v5135_v47 = vpop.permute.xlu2 %2425 }
 0xa58   : > { %6319 = vst [vmem:[#allocation51_spill] sm:$0xff] %v5133_v51  ;;  %v5138_v45 = vpop.permute.xlu0 %2103 }
 0xa59   : > { %6320 = vst [vmem:[#allocation52_spill] sm:$0xff] %v5135_v47 }
 0xa5a   : > { %6321 = vst [vmem:[#allocation53_spill] sm:$0xff] %v5138_v45 }
 0xa5f   : > { %4286 = vset.pattern.permute.xlu2 %v4866_v0  ;;  %v5140_v43 = vpop.permute.xlu1 %2842  ;;  %v5143_v42 = vpop.permute.xlu2 %2467 }
 0xa60   : > { %6322 = vst [vmem:[#allocation54_spill] sm:$0xff] %v5140_v43  ;;  %v5145_v16 = vpop.permute.xlu0 %2185  ;;  %v1338_v43 = vpop.f32.mrf.mxu0 }
 0xa61   : > { %6323 = vst [vmem:[#allocation55_spill] sm:$0xff] %v5143_v42 }
 0xa62   : > { %6324 = vst [vmem:[#allocation56_spill] sm:$0xff] %v5145_v16 }
 0xa67   : > { %3667 = vperm.xlu2 %4286, %v4974_v33   ;;  %v5147_v40 = vpop.permute.xlu1 %3315  ;;  %v5150_v33 = vpop.permute.xlu2 %2932 }
 0xa68   : > { %6325 = vst [vmem:[#allocation57_spill] sm:$0xff] %v5147_v40  ;;  %v5152_v51 = vpop.permute.xlu0 %2215 }
 0xa69   : > { %6326 = vst [vmem:[#allocation58_spill] sm:$0xff] %v5150_v33 }
 0xa6a   : > { %6327 = vst [vmem:[#allocation59_spill] sm:$0xff] %v5152_v51 }
 0xa6f   : > { %4287 = vset.pattern.permute.xlu2 %v4855_v63  ;;  %v5154_v56 = vpop.permute.xlu1 %3321  ;;  %v5157_v63 = vpop.permute.xlu2 %2944 }
 0xa70   : > { %6328 = vst [vmem:[#allocation60_spill] sm:$0xff] %v5154_v56 }
 0xa71   : > { %6329 = vst [vmem:[#allocation61_spill] sm:$0xff] %v5157_v63 }
 0xa77   : > { %3088 = vperm.xlu2 %4287, %v4999_v41   ;;  %v5159_v41 = vpop.permute.xlu0 %2806  ;;  %v5161_v39 = vpop.permute.xlu1 %3439 }
 0xa78   : > { %6330 = vst [vmem:[#allocation62_spill] sm:$0xff] %v5159_v41  ;;  %v5163_v40 = vpop.permute.xlu2 %3052 }
 0xa79   : > { %6331 = vst [vmem:[#allocation63_spill] sm:$0xff] %v5161_v39 }
 0xa7a   : > { %6332 = vst [vmem:[#allocation64_spill] sm:$0xff] %v5163_v40 }
 0xa7f   : > { %4289 = vset.pattern.permute.xlu2 %v4866_v0  ;;  %v5165_v0 = vpop.permute.xlu0 %2818  ;;  %v5167_v33 = vpop.permute.xlu1 %1707 }
 0xa80   : > { %6333 = vst [vmem:[#allocation65_spill] sm:$0xff] %v5165_v0  ;;  %v5169_v37 = vpop.permute.xlu2 %3523 }
 0xa81   : > { %6334 = vst [vmem:[#allocation66_spill] sm:$0xff] %v5169_v37 }
 0xa87   : > { %3679 = vperm.xlu2 %4289, %v4962_v28   ;;  %v5171_v56 = vpop.permute.xlu0 %2712  ;;  %v5173_v28 = vpop.permute.xlu1 %1721 }
 0xa88   : > { %6335 = vst [vmem:[#allocation67_spill] sm:$0xff] %v5171_v56  ;;  %v5175_v63 = vpop.permute.xlu2 %3535 }
 0xa89   : > { %6336 = vst [vmem:[#allocation68_spill] sm:$0xff] %v5175_v63 }
 0xa8f   : > { %1342 = vrot.lane.b32.xlu2 %v1338_v43, %s4462_s23  ;;  %v5177_v49 = vpop.permute.xlu0 %3403  ;;  %v5179_v41 = vpop.permute.xlu1 %1742 }
 0xa90   : > { %6337 = vst [vmem:[#allocation69_spill] sm:$0xff] %v5177_v49  ;;  %v5181_v43 = vpop.permute.xlu2 %2956 }
 0xa91   : > { %6338 = vst [vmem:[#allocation70_spill] sm:$0xff] %v5179_v41 }
 0xa92   : > { %6339 = vst [vmem:[#allocation71_spill] sm:$0xff] %v5181_v43 }
 0xa97   : > { %v5183_v39 = vpop.permute.xlu0 %2724  ;;  %v5185_v40 = vpop.permute.xlu1 %1843 }
 0xa98   : > { %6340 = vst [vmem:[#allocation72_spill] sm:$0xff] %v5183_v39 }
 0xa99   : > { %v5187_v0 = vpop.permute.xlu2 %3541 }
 0xa9a   : > { %6341 = vst [vmem:[#allocation73_spill] sm:$0xff] %v5187_v0 }
 0xa9f   : > { %v5189_v38 = vpop.permute.xlu0 %3421  ;;  %v5191_v37 = vpop.permute.xlu1 %1857 }
 0xaa0   : > { %6342 = vst [vmem:[#allocation74_spill] sm:$0xff] %v5189_v38 }
 0xaa1   : > { %6343 = vst [vmem:[#allocation75_spill] sm:$0xff] %v5191_v37  ;;  %v5193_v56 = vpop.permute.xlu2 %3643 }
 0xaa2   : > { %6344 = vst [vmem:[#allocation76_spill] sm:$0xff] %v5193_v56  ;;  %v1498_v56 = vadd.s32 34, %v4788_v23 }
 0xaa4   : > { %4292 = vset.pattern.permute.xlu2 %v1498_v56  ;;  %4291 = vset.pattern.permute.xlu1 %v1498_v56 }
 0xaa5   : > { %4290 = vset.pattern.permute.xlu0 %v1498_v56 }
 0xaa7   : > { %v5195_v42 = vpop.permute.xlu0 %3427  ;;  %v5199_v49 = vpop.permute.xlu1 %1878 }
 0xaa8   : > { %6345 = vst [vmem:[#allocation77_spill] sm:$0xff] %v5195_v42 }
 0xaa9   : > { %6347 = vst [vmem:[#allocation79_spill] sm:$0xff] %v5199_v49 }
 0xaaf   : > { %v5201_v19 = vpop.permute.xlu0 %2736  ;;  %v5205_v39 = vpop.permute.xlu1 %2311 }
 0xab0   : > { %6348 = vst [vmem:[#allocation80_spill] sm:$0xff] %v5201_v19 }
 0xab1   : > { %v5197_v63 = vpop.permute.xlu2 %3070  ;;  %6350 = vst [vmem:[#allocation82_spill] sm:$0xff] %v5205_v39 }
 0xab2   : > { %6346 = vst [vmem:[#allocation78_spill] sm:$0xff] %v5197_v63 }
 0xab7   : > { %v5207_v24 = vpop.permute.xlu0 %3433  ;;  %v5213_v34 = vpop.permute.xlu1 %2323 }
 0xab8   : > { %6351 = vst [vmem:[#allocation83_spill] sm:$0xff] %v5207_v24 }
 0xab9   : > { %6353 = vst [vmem:[#allocation85_spill] sm:$0xff] %v5213_v34 }
 0xabf   : > { %v5211_v38 = vpop.permute.xlu0 %1700 }
 0xac1   : > { %v5203_v43 = vpop.permute.xlu2 %3667 }
 0xac2   : > { %6349 = vst [vmem:[#allocation81_spill] sm:$0xff] %v5203_v43  ;;  %v5220_v43 = vpop.permute.xlu1 %2341 }
 0xac3   : > { %6355 = vst [vmem:[#allocation87_spill] sm:$0xff] %v5220_v43 }
 0xac7   : > { %v5218_v19 = vpop.permute.xlu0 %1735 }
 0xacf   : > { %v5222_v32 = vpop.permute.xlu0 %1836 }
 0xad1   : > { %v5209_v0 = vpop.permute.xlu2 %3088 }
 0xad2   : > { %6352 = vst [vmem:[#allocation84_spill] sm:$0xff] %v5209_v0  ;;  %v5224_v0 = vpop.permute.xlu1 %2437 }
 0xad3   : > { %6356 = vst [vmem:[#allocation88_spill] sm:$0xff] %v5224_v0 }
 0xad7   : > { %v5228_v27 = vpop.permute.xlu0 %1871 }
 0xada   : > { %v5226_v18 = vpop.permute.xlu1 %2926 }
 0xadb   : > { %6357 = vst [vmem:[#allocation89_spill] sm:$0xff] %v5226_v18 }
 0xae1   : > { %v5216_v63 = vpop.permute.xlu2 %3679 }
 0xae2   : > { %6354 = vst [vmem:[#allocation86_spill] sm:$0xff] %v5216_v63 }
 0xae9   : > { %v1343_v42 = vpop.permute.xlu2 %1342 }
 0xaea   : > { %4375 = vrcp.f32 %v1343_v42  ;;  %v1356_v21 = vand.u32 2147483648, %v1343_v42  ;;  %v1354_v34 = vand.u32 2147483647, %v1343_v42  ;;  %vm1350_vm3 = vweird.f32 %v1343_v42 }
 0xaec   : > { %v1357_v63 = vor.u32 1.1754944e-38, %v1356_v21  ;;  %vm1355_vm5 = vcmp.eq.f32.partialorder %v1354_v34, 8.507059e+37  ;;  %v5239_v21 = vpop.permute.xlu0 %2305 }
 0xaed   : > { %6361 = vst [vmem:[#allocation93_spill] sm:$0xff] %v5239_v21 }
 0xaf0   : > { %v4376_v24 = vpop.eup %4375 }
 0xaf1   : > { %v1346_v36 = vmul.f32 %v4376_v24, %v1343_v42  ;;  %vm1351_vm2 = vweird.f32 %v4376_v24  ;;  %v5241_v42 = vpop.permute.xlu1 %2938 }
 0xaf2   : > { %vm1352_vm4 = vmor %vm1350_vm3, %vm1351_vm2  ;;  %6362 = vst [vmem:[#allocation94_spill] sm:$0xff] %v5241_v42 }
 0xaf3   : > { %v1347_v25 = vsub.f32 1.0, %v1346_v36 }
 0xaf5   : > { %v1348_v30 = vmul.f32 %v4376_v24, %v1347_v25 }
 0xaf7   : > { %v1349_v56 = vadd.f32 %v4376_v24, %v1348_v30 }
 0xaf9   : > { %v1353_v17 = vsel %vm1352_vm4, %v4376_v24, %v1349_v56  ;;  %v5254_v24 = vpop.permute.xlu0 %2335  ;;  %v5257_v34 = vpop.permute.xlu1 %3046 }
 0xafa   : > { %v1358_v39 = vsel %vm1355_vm5, %v1357_v63, %v1353_v17  ;;  %6365 = vst [vmem:[#allocation97_spill] sm:$0xff] %v5254_v24 }
 0xafb   : > { %v1359_v43 = vmul.f32 %v4778_v57, %v1358_v39  ;;  %6366 = vst [vmem:[#allocation98_spill] sm:$0xff] %v5257_v34 }
 0xafd   : > { %v1401_v0 = vmul.f32 %v4883_v1, %v1359_v43 }
 0xaff   : > { %v1406_v36 = vmul.f32 %v4797_v29, %v1401_v0  ;;  %v1411_v39 = vmul.f32 %v4877_v44, %v1401_v0  ;;  %v1416_v0 = vmul.f32 %v5091_v31, %v1359_v43 }
 0xb01   : > { %v5233_v25 = vperm.slane %v1406_v36, 2  ;;  %v5235_v8 = vperm.slane %v1406_v36, 1  ;;  %v5237_v30 = vperm.slane %v1406_v36, 0  ;;  %v5246_v57 = vperm.slane %v1406_v36, 4  ;;  %v5269_v18 = vpop.permute.xlu1 %3529  ;;  %v5271_v35 = vpop.permute.xlu0 %2431 }
 0xb02   : > { %v5248_v1 = vperm.slane %v1406_v36, 3  ;;  %v5250_v17 = vperm.slane %v1406_v36, 5  ;;  %v5260_v63 = vperm.slane %v1406_v36, 7  ;;  %v5262_v56 = vperm.slane %v1406_v36, 6  ;;  %6370 = vst [vmem:[#allocation102_spill] sm:$0xff] %v5269_v18 }
 0xb03   : > { %6358 = vst [vmem:[#allocation90_spill] sm:$0xff] %v5233_v25  ;;  %1514 = vperm.xlu2 %4292, %v5233_v25   ;;  %1507 = vperm.xlu1 %4291, %v5235_v8   ;;  %v5264_v42 = vperm.slane %v1411_v39, 0  ;;  %v5273_v47 = vperm.slane %v1411_v39, 2  ;;  %v5275_v34 = vperm.slane %v1411_v39, 1  ;;  %v5278_v36 = vperm.slane %v1411_v39, 5 }
 0xb04   : > { %6359 = vst [vmem:[#allocation91_spill] sm:$0xff] %v5235_v8  ;;  %1500 = vperm.xlu0 %4290, %v5237_v30   ;;  %v1417_v18 = vmul.f32 %v1416_v0, %v4797_v29  ;;  %v5290_v45 = vperm.slane %v1411_v39, 3  ;;  %v5299_v43 = vperm.slane %v1411_v39, 7  ;;  %v1418_v9 = vmul.f32 %v1416_v0, %v4877_v44 }
 0xb05   : > { %6360 = vst [vmem:[#allocation92_spill] sm:$0xff] %v5237_v30 }
 0xb06   : > { %6363 = vst [vmem:[#allocation95_spill] sm:$0xff] %v5246_v57  ;;  %v5292_v51 = vperm.slane %v1417_v18, 0  ;;  %v5313_v15 = vperm.slane %v1417_v18, 2  ;;  %v5326_v21 = vperm.slane %v1417_v18, 4  ;;  %v5328_v44 = vperm.slane %v1417_v18, 3 }
 0xb07   : > { %6364 = vst [vmem:[#allocation96_spill] sm:$0xff] %v5248_v1  ;;  %v5330_v0 = vperm.slane %v1418_v9, 5  ;;  %v5340_v16 = vperm.slane %v1417_v18, 7  ;;  %v5361_v58 = vperm.slane %v1418_v9, 4  ;;  %v5363_v50 = vperm.slane %v1418_v9, 3 }
 0xb08   : > { %6367 = vst [vmem:[#allocation99_spill] sm:$0xff] %v5260_v63  ;;  %v5372_v37 = vperm.slane %v1418_v9, 7 }
 0xb09   : > { %6368 = vst [vmem:[#allocation100_spill] sm:$0xff] %v5262_v56  ;;  %v5283_v24 = vpop.permute.xlu1 %2950  ;;  %v5286_v54 = vpop.permute.xlu0 %2443 }
 0xb0a   : > { %6369 = vst [vmem:[#allocation101_spill] sm:$0xff] %v5264_v42 }
 0xb0b   : > { %1528 = vperm.xlu2 %4292, %v5246_v57   ;;  %1521 = vperm.xlu1 %4291, %v5248_v1   ;;  %6371 = vst [vmem:[#allocation103_spill] sm:$0xff] %v5271_v35  ;;  %v5288_v35 = vperm.slane %v1411_v39, 4 }
 0xb0c   : > { %1535 = vperm.xlu0 %4290, %v5250_v17   ;;  %6372 = vst [vmem:[#allocation104_spill] sm:$0xff] %v5273_v47 }
 0xb0d   : > { %6373 = vst [vmem:[#allocation105_spill] sm:$0xff] %v5275_v34 }
 0xb0e   : > { %6374 = vst [vmem:[#allocation106_spill] sm:$0xff] %v5278_v36 }
 0xb0f   : > { %6375 = vst [vmem:[#allocation107_spill] sm:$0xff] %v5283_v24  ;;  %v5301_v24 = vperm.slane %v1411_v39, 6  ;;  %v5317_v39 = vperm.slane %v1418_v9, 0 }
 0xb10   : > { %6376 = vst [vmem:[#allocation108_spill] sm:$0xff] %v5286_v54  ;;  %v5305_v54 = vperm.slane %v1417_v18, 5 }
 0xb11   : > { %6377 = vst [vmem:[#allocation109_spill] sm:$0xff] %v5288_v35  ;;  %v5297_v31 = vpop.permute.xlu1 %3064  ;;  %v5303_v29 = vpop.permute.xlu0 %2449 }
 0xb12   : > { %6378 = vst [vmem:[#allocation110_spill] sm:$0xff] %v5290_v45 }
 0xb13   : > { %1549 = vperm.xlu2 %4292, %v5260_v63   ;;  %1542 = vperm.xlu1 %4291, %v5262_v56   ;;  %6379 = vst [vmem:[#allocation111_spill] sm:$0xff] %v5292_v51 }
 0xb14   : > { %1628 = vperm.xlu0 %4290, %v5264_v42   ;;  %6380 = vst [vmem:[#allocation112_spill] sm:$0xff] %v5297_v31  ;;  %v5315_v31 = vperm.slane %v1417_v18, 1 }
 0xb15   : > { %6381 = vst [vmem:[#allocation113_spill] sm:$0xff] %v5299_v43 }
 0xb16   : > { %6382 = vst [vmem:[#allocation114_spill] sm:$0xff] %v5301_v24 }
 0xb17   : > { %6383 = vst [vmem:[#allocation115_spill] sm:$0xff] %v5303_v29 }
 0xb18   : > { %6385 = vst [vmem:[#allocation117_spill] sm:$0xff] %v5315_v31 }
 0xb19   : > { %v5311_v62 = vpop.permute.xlu1 %3547  ;;  %v5321_v29 = vpop.permute.xlu0 %2455  ;;  %6388 = vst [vmem:[#allocation120_spill] sm:$0xff] %v5330_v0 }
 0xb1a   : > { %6384 = vst [vmem:[#allocation116_spill] sm:$0xff] %v5311_v62 }
 0xb1b   : > { %1642 = vperm.xlu2 %4292, %v5273_v47   ;;  %1635 = vperm.xlu1 %4291, %v5275_v34   ;;  %6386 = vst [vmem:[#allocation118_spill] sm:$0xff] %v5321_v29  ;;  %v2127_v29 = vadd.s32 38, %v4788_v23 }
 0xb1c   : > { %1663 = vperm.xlu0 %4290, %v5278_v36   ;;  %6391 = vst [vmem:[#allocation123_spill] sm:$0xff] %v5340_v16 }
 0xb1d   : > { %6396 = vst [vmem:[#allocation128_spill] sm:$0xff] %v5361_v58 }
 0xb1e   : > { %6399 = vst [vmem:[#allocation131_spill] sm:$0xff] %v5372_v37 }
 0xb21   : > { %v5324_v60 = vpop.permute.xlu1 %2968  ;;  %v5335_v62 = vpop.permute.xlu0 %2461 }
 0xb22   : > { %6387 = vst [vmem:[#allocation119_spill] sm:$0xff] %v5324_v60  ;;  %v5342_v60 = vperm.slane %v1417_v18, 6 }
 0xb23   : > { %1656 = vperm.xlu2 %4292, %v5288_v35   ;;  %1649 = vperm.xlu1 %4291, %v5290_v45   ;;  %6389 = vst [vmem:[#allocation121_spill] sm:$0xff] %v5335_v62  ;;  %v5352_v62 = vperm.slane %v1418_v9, 1 }
 0xb24   : > { %1764 = vperm.xlu0 %4290, %v5292_v51  }
 0xb29   : > { %v5337_v53 = vpop.permute.xlu1 %3553  ;;  %v5346_v49 = vpop.permute.xlu0 %3058 }
 0xb2a   : > { %6390 = vst [vmem:[#allocation122_spill] sm:$0xff] %v5337_v53 }
 0xb2b   : > { %1677 = vperm.xlu2 %4292, %v5299_v43   ;;  %1670 = vperm.xlu1 %4291, %v5301_v24   ;;  %6392 = vst [vmem:[#allocation124_spill] sm:$0xff] %v5346_v49 }
 0xb2c   : > { %1799 = vperm.xlu0 %4290, %v5305_v54  }
 0xb31   : > { %v5348_v41 = vpop.permute.xlu1 %3661  ;;  %v5357_v18 = vpop.permute.xlu0 %3649 }
 0xb32   : > { %6393 = vst [vmem:[#allocation125_spill] sm:$0xff] %v5348_v41 }
 0xb33   : > { %1778 = vperm.xlu2 %4292, %v5313_v15   ;;  %1771 = vperm.xlu1 %4291, %v5315_v31   ;;  %6394 = vst [vmem:[#allocation126_spill] sm:$0xff] %v5357_v18 }
 0xb34   : > { %1900 = vperm.xlu0 %4290, %v5317_v39  }
 0xb39   : > { %v5359_v53 = vpop.permute.xlu1 %3082  ;;  %v5368_v41 = vpop.permute.xlu0 %2962 }
 0xb3a   : > { %6395 = vst [vmem:[#allocation127_spill] sm:$0xff] %v5359_v53 }
 0xb3b   : > { %1792 = vperm.xlu2 %4292, %v5326_v21   ;;  %1785 = vperm.xlu1 %4291, %v5328_v44   ;;  %6397 = vst [vmem:[#allocation129_spill] sm:$0xff] %v5368_v41 }
 0xb3c   : > { %1935 = vperm.xlu0 %4290, %v5330_v0   ;;  %v5350_v0 = vperm.slane %v1418_v9, 2 }
 0xb41   : > { %v5370_v49 = vpop.permute.xlu1 %3565  ;;  %v5381_v18 = vpop.permute.xlu0 %3655 }
 0xb42   : > { %6398 = vst [vmem:[#allocation130_spill] sm:$0xff] %v5370_v49 }
 0xb43   : > { %1813 = vperm.xlu2 %4292, %v5340_v16   ;;  %1806 = vperm.xlu1 %4291, %v5342_v60   ;;  %v5374_v16 = vperm.slane %v1418_v9, 6  ;;  %6401 = vst [vmem:[#allocation133_spill] sm:$0xff] %v5381_v18 }
 0xb44   : > { %4293 = vset.pattern.permute.xlu0 %v2127_v29 }
 0xb45   : > { %6400 = vst [vmem:[#allocation132_spill] sm:$0xff] %v5374_v16 }
 0xb49   : > { %v5388_v9 = vpop.permute.xlu0 %3076 }
 0xb4a   : > { %6403 = vst [vmem:[#allocation135_spill] sm:$0xff] %v5388_v9 }
 0xb4b   : > { %1914 = vperm.xlu2 %4292, %v5350_v0   ;;  %1907 = vperm.xlu1 %4291, %v5352_v62  }
 0xb4c   : > { %2129 = vperm.xlu0 %4293, %v5237_v30  }
 0xb51   : > { %v5397_v18 = vpop.permute.xlu0 %3559 }
 0xb52   : > { %6405 = vst [vmem:[#allocation137_spill] sm:$0xff] %v5397_v18 }
 0xb53   : > { %1928 = vperm.xlu2 %4292, %v5361_v58   ;;  %1921 = vperm.xlu1 %4291, %v5363_v50   ;;  %v5383_v58 = vpop.permute.xlu1 %3673 }
 0xb54   : > { %2159 = vperm.xlu0 %4293, %v5250_v17   ;;  %6402 = vst [vmem:[#allocation134_spill] sm:$0xff] %v5383_v58 }
 0xb5b   : > { %1949 = vperm.xlu2 %4292, %v5372_v37   ;;  %1942 = vperm.xlu1 %4291, %v5374_v16   ;;  %v5393_v41 = vpop.permute.xlu1 %3685  ;;  %v5429_v37 = vadd.s32 46, %v4788_v23 }
 0xb5c   : > { %2241 = vperm.xlu0 %4293, %v5264_v42   ;;  %6404 = vst [vmem:[#allocation136_spill] sm:$0xff] %v5393_v41 }
 0xb5d   : > { %v5379_v53 = vpop.permute.xlu2 %1514  ;;  %6407 = vst [vmem:[#allocation139_spill] sm:$0xff] %v5429_v37 }
 0xb63   : > { %4295 = vset.pattern.permute.xlu2 %v2127_v29  ;;  %4294 = vset.pattern.permute.xlu1 %v2127_v29 }
 0xb64   : > { %2271 = vperm.xlu0 %4293, %v5278_v36   ;;  %v5407_v36 = vadd.s32 42, %v4788_v23  ;;  %v6409_v23 = vlaneseq }
 0xb65   : > { %v5386_v49 = vpop.permute.xlu2 %1528 }
 0xb6b   : > { %2141 = vperm.xlu2 %4295, %v5233_v25   ;;  %2135 = vperm.xlu1 %4294, %v5235_v8   ;;  %v5442_v8 = vand.u32 127, %v6409_v23 }
 0xb6c   : > { %2361 = vperm.xlu0 %4293, %v5292_v51  }
 0xb6d   : > { %v5395_v42 = vpop.permute.xlu2 %1549  ;;  %vm1615_vm6 = vcmp.eq.s32.totalorder %v5442_v8, %v5115_v61  ;;  %vm1751_vm7 = vcmp.eq.s32.totalorder %v5442_v8, %v5211_v38  ;;  %vm1487_vm8 = vcmp.eq.s32.totalorder %v5442_v8, %v5099_v11  ;;  %vm1887_vm9 = vcmp.eq.s32.totalorder %v5442_v8, %v5222_v32 }
 0xb6e   : > { %vm1620_vm10 = vcmp.eq.s32.totalorder %v5442_v8, %v5124_v59  ;;  %vm1756_vm11 = vcmp.eq.s32.totalorder %v5442_v8, %v5218_v19  ;;  %vm1492_vm12 = vcmp.eq.s32.totalorder %v5442_v8, %v5107_v13  ;;  %vm1892_vm13 = vcmp.eq.s32.totalorder %v5442_v8, %v5228_v27 }
 0xb6f   : > { %vm1617_vm15 = vcmp.eq.s32.totalorder %v5442_v8, %v4907_v6  ;;  %vm1489_vm2 = vcmp.eq.s32.totalorder %v5442_v8, %v4890_v4  ;;  %vm1619_vm3 = vcmp.eq.s32.totalorder %v5442_v8, %v4915_v10  ;;  %vm1753_vm4 = vcmp.eq.s32.totalorder %v5442_v8, %v5067_v2 }
 0xb70   : > { %v1553_v27 = vsel %vm1489_vm2, %v5379_v53, 0.0  ;;  %vm1491_vm5 = vcmp.eq.s32.totalorder %v5442_v8, %v4894_v3  ;;  %vm1618_vm2 = vcmp.eq.s32.totalorder %v5442_v8, %v5047_v55  ;;  %v6411_v55 = vld [vmem:[#allocation128_spill] sm:$0xff] }
 0xb71   : > { %v1555_v6 = vsel %vm1491_vm5, %v5386_v49, 0.0  ;;  %vm1894_vm5 = vcmp.eq.s32.totalorder %v5442_v8, %v5105_v7 }
 0xb73   : > { %2153 = vperm.xlu2 %4295, %v5246_v57   ;;  %2147 = vperm.xlu1 %4294, %v5248_v1  }
 0xb74   : > { %2517 = vperm.xlu0 %4293, %v5374_v16  }
 0xb75   : > { %v5402_v29 = vpop.permute.xlu2 %1642  ;;  %v5404_v58 = vpop.permute.xlu1 %1507 }
 0xb76   : > { %v1501_v9 = vpop.permute.xlu0 %1500  ;;  %v1681_v19 = vsel %vm1617_vm15, %v5402_v29, 0.0  ;;  %vm1494_vm15 = vcmp.eq.s32.totalorder %v5442_v8, %v4899_v5 }
 0xb77   : > { %v1689_v4 = vadd.f32 %v1681_v19, %v1553_v27  ;;  %v1558_v5 = vsel %vm1494_vm15, %v5395_v42, 0.0  ;;  %v6410_v27 = vld [vmem:[#allocation123_spill] sm:$0xff]  ;;  %vm2032_vm15 = vcmask 1041409  }
 0xb7b   : > { %2171 = vperm.xlu2 %4295, %v5260_v63   ;;  %2165 = vperm.xlu1 %4294, %v5262_v56  }
 0xb7c   : > { %4298 = vset.pattern.permute.xlu0 %v5407_v36 }
 0xb7d   : > { %v5412_v41 = vpop.permute.xlu2 %1656  ;;  %v5414_v18 = vpop.permute.xlu1 %1521 }
 0xb7e   : > { %v1536_v57 = vpop.permute.xlu0 %1535 }
 0xb83   : > { %2253 = vperm.xlu2 %4295, %v5273_v47   ;;  %2247 = vperm.xlu1 %4294, %v5275_v34  }
 0xb84   : > { %2874 = vperm.xlu0 %4298, %v5273_v47  }
 0xb85   : > { %v5419_v1 = vpop.permute.xlu2 %1677  ;;  %v5421_v25 = vpop.permute.xlu1 %1542 }
 0xb86   : > { %6406 = vst [vmem:[#allocation138_spill] sm:$0xff] %v5421_v25  ;;  %v1629_v63 = vpop.permute.xlu0 %1628 }
 0xb87   : > { %v1679_v25 = vsel %vm1615_vm6, %v1629_v63, 0.0  ;;  %vm1755_vm6 = vcmp.eq.s32.totalorder %v5442_v8, %v5075_v12 }
 0xb8b   : > { %2265 = vperm.xlu2 %4295, %v5288_v35   ;;  %2259 = vperm.xlu1 %4294, %v5290_v45  }
 0xb8c   : > { %2880 = vperm.xlu0 %4298, %v5290_v45  }
 0xb8d   : > { %v1779_v56 = vpop.permute.xlu2 %1778  ;;  %v5426_v16 = vpop.permute.xlu1 %1635 }
 0xb8e   : > { %v1664_v51 = vpop.permute.xlu0 %1663 }
 0xb93   : > { %2283 = vperm.xlu2 %4295, %v5299_v43   ;;  %2277 = vperm.xlu1 %4294, %v5301_v24  }
 0xb94   : > { %4299 = vset.pattern.permute.xlu0 %v5429_v37 }
 0xb95   : > { %v1793_v47 = vpop.permute.xlu2 %1792  ;;  %v5434_v34 = vpop.permute.xlu1 %1649 }
 0xb96   : > { %v1765_v35 = vpop.permute.xlu0 %1764  ;;  %v1819_v10 = vsel %vm1755_vm6, %v1793_v47, 0.0  ;;  %vm1490_vm6 = vcmp.eq.s32.totalorder %v5442_v8, %v5025_v48 }
 0xb97   : > { %v1554_v7 = vsel %vm1490_vm6, %v5414_v18, 0.0  ;;  %v6412_v18 = vld [vmem:[#allocation139_spill] sm:$0xff] }
 0xb9b   : > { %2373 = vperm.xlu2 %4295, %v5313_v15   ;;  %2367 = vperm.xlu1 %4294, %v5315_v31   ;;  %v1551_v31 = vsel %vm1487_vm8, %v1501_v9, 0.0  ;;  %v1817_v9 = vsel %vm1753_vm4, %v1779_v56, 0.0  ;;  %vm1967_vm8 = vcmask 125952   ;;  %vm1888_vm4 = vcmp.eq.s32.totalorder %v5442_v8, %v5185_v40 }
 0xb9c   : > { %3347 = vperm.xlu0 %4299, %v5237_v30   ;;  %v1815_v30 = vsel %vm1751_vm7, %v1765_v35, 0.0  ;;  %v1687_v23 = vadd.f32 %v1679_v25, %v1551_v31  ;;  %v1684_v35 = vsel %vm1620_vm10, %v1664_v51, 0.0  ;;  %v1556_v25 = vsel %vm1492_vm12, %v1536_v57, 0.0 }
 0xb9d   : > { %v5439_v45 = vpop.permute.xlu1 %1670  ;;  %v5444_v43 = vpop.permute.xlu2 %1813  ;;  %v1692_v32 = vadd.f32 %v1684_v35, %v1556_v25  ;;  %vm1889_vm7 = vcmp.eq.s32.totalorder %v5442_v8, %v5087_v22  ;;  %v1825_v56 = vadd.f32 %v1817_v9, %v1689_v4  ;;  %vm1616_vm10 = vcmp.eq.s32.totalorder %v5442_v8, %v5040_v52 }
 0xb9e   : > { %6408 = vst [vmem:[#allocation140_spill] sm:$0xff] %v5439_v45  ;;  %v1800_v24 = vpop.permute.xlu0 %1799  ;;  %v1823_v61 = vadd.f32 %v1815_v30, %v1687_v23  ;;  %v1680_v12 = vsel %vm1616_vm10, %v5426_v16, 0.0  ;;  %vm1752_vm12 = vcmp.eq.s32.totalorder %v5442_v8, %v5167_v33  ;;  %v1682_v40 = vsel %vm1618_vm2, %v5434_v34, 0.0 }
 0xb9f   : > { %v1820_v31 = vsel %vm1756_vm11, %v1800_v24, 0.0  ;;  %v1683_v24 = vsel %vm1619_vm3, %v5412_v41, 0.0  ;;  %vm1488_vm11 = vcmp.eq.s32.totalorder %v5442_v8, %v5018_v46  ;;  %vm1758_vm3 = vcmp.eq.s32.totalorder %v5442_v8, %v5081_v20 }
 0xba0   : > { %v1691_v41 = vadd.f32 %v1683_v24, %v1555_v6  ;;  %v1552_v49 = vsel %vm1488_vm11, %v5404_v58, 0.0  ;;  %v1822_v58 = vsel %vm1758_vm3, %v5444_v43, 0.0  ;;  %v1690_v19 = vadd.f32 %v1682_v40, %v1554_v7  ;;  %v6413_v6 = vld [vmem:[#allocation75_spill] sm:$0xff] }
 0xba1   : > { %v1688_v23 = vadd.f32 %v1680_v12, %v1552_v49  ;;  %v6414_v12 = vld [vmem:[#allocation30_spill] sm:$0xff]  ;;  %vm2034_vm2 = vcmask 1042434   ;;  %vm2036_vm3 = vcmask 1043459  }
 0xba2   : > { %v1827_v22 = vadd.f32 %v1819_v10, %v1691_v41  ;;  %vm1493_vm10 = vcmp.eq.s32.totalorder %v5442_v8, %v6414_v12  ;;  %v6422_v12 = vld [vmem:[#allocation131_spill] sm:$0xff] }
 0xba3   : > { %2481 = vperm.xlu2 %4295, %v5317_v39   ;;  %2379 = vperm.xlu1 %4294, %v5328_v44  }
 0xba4   : > { %4303 = vset.pattern.permute.xlu0 %v5407_v36 }
 0xba5   : > { %v1772_v45 = vpop.permute.xlu1 %1771  ;;  %v1915_v11 = vpop.permute.xlu2 %1914  ;;  %v6416_v49 = vld [vmem:[#allocation140_spill] sm:$0xff] }
 0xba6   : > { %v1901_v63 = vpop.permute.xlu0 %1900  ;;  %v1953_v53 = vsel %vm1889_vm7, %v1915_v11, 0.0  ;;  %vm1754_vm7 = vcmp.eq.s32.totalorder %v5442_v8, %v5173_v28 }
 0xba7   : > { %v1951_v37 = vsel %vm1887_vm9, %v1901_v63, 0.0  ;;  %vm1891_vm9 = vcmp.eq.s32.totalorder %v5442_v8, %v5095_v26  ;;  %v1961_v29 = vadd.f32 %v1953_v53, %v1825_v56  ;;  %v1816_v26 = vsel %vm1752_vm12, %v1772_v45, 0.0 }
 0xba8   : > { %v1959_v38 = vadd.f32 %v1951_v37, %v1823_v61  ;;  %v1828_v37 = vadd.f32 %v1820_v31, %v1692_v32  ;;  %v1824_v33 = vadd.f32 %v1816_v26, %v1688_v23 }
 0xbaa   : > { %v1968_v47 = vsel %vm1967_vm8, %v1959_v38, 0.0 }
 0xbab   : > { %2385 = vperm.xlu2 %4295, %v5326_v21   ;;  %2487 = vperm.xlu1 %4294, %v5352_v62   ;;  %v1969_v45 = vrot.slane %v1968_v47, 4 }
 0xbac   : > { %2994 = vperm.xlu0 %4303, %v5313_v15  }
 0xbad   : > { %v5466_v30 = vpop.permute.xlu1 %1785  ;;  %v1929_v57 = vpop.permute.xlu2 %1928  ;;  %v1970_v31 = vadd.f32 %v1969_v45, %v1968_v47 }
 0xbae   : > { %v1936_v51 = vpop.permute.xlu0 %1935  ;;  %v1955_v3 = vsel %vm1891_vm9, %v1929_v57, 0.0  ;;  %vm1890_vm9 = vcmp.eq.s32.totalorder %v5442_v8, %v6413_v6 }
 0xbaf   : > { %v1956_v59 = vsel %vm1892_vm13, %v1936_v51, 0.0  ;;  %vm1622_vm13 = vcmp.eq.s32.totalorder %v5442_v8, %v4923_v14  ;;  %v1963_v52 = vadd.f32 %v1955_v3, %v1827_v22  ;;  %v1982_v14 = vsel %vm1967_vm8, %v1961_v29, 0.0  ;;  %v6415_v22 = vld [vmem:[#allocation34_spill] sm:$0xff] }
 0xbb0   : > { %v1964_v13 = vadd.f32 %v1956_v59, %v1828_v37  ;;  %v1686_v16 = vsel %vm1622_vm13, %v5419_v1, 0.0  ;;  %v1983_v38 = vrot.slane %v1982_v14, 4  ;;  %v1818_v51 = vsel %vm1754_vm7, %v5466_v30, 0.0 }
 0xbb1   : > { %v1694_v61 = vadd.f32 %v1686_v16, %v1558_v5  ;;  %v1996_v63 = vsel %vm1967_vm8, %v1963_v52, 0.0  ;;  %v1971_v34 = vrot.slane %v1970_v31, 2  ;;  %v1826_v4 = vadd.f32 %v1818_v51, %v1690_v19  ;;  %v6417_v16 = vld [vmem:[#allocation70_spill] sm:$0xff] }
 0xbb2   : > { %v2003_v35 = vsel %vm1967_vm8, %v1964_v13, 0.0  ;;  %v1997_v32 = vrot.slane %v1996_v63, 4  ;;  %v1984_v57 = vadd.f32 %v1983_v38, %v1982_v14  ;;  %vm1621_vm11 = vcmp.eq.s32.totalorder %v5442_v8, %v6415_v22  ;;  %v6418_v14 = vld [vmem:[#allocation138_spill] sm:$0xff] }
 0xbb3   : > { %2391 = vperm.xlu2 %4295, %v5305_v54   ;;  %2493 = vperm.xlu1 %4294, %v5350_v0   ;;  %v1830_v43 = vadd.f32 %v1822_v58, %v1694_v61  ;;  %v2004_v59 = vrot.slane %v2003_v35, 4  ;;  %v1685_v26 = vsel %vm1621_vm11, %v6416_v49, 0.0  ;;  %v1972_v52 = vadd.f32 %v1971_v34, %v1970_v31 }
 0xbb4   : > { %2780 = vperm.xlu0 %4303, %v5250_v17   ;;  %v1998_v9 = vadd.f32 %v1997_v32, %v1996_v63  ;;  %v1985_v29 = vrot.slane %v1984_v57, 2  ;;  %vm1757_vm12 = vcmp.eq.s32.totalorder %v5442_v8, %v6417_v16  ;;  %v1557_v45 = vsel %vm1493_vm10, %v6418_v14, 0.0  ;;  %v6420_v32 = vld [vmem:[#allocation79_spill] sm:$0xff] }
 0xbb5   : > { %v5491_v2 = vpop.permute.xlu1 %1806  ;;  %v1950_v46 = vpop.permute.xlu2 %1949  ;;  %v2005_v10 = vadd.f32 %v2004_v59, %v2003_v35  ;;  %v6419_v35 = vld [vmem:[#allocation120_spill] sm:$0xff]  ;;  %vm1893_vm13 = vcmp.eq.s32.totalorder %v5442_v8, %v6420_v32  ;;  %vm2042_vm7 = vcmask 1046534   ;;  %vm2044_vm10 = vcmask 1047559  }
 0xbb6   : > { %v1958_v42 = vsel %vm1894_vm5, %v1950_v46, 0.0  ;;  %v1999_v46 = vrot.slane %v1998_v9, 2  ;;  %v1986_v38 = vadd.f32 %v1985_v29, %v1984_v57  ;;  %vm2040_vm5 = vcmask 1045509  }
 0xbb7   : > { %v1966_v13 = vadd.f32 %v1958_v42, %v1830_v43  ;;  %v1973_v42 = vrot.slane %v1972_v52, 1 }
 0xbb8   : > { %v2000_v40 = vadd.f32 %v1999_v46, %v1998_v9  ;;  %v1987_v19 = vrot.slane %v1986_v38, 1 }
 0xbb9   : > { %v2017_v53 = vsel %vm1967_vm8, %v1966_v13, 0.0  ;;  %v1974_v34 = vadd.f32 %v1973_v42, %v1972_v52  ;;  %v6426_v42 = vld [vmem:[#allocation50_spill] sm:$0xff] }
 0xbba   : > { %v2018_v5 = vrot.slane %v2017_v53, 4 }
 0xbbb   : > { %2397 = vperm.xlu2 %4295, %v5342_v60   ;;  %2499 = vperm.xlu1 %4294, %v5363_v50  }
 0xbbc   : > { %3006 = vperm.xlu0 %4303, %v5326_v21   ;;  %v2019_v43 = vadd.f32 %v2018_v5, %v2017_v53 }
 0xbbd   : > { %v1908_v1 = vpop.permute.xlu1 %1907 }
 0xbbe   : > { %v1952_v20 = vsel %vm1888_vm4, %v1908_v1, 0.0  ;;  %v5524_v11 = vpop.permute.xlu0 %2129  ;;  %v1821_v1 = vsel %vm1757_vm12, %v5491_v2, 0.0  ;;  %v2020_v9 = vrot.slane %v2019_v43, 2  ;;  %vm2038_vm4 = vcmask 1044484  }
 0xbbf   : > { %v1960_v25 = vadd.f32 %v1952_v20, %v1824_v33  ;;  %v2006_v33 = vrot.slane %v2005_v10, 2  ;;  %v1693_v20 = vadd.f32 %v1685_v26, %v1557_v45 }
 0xbc0   : > { %v2021_v26 = vadd.f32 %v2020_v9, %v2019_v43  ;;  %v6431_v9 = vld [vmem:[#allocation132_spill] sm:$0xff] }
 0xbc1   : > { %v1975_v37 = vsel %vm1967_vm8, %v1960_v25, 0.0  ;;  %v1829_v31 = vadd.f32 %v1821_v1, %v1693_v20 }
 0xbc2   : > { %v1976_v48 = vrot.slane %v1975_v37, 4  ;;  %v2022_v1 = vrot.slane %v2021_v26, 1 }
 0xbc3   : > { %2403 = vperm.xlu2 %4295, %v6410_v27   ;;  %2505 = vperm.xlu1 %4294, %v6411_v55  }
 0xbc4   : > { %v1977_v24 = vadd.f32 %v1976_v48, %v1975_v37  ;;  %4315 = vset.pattern.permute.xlu0 %v6412_v18  ;;  %v2007_v37 = vadd.f32 %v2006_v33, %v2005_v10  ;;  %v1988_v10 = vadd.f32 %v1987_v19, %v1986_v38  ;;  %v6425_v38 = vld [vmem:[#allocation105_spill] sm:$0xff] }
 0xbc5   : > { %v5541_v28 = vpop.permute.xlu2 %2141  ;;  %v1922_v30 = vpop.permute.xlu1 %1921 }
 0xbc6   : > { %v1978_v41 = vrot.slane %v1977_v24, 2  ;;  %v1954_v56 = vsel %vm1890_vm9, %v1922_v30, 0.0  ;;  %v5546_v3 = vpop.permute.xlu0 %2159  ;;  %v2008_v6 = vrot.slane %v2007_v37, 1  ;;  %vm2117_vm9 = vcmp.eq.s32.totalorder %v5442_v8, %v6426_v42 }
 0xbc7   : > { %v1962_v47 = vadd.f32 %v1954_v56, %v1826_v4  ;;  %v6421_v56 = vld [vmem:[#allocation91_spill] sm:$0xff]  ;;  %v2173_v43 = vsel %vm2117_vm9, %v5524_v11, 0.0 }
 0xbc8   : > { %v1979_v23 = vadd.f32 %v1978_v41, %v1977_v24 }
 0xbc9   : > { %v1989_v58 = vsel %vm1967_vm8, %v1962_v47, 0.0  ;;  %v6423_v47 = vld [vmem:[#allocation114_spill] sm:$0xff] }
 0xbca   : > { %v1980_v61 = vrot.slane %v1979_v23, 1  ;;  %v1990_v63 = vrot.slane %v1989_v58, 4 }
 0xbcb   : > { %4297 = vset.pattern.permute.xlu2 %v5407_v36  ;;  %2511 = vperm.xlu1 %4294, %v6419_v35  }
 0xbcc   : > { %v1991_v25 = vadd.f32 %v1990_v63, %v1989_v58  ;;  %3377 = vperm.xlu0 %4315, %v5250_v17   ;;  %v1981_v51 = vadd.f32 %v1980_v61, %v1979_v23  ;;  %v2001_v17 = vrot.slane %v2000_v40, 1  ;;  %v2009_v23 = vadd.f32 %v2008_v6, %v2007_v37  ;;  %v6424_v63 = vld [vmem:[#allocation56_spill] sm:$0xff] }
 0xbcd   : > { %v5561_v7 = vpop.permute.xlu2 %2153  ;;  %v1943_v2 = vpop.permute.xlu1 %1942  ;;  %vm2229_vm6 = vcmp.eq.s32.totalorder %v5442_v8, %v6424_v63 }
 0xbce   : > { %v1992_v59 = vrot.slane %v1991_v25, 2  ;;  %v1957_v13 = vsel %vm1893_vm13, %v1943_v2, 0.0  ;;  %v2242_v48 = vpop.permute.xlu0 %2241  ;;  %v2033_v30 = vsel %vm2032_vm15, %v1981_v51, %v1974_v34  ;;  %v2002_v49 = vadd.f32 %v2001_v17, %v2000_v40  ;;  %v6427_v2 = vld [vmem:[#allocation93_spill] sm:$0xff]  ;;  %v6429_v34 = vld [vmem:[#allocation92_spill] sm:$0xff] }
 0xbcf   : > { %v1965_v57 = vadd.f32 %v1957_v13, %v1829_v31  ;;  %v2035_v52 = vsel %vm2034_vm2, %v1988_v10, %v2033_v30  ;;  %v2285_v20 = vsel %vm2229_vm6, %v2242_v48, 0.0  ;;  %v2023_v40 = vadd.f32 %v2022_v1, %v2021_v26  ;;  %v6430_v17 = vld [vmem:[#allocation101_spill] sm:$0xff]  ;;  %v6432_v30 = vld [vmem:[#allocation90_spill] sm:$0xff]  ;;  %v6434_v10 = vld [vmem:[#allocation40_spill] sm:$0xff] }
 0xbd0   : > { %v1993_v24 = vadd.f32 %v1992_v59, %v1991_v25  ;;  %vm2349_vm11 = vcmp.eq.s32.totalorder %v5442_v8, %v6427_v2  ;;  %v2293_v37 = vadd.f32 %v2285_v20, %v2173_v43  ;;  %vm2230_vm13 = vcmp.eq.s32.totalorder %v5442_v8, %v6434_v10  ;;  %v6441_v43 = vld [vmem:[#allocation106_spill] sm:$0xff]  ;;  %v6443_v2 = vld [vmem:[#allocation12_spill] sm:$0xff] }
 0xbd1   : > { %v2010_v4 = vsel %vm1967_vm8, %v1965_v57, 0.0  ;;  %v6428_v57 = vld [vmem:[#allocation111_spill] sm:$0xff] }
 0xbd2   : > { %v1994_v53 = vrot.slane %v1993_v24, 1  ;;  %v2011_v41 = vrot.slane %v2010_v4, 4 }
 0xbd3   : > { %2756 = vperm.xlu2 %4297, %v6421_v56   ;;  %2523 = vperm.xlu1 %4294, %v6422_v12  }
 0xbd4   : > { %v1995_v22 = vadd.f32 %v1994_v53, %v1993_v24  ;;  %v2012_v29 = vadd.f32 %v2011_v41, %v2010_v4  ;;  %3495 = vperm.xlu0 %4315, %v6423_v47   ;;  %v6433_v53 = vld [vmem:[#allocation36_spill] sm:$0xff] }
 0xbd5   : > { %v5571_v16 = vpop.permute.xlu2 %2171  ;;  %vm2118_vm12 = vcmp.eq.s32.totalorder %v5442_v8, %v6433_v53  ;;  %v6446_v53 = vld [vmem:[#allocation42_spill] sm:$0xff] }
 0xbd6   : > { %v2037_v14 = vsel %vm2036_vm3, %v1995_v22, %v2035_v52  ;;  %v2013_v45 = vrot.slane %v2012_v29, 2  ;;  %v5574_v46 = vpop.permute.xlu0 %2271  ;;  %v6435_v52 = vld [vmem:[#allocation96_spill] sm:$0xff] }
 0xbd7   : > { %v2039_v5 = vsel %vm2038_vm4, %v2002_v49, %v2037_v14 }
 0xbd8   : > { %v2014_v58 = vadd.f32 %v2013_v45, %v2012_v29  ;;  %v2041_v33 = vsel %vm2040_vm5, %v2009_v23, %v2039_v5  ;;  %v6436_v23 = vld [vmem:[#allocation38_spill] sm:$0xff]  ;;  %v6437_v45 = vld [vmem:[#allocation41_spill] sm:$0xff] }
 0xbd9   : > { %vm2120_vm6 = vcmp.eq.s32.totalorder %v5442_v8, %v6436_v23  ;;  %vm2232_vm9 = vcmp.eq.s32.totalorder %v5442_v8, %v6437_v45  ;;  %v6448_v45 = vld [vmem:[#allocation87_spill] sm:$0xff] }
 0xbda   : > { %v2015_v61 = vrot.slane %v2014_v58, 1 }
 0xbdb   : > { %2868 = vperm.xlu2 %4297, %v6425_v38   ;;  %4296 = vset.pattern.permute.xlu1 %v5407_v36 }
 0xbdc   : > { %v2016_v25 = vadd.f32 %v2015_v61, %v2014_v58  ;;  %4322 = vset.pattern.permute.xlu0 %v5407_v36  ;;  %v6438_v61 = vld [vmem:[#allocation117_spill] sm:$0xff] }
 0xbdd   : > { %v5586_v31 = vpop.permute.xlu2 %2253  ;;  %v2136_v32 = vpop.permute.xlu1 %2135 }
 0xbde   : > { %v2362_v51 = vpop.permute.xlu0 %2361  ;;  %v2043_v59 = vsel %vm2042_vm7, %v2016_v25, %v2041_v33  ;;  %v2174_v29 = vsel %vm2118_vm12, %v2136_v32, 0.0 }
 0xbdf   : > { %v2405_v13 = vsel %vm2349_vm11, %v2362_v51, 0.0  ;;  %v2045_v48 = vsel %vm2044_vm10, %v2023_v40, %v2043_v59  ;;  %v6440_v40 = vld [vmem:[#allocation53_spill] sm:$0xff]  ;;  %v6445_v59 = vld [vmem:[#allocation52_spill] sm:$0xff] }
 0xbe0   : > { %v2413_v19 = vadd.f32 %v2405_v13, %v2293_v37  ;;  %4144 = vmatmul.msk.f32.vlgmr.msra.gmra.mxu2 %vm1318_vm14, %v2045_v48  ;;  %vm2122_vm12 = vcmp.eq.s32.totalorder %v5442_v8, %v6440_v40  ;;  %v6444_v37 = vld [vmem:[#allocation97_spill] sm:$0xff] }
 0xbe1   : > { %v2178_v32 = vsel %vm2122_vm12, %v5546_v3, 0.0  ;;  %vm2355_vm12 = vcmp.eq.s32.totalorder %v5442_v8, %v6448_v45 }
 0xbe3   : > { %2982 = vperm.xlu2 %4297, %v6428_v57   ;;  %2750 = vperm.xlu1 %4296, %v6429_v34  }
 0xbe4   : > { %3024 = vperm.xlu0 %4322, %v6410_v27  }
 0xbe5   : > { %v5596_v11 = vpop.permute.xlu2 %2265  ;;  %v2148_v24 = vpop.permute.xlu1 %2147 }
 0xbe6   : > { %v2176_v58 = vsel %vm2120_vm6, %v2148_v24, 0.0  ;;  %v2518_v25 = vpop.permute.xlu0 %2517  ;;  %vm2469_vm6 = vcmp.eq.s32.totalorder %v5442_v8, %v6445_v59 }
 0xbeb   : > { %4301 = vset.pattern.permute.xlu2 %v6412_v18  ;;  %2862 = vperm.xlu1 %4296, %v6430_v17  }
 0xbec   : > { %3138 = vperm.xlu0 %4322, %v6431_v9  }
 0xbed   : > { %v5601_v4 = vpop.permute.xlu2 %2283  ;;  %v2166_v6 = vpop.permute.xlu1 %2165 }
 0xbf3   : > { %3465 = vperm.xlu2 %4301, %v6425_v38   ;;  %2762 = vperm.xlu1 %4296, %v6432_v30   ;;  %v6439_v38 = vld [vmem:[#allocation59_spill] sm:$0xff] }
 0xbf4   : > { %3144 = vperm.xlu0 %4322, %v6422_v12   ;;  %vm2234_vm11 = vcmp.eq.s32.totalorder %v5442_v8, %v6439_v38 }
 0xbf5   : > { %v5608_v41 = vpop.permute.xlu2 %2373  ;;  %v2248_v22 = vpop.permute.xlu1 %2247  ;;  %v2290_v42 = vsel %vm2234_vm11, %v5574_v46, 0.0 }
 0xbf6   : > { %v2286_v49 = vsel %vm2230_vm13, %v2248_v22, 0.0  ;;  %vm2354_vm13 = vcmp.eq.s32.totalorder %v5442_v8, %v6444_v37  ;;  %v2298_v51 = vadd.f32 %v2290_v42, %v2178_v32  ;;  %v5644_v3 = vpop.permute.xlu0 %2874  ;;  %v6447_v22 = vld [vmem:[#allocation39_spill] sm:$0xff]  ;;  %v6450_v42 = vld [vmem:[#allocation82_spill] sm:$0xff] }
 0xbf7   : > { %v2294_v26 = vadd.f32 %v2286_v49, %v2174_v29  ;;  %vm2123_vm11 = vcmp.eq.s32.totalorder %v5442_v8, %v6447_v22  ;;  %v6451_v37 = vld [vmem:[#allocation103_spill] sm:$0xff] }
 0xbf8   : > { %v2179_v29 = vsel %vm2123_vm11, %v2166_v6, 0.0 }
 0xbfb   : > { %3359 = vperm.xlu2 %4301, %v6432_v30   ;;  %2768 = vperm.xlu1 %4296, %v6435_v52  }
 0xbfc   : > { %4325 = vset.pattern.permute.xlu0 %v6412_v18 }
 0xbfd   : > { %v2482_v14 = vpop.permute.xlu2 %2481  ;;  %v2260_v5 = vpop.permute.xlu1 %2259 }
 0xbfe   : > { %v2288_v33 = vsel %vm2232_vm9, %v2260_v5, 0.0  ;;  %v2525_v48 = vsel %vm2469_vm6, %v2482_v14, 0.0  ;;  %vm2235_vm9 = vcmp.eq.s32.totalorder %v5442_v8, %v6446_v53  ;;  %vm2350_vm6 = vcmp.eq.s32.totalorder %v5442_v8, %v6450_v42  ;;  %v5661_v32 = vpop.permute.xlu0 %2880  ;;  %v6456_v42 = vld [vmem:[#allocation85_spill] sm:$0xff] }
 0xbff   : > { %v5619_v1 = vadd.f32 %v2288_v33, %v2176_v58  ;;  %v2533_v30 = vadd.f32 %v2525_v48, %v2413_v19  ;;  %v6449_v58 = vld [vmem:[#allocation121_spill] sm:$0xff] }
 0xc01   : > { %v2541_v49 = vsel %vm1967_vm8, %v2533_v30, 0.0  ;;  %v6453_v30 = vld [vmem:[#allocation15_spill] sm:$0xff] }
 0xc02   : > { %v2542_v38 = vrot.slane %v2541_v49, 4 }
 0xc03   : > { %4305 = vset.pattern.permute.xlu2 %v5407_v36  ;;  %2988 = vperm.xlu1 %4296, %v6438_v61  }
 0xc04   : > { %3729 = vperm.xlu0 %4325, %v6419_v35   ;;  %v2543_v40 = vadd.f32 %v2542_v38, %v2541_v49 }
 0xc05   : > { %v5624_v63 = vpop.permute.xlu2 %2385  ;;  %v2278_v20 = vpop.permute.xlu1 %2277 }
 0xc06   : > { %v2291_v10 = vsel %vm2235_vm9, %v2278_v20, 0.0  ;;  %vm2470_vm9 = vcmp.eq.s32.totalorder %v5442_v8, %v6451_v37 }
 0xc07   : > { %v2299_v23 = vadd.f32 %v2291_v10, %v2179_v29 }
 0xc0b   : > { %2892 = vperm.xlu2 %4305, %v6441_v43   ;;  %4300 = vset.pattern.permute.xlu1 %v6412_v18 }
 0xc0c   : > { %4332 = vrot.lane.b32.xlu0 %v6443_v2, %s6442_s7  ;;  %s6543_s7 = sld [smem:[#allocation150_spill]] }
 0xc0d   : > { %v2392_v46 = vpop.permute.xlu2 %2391  ;;  %v2368_v13 = vpop.permute.xlu1 %2367 }
 0xc0e   : > { %v2410_v34 = vsel %vm2354_vm13, %v2392_v46, 0.0  ;;  %vm2475_vm13 = vcmp.eq.s32.totalorder %v5442_v8, %v6449_v58  ;;  %v2406_v6 = vsel %vm2350_vm6, %v2368_v13, 0.0  ;;  %v6452_v46 = vld [vmem:[#allocation18_spill] sm:$0xff]  ;;  %v2544_v13 = vrot.slane %v2543_v40, 2  ;;  %v5677_v49 = vpop.permute.xlu0 %3347 }
 0xc0f   : > { %v5640_v24 = vadd.f32 %v2410_v34, %v2298_v51  ;;  %v2531_v20 = vsel %vm2475_vm13, %v2518_v25, 0.0  ;;  %v2414_v51 = vadd.f32 %v2406_v6, %v2294_v26  ;;  %vm2231_vm11 = vcmp.eq.s32.totalorder %v5442_v8, %v6452_v46 }
 0xc10   : > { %v2287_v34 = vsel %vm2231_vm11, %v5586_v31, 0.0  ;;  %v2545_v31 = vadd.f32 %v2544_v13, %v2543_v40  ;;  %v6458_v13 = vld [vmem:[#allocation108_spill] sm:$0xff] }
 0xc11   : > { %vm2472_vm11 = vcmp.eq.s32.totalorder %v5442_v8, %v6458_v13 }
 0xc13   : > { %3000 = vperm.xlu2 %4305, %v5328_v44   ;;  %3353 = vperm.xlu1 %4300, %v6421_v56  }
 0xc15   : > { %v2398_v14 = vpop.permute.xlu2 %2397  ;;  %v2380_v19 = vpop.permute.xlu1 %2379 }
 0xc16   : > { %v2411_v5 = vsel %vm2355_vm12, %v2398_v14, 0.0  ;;  %vm2119_vm12 = vcmp.eq.s32.totalorder %v5442_v8, %v6453_v30 }
 0xc17   : > { %v2419_v33 = vadd.f32 %v2411_v5, %v2299_v23  ;;  %v2175_v10 = vsel %vm2119_vm12, %v5541_v28, 0.0  ;;  %v6455_v5 = vld [vmem:[#allocation88_spill] sm:$0xff] }
 0xc18   : > { %v2295_v29 = vadd.f32 %v2287_v34, %v2175_v10  ;;  %vm2471_vm6 = vcmp.eq.s32.totalorder %v5442_v8, %v6455_v5 }
 0xc19   : > { %v5657_v56 = vadd.f32 %v2531_v20, %v2419_v33  ;;  %v2546_v20 = vrot.slane %v2545_v31, 1 }
 0xc1b   : > { %3108 = vperm.xlu2 %4305, %v5352_v62   ;;  %3459 = vperm.xlu1 %4300, %v6430_v17   ;;  %v6454_v17 = vld [vmem:[#allocation45_spill] sm:$0xff] }
 0xc1c   : > { %vm2351_vm13 = vcmp.eq.s32.totalorder %v5442_v8, %v6454_v17 }
 0xc1d   : > { %v2488_v59 = vpop.permute.xlu1 %2487  ;;  %v2407_v26 = vsel %vm2351_vm13, %v5608_v41, 0.0  ;;  %v5679_v45 = vpop.permute.xlu2 %2403 }
 0xc1e   : > { %v2526_v25 = vsel %vm2470_vm9, %v2488_v59, 0.0  ;;  %v2415_v14 = vadd.f32 %v2407_v26, %v2295_v29  ;;  %vm2352_vm9 = vcmp.eq.s32.totalorder %v5442_v8, %v6456_v42  ;;  %v6457_v59 = vld [vmem:[#allocation95_spill] sm:$0xff] }
 0xc1f   : > { %v2534_v48 = vadd.f32 %v2526_v25, %v2414_v51  ;;  %v2408_v40 = vsel %vm2352_vm9, %v2380_v19, 0.0  ;;  %v2547_v25 = vadd.f32 %v2546_v20, %v2545_v31  ;;  %v6462_v20 = vld [vmem:[#allocation109_spill] sm:$0xff] }
 0xc20   : > { %v2416_v30 = vadd.f32 %v2408_v40, %v5619_v1  ;;  %v6465_v40 = vld [vmem:[#allocation115_spill] sm:$0xff] }
 0xc21   : > { %v2548_v53 = vsel %vm1967_vm8, %v2534_v48, 0.0  ;;  %v5688_v48 = vpop.permute.xlu0 %2994 }
 0xc22   : > { %v2549_v22 = vrot.slane %v2548_v53, 4 }
 0xc23   : > { %4307 = vset.pattern.permute.xlu2 %v6412_v18  ;;  %4302 = vset.pattern.permute.xlu1 %v5407_v36 }
 0xc24   : > { %v2550_v23 = vadd.f32 %v2549_v22, %v2548_v53  ;;  %v6459_v22 = vld [vmem:[#allocation19_spill] sm:$0xff] }
 0xc25   : > { %v2494_v58 = vpop.permute.xlu1 %2493  ;;  %vm2233_vm12 = vcmp.eq.s32.totalorder %v5442_v8, %v6459_v22 }
 0xc26   : > { %v2551_v28 = vrot.slane %v2550_v23, 2  ;;  %v2527_v33 = vsel %vm2471_vm6, %v2494_v58, 0.0  ;;  %v2289_v29 = vsel %vm2233_vm12, %v5596_v11, 0.0  ;;  %vm2473_vm12 = vcmp.eq.s32.totalorder %v5442_v8, %v6465_v40 }
 0xc27   : > { %v2535_v41 = vadd.f32 %v2527_v33, %v2415_v14  ;;  %v6461_v14 = vld [vmem:[#allocation47_spill] sm:$0xff] }
 0xc28   : > { %v2552_v38 = vadd.f32 %v2551_v28, %v2550_v23  ;;  %v6460_v23 = vld [vmem:[#allocation16_spill] sm:$0xff]  ;;  %vm2353_vm6 = vcmp.eq.s32.totalorder %v5442_v8, %v6461_v14 }
 0xc29   : > { %v2555_v6 = vsel %vm1967_vm8, %v2535_v41, 0.0  ;;  %vm2121_vm13 = vcmp.eq.s32.totalorder %v5442_v8, %v6460_v23  ;;  %v2409_v58 = vsel %vm2353_vm6, %v5624_v63, 0.0  ;;  %v2583_v63 = vsel %vm1967_vm8, %v5657_v56, 0.0 }
 0xc2a   : > { %v2553_v37 = vrot.slane %v2552_v38, 1  ;;  %v2556_v51 = vrot.slane %v2555_v6, 4  ;;  %v2177_v5 = vsel %vm2121_vm13, %v5561_v7, 0.0  ;;  %v2584_v22 = vrot.slane %v2583_v63, 4 }
 0xc2b   : > { %3365 = vperm.xlu2 %4307, %v6435_v52   ;;  %2774 = vperm.xlu1 %4302, %v6457_v59   ;;  %v2297_v41 = vadd.f32 %v2289_v29, %v2177_v5 }
 0xc2c   : > { %v2554_v46 = vadd.f32 %v2553_v37, %v2552_v38  ;;  %v2557_v34 = vadd.f32 %v2556_v51, %v2555_v6  ;;  %v6463_v38 = vld [vmem:[#allocation21_spill] sm:$0xff]  ;;  %v6464_v6 = vld [vmem:[#allocation44_spill] sm:$0xff]  ;;  %v2585_v23 = vadd.f32 %v2584_v22, %v2583_v63 }
 0xc2d   : > { %v2757_v17 = vpop.permute.xlu2 %2756  ;;  %v2500_v53 = vpop.permute.xlu1 %2499  ;;  %vm2739_vm9 = vcmp.eq.s32.totalorder %v5442_v8, %v6463_v38  ;;  %v2417_v7 = vadd.f32 %v2409_v58, %v2297_v41  ;;  %v2068_v41 = vld [vmem:[%s6174_s12] sm:$0xff] }
 0xc2e   : > { %v2605_v19 = vsel %vm2032_vm15, %v2554_v46, %v2547_v25  ;;  %v2558_v10 = vrot.slane %v2557_v34, 2  ;;  %v2528_v26 = vsel %vm2472_vm11, %v2500_v53, 0.0  ;;  %vm2851_vm11 = vcmp.eq.s32.totalorder %v5442_v8, %v6464_v6  ;;  %v5715_v46 = vpop.permute.xlu0 %2780  ;;  %2685 = vmatpush.msrb.mxu2 %v2068_v41  ;;  %v6468_v6 = vld [vmem:[#allocation17_spill] sm:$0xff] }
 0xc2f   : > { %v2536_v52 = vadd.f32 %v2528_v26, %v2416_v30  ;;  %v2795_v37 = vsel %vm2739_vm9, %v2757_v17, 0.0  ;;  %vm2124_vm9 = vcmp.eq.s32.totalorder %v5442_v8, %v6468_v6  ;;  %v2586_v40 = vrot.slane %v2585_v23, 2 }
 0xc30   : > { %v2559_v31 = vadd.f32 %v2558_v10, %v2557_v34 }
 0xc31   : > { %v2562_v1 = vsel %vm1967_vm8, %v2536_v52, 0.0 }
 0xc32   : > { %v2560_v28 = vrot.slane %v2559_v31, 1  ;;  %v2563_v33 = vrot.slane %v2562_v1, 4 }
 0xc33   : > { %3585 = vperm.xlu2 %4307, %v6438_v61   ;;  %2886 = vperm.xlu1 %4302, %v6462_v20  }
 0xc34   : > { %v2561_v11 = vadd.f32 %v2560_v28, %v2559_v31  ;;  %v2564_v42 = vadd.f32 %v2563_v33, %v2562_v1  ;;  %v6467_v28 = vld [vmem:[#allocation20_spill] sm:$0xff] }
 0xc35   : > { %v2869_v51 = vpop.permute.xlu2 %2868  ;;  %v2506_v61 = vpop.permute.xlu1 %2505  ;;  %vm2236_vm6 = vcmp.eq.s32.totalorder %v5442_v8, %v6467_v28 }
 0xc36   : > { %v2606_v25 = vsel %vm2034_vm2, %v2561_v11, %v2605_v19  ;;  %v2565_v34 = vrot.slane %v2564_v42, 2  ;;  %v2907_v13 = vsel %vm2851_vm11, %v2869_v51, 0.0  ;;  %v2529_v30 = vsel %vm2473_vm12, %v2506_v61, 0.0  ;;  %v6466_v19 = vld [vmem:[#allocation118_spill] sm:$0xff]  ;;  %v5732_v38 = vpop.permute.xlu0 %3006 }
 0xc37   : > { %v5717_v53 = vadd.f32 %v2907_v13, %v2795_v37  ;;  %v2537_v10 = vadd.f32 %v2529_v30, %v2417_v7  ;;  %vm2474_vm13 = vcmp.eq.s32.totalorder %v5442_v8, %v6466_v19  ;;  %v2292_v11 = vsel %vm2236_vm6, %v5601_v4, 0.0  ;;  %v6469_v7 = vld [vmem:[#allocation49_spill] sm:$0xff] }
 0xc38   : > { %v2566_v26 = vadd.f32 %v2565_v34, %v2564_v42  ;;  %vm2356_vm11 = vcmp.eq.s32.totalorder %v5442_v8, %v6469_v7  ;;  %v2587_v30 = vadd.f32 %v2586_v40, %v2585_v23 }
 0xc39   : > { %v2569_v52 = vsel %vm1967_vm8, %v2537_v10, 0.0  ;;  %v2412_v37 = vsel %vm2356_vm11, %v5679_v45, 0.0 }
 0xc3a   : > { %v2567_v29 = vrot.slane %v2566_v26, 1  ;;  %v2570_v31 = vrot.slane %v2569_v52, 4 }
 0xc3b   : > { %4310 = vset.pattern.permute.xlu2 %v5407_v36  ;;  %4304 = vset.pattern.permute.xlu1 %v6412_v18 }
 0xc3c   : > { %v2568_v56 = vadd.f32 %v2567_v29, %v2566_v26  ;;  %v2571_v17 = vadd.f32 %v2570_v31, %v2569_v52  ;;  %v6471_v26 = vld [vmem:[#allocation55_spill] sm:$0xff] }
 0xc3d   : > { %v2512_v14 = vpop.permute.xlu1 %2511  ;;  %vm2476_vm12 = vcmp.eq.s32.totalorder %v5442_v8, %v6471_v26 }
 0xc3e   : > { %v2607_v1 = vsel %vm2036_vm3, %v2568_v56, %v2606_v25  ;;  %v2572_v5 = vrot.slane %v2571_v17, 2  ;;  %v2530_v58 = vsel %vm2474_vm13, %v2512_v14, 0.0  ;;  %v6470_v25 = vld [vmem:[#allocation104_spill] sm:$0xff]  ;;  %v5746_v56 = vpop.permute.xlu0 %3377 }
 0xc3f   : > { %v2538_v33 = vadd.f32 %v2530_v58, %v5640_v24  ;;  %v2180_v24 = vsel %vm2124_vm9, %v5571_v16, 0.0  ;;  %v2983_v58 = vpop.permute.xlu2 %2982 }
 0xc40   : > { %v2573_v42 = vadd.f32 %v2572_v5, %v2571_v17  ;;  %v2300_v4 = vadd.f32 %v2292_v11, %v2180_v24  ;;  %v2588_v17 = vrot.slane %v2587_v30, 1 }
 0xc41   : > { %v2576_v63 = vsel %vm1967_vm8, %v2538_v33, 0.0 }
 0xc42   : > { %v2574_v51 = vrot.slane %v2573_v42, 1  ;;  %v2577_v61 = vrot.slane %v2576_v63, 4  ;;  %v2420_v10 = vadd.f32 %v2412_v37, %v2300_v4  ;;  %v2589_v33 = vadd.f32 %v2588_v17, %v2587_v30  ;;  %v6472_v4 = vld [vmem:[#allocation43_spill] sm:$0xff]  ;;  %v6474_v30 = vld [vmem:[#allocation89_spill] sm:$0xff]  ;;  %v6478_v17 = vld [vmem:[#allocation72_spill] sm:$0xff] }
 0xc43   : > { %3114 = vperm.xlu2 %4310, %v5350_v0   ;;  %3471 = vperm.xlu1 %4304, %v6470_v25   ;;  %vm2738_vm13 = vcmp.eq.s32.totalorder %v5442_v8, %v6472_v4  ;;  %v6473_v25 = vld [vmem:[#allocation62_spill] sm:$0xff]  ;;  %vm2970_vm9 = vcmp.eq.s32.totalorder %v5442_v8, %v6474_v30  ;;  %v6483_v4 = vld [vmem:[#allocation67_spill] sm:$0xff] }
 0xc44   : > { %v2575_v34 = vadd.f32 %v2574_v51, %v2573_v42  ;;  %v2578_v13 = vadd.f32 %v2577_v61, %v2576_v63  ;;  %vm2850_vm6 = vcmp.eq.s32.totalorder %v5442_v8, %v6473_v25  ;;  %v3026_v26 = vsel %vm2970_vm9, %v2983_v58, 0.0 }
 0xc45   : > { %v2524_v22 = vpop.permute.xlu1 %2523 }
 0xc46   : > { %v2579_v52 = vrot.slane %v2578_v13, 2  ;;  %v2532_v29 = vsel %vm2476_vm12, %v2524_v22, 0.0  ;;  %v2608_v16 = vsel %vm2038_vm4, %v2575_v34, %v2607_v1  ;;  %v5753_v40 = vpop.permute.xlu0 %3495  ;;  %vm2743_vm12 = vcmp.eq.s32.totalorder %v5442_v8, %v6478_v17 }
 0xc47   : > { %v2540_v45 = vadd.f32 %v2532_v29, %v2420_v10  ;;  %v6476_v29 = vld [vmem:[#allocation110_spill] sm:$0xff] }
 0xc48   : > { %v2580_v31 = vadd.f32 %v2579_v52, %v2578_v13  ;;  %v6475_v52 = vld [vmem:[#allocation113_spill] sm:$0xff] }
 0xc49   : > { %v2590_v19 = vsel %vm1967_vm8, %v2540_v45, 0.0 }
 0xc4a   : > { %v2581_v14 = vrot.slane %v2580_v31, 1  ;;  %v2591_v5 = vrot.slane %v2590_v19, 4 }
 0xc4b   : > { %4311 = vset.pattern.permute.xlu2 %v6412_v18  ;;  %4306 = vset.pattern.permute.xlu1 %v5407_v36 }
 0xc4c   : > { %v2582_v23 = vadd.f32 %v2581_v14, %v2580_v31  ;;  %v2592_v28 = vadd.f32 %v2591_v5, %v2590_v19  ;;  %v6477_v31 = vld [vmem:[#allocation65_spill] sm:$0xff]  ;;  %v6480_v5 = vld [vmem:[#allocation22_spill] sm:$0xff] }
 0xc4d   : > { %v5755_v7 = vpop.permute.xlu2 %3465  ;;  %vm2852_vm11 = vcmp.eq.s32.totalorder %v5442_v8, %v6477_v31  ;;  %v6479_v19 = vld [vmem:[#allocation29_spill] sm:$0xff]  ;;  %v6486_v31 = vld [vmem:[#allocation64_spill] sm:$0xff] }
 0xc4e   : > { %v2593_v41 = vrot.slane %v2592_v28, 2  ;;  %v2609_v1 = vsel %vm2040_vm5, %v2582_v23, %v2608_v16  ;;  %v4146_v23 = vld [vmem:[%s6174_s12 + $0x8] sm:$0xff] }
 0xc4f   : > { %v2610_v11 = vsel %vm2042_vm7, %v2589_v33, %v2609_v1  ;;  %v2799_v33 = vsel %vm2743_vm12, %v5715_v46, 0.0  ;;  %2662 = vmatpush.msrb.mxu0 %v4146_v23  ;;  %vm2741_vm12 = vcmp.eq.s32.totalorder %v5442_v8, %v6483_v4 }
 0xc50   : > { %v2594_v42 = vadd.f32 %v2593_v41, %v2592_v28  ;;  %v2908_v28 = vsel %vm2852_vm11, %v5644_v3, 0.0 }
 0xc52   : > { %v2595_v6 = vrot.slane %v2594_v42, 1 }
 0xc53   : > { %3371 = vperm.xlu2 %4311, %v6457_v59   ;;  %3102 = vperm.xlu1 %4306, %v5317_v39  }
 0xc54   : > { %v2596_v63 = vadd.f32 %v2595_v6, %v2594_v42 }
 0xc55   : > { %v2751_v24 = vpop.permute.xlu1 %2750  ;;  %v5765_v61 = vpop.permute.xlu2 %3359 }
 0xc56   : > { %v2611_v37 = vsel %vm2044_vm10, %v2596_v63, %v2610_v11  ;;  %v5761_v51 = vpop.permute.xlu0 %3024  ;;  %v2794_v34 = vsel %vm2738_vm13, %v2751_v24, 0.0  ;;  %vm2855_vm13 = vcmp.eq.s32.totalorder %v5442_v8, %v6479_v19  ;;  %v6481_v11 = vld [vmem:[#allocation94_spill] sm:$0xff] }
 0xc57   : > { %4145 = vmatmul.msk.f32.vlgmr.msra.gmra.mxu1 %vm1318_vm14, %v2611_v37  ;;  %vm2972_vm9 = vcmp.eq.s32.totalorder %v5442_v8, %v6481_v11  ;;  %v6482_v37 = vld [vmem:[#allocation23_spill] sm:$0xff] }
 0xc58   : > { %v3028_v63 = vsel %vm2972_vm9, %v5688_v48, 0.0  ;;  %vm2853_vm11 = vcmp.eq.s32.totalorder %v5442_v8, %v6482_v37  ;;  %vm3091_vm9 = vcmp.eq.s32.totalorder %v5442_v8, %v6486_v31  ;;  %v6492_v37 = vld [vmem:[#allocation69_spill] sm:$0xff] }
 0xc5b   : > { %4314 = vset.pattern.permute.xlu2 %v5407_v36  ;;  %4308 = vset.pattern.permute.xlu1 %v6412_v18 }
 0xc5d   : > { %v2863_v59 = vpop.permute.xlu1 %2862 }
 0xc5e   : > { %v2906_v13 = vsel %vm2850_vm6, %v2863_v59, 0.0  ;;  %v5777_v45 = vpop.permute.xlu0 %3138  ;;  %vm2740_vm6 = vcmp.eq.s32.totalorder %v5442_v8, %v6480_v5  ;;  %v2909_v59 = vsel %vm2853_vm11, %v5661_v32, 0.0 }
 0xc5f   : > { %v2914_v10 = vadd.f32 %v2906_v13, %v2794_v34  ;;  %v6484_v13 = vld [vmem:[#allocation61_spill] sm:$0xff] }
 0xc61   : > { %v5773_v22 = vadd.f32 %v3026_v26, %v2914_v10  ;;  %v6485_v26 = vld [vmem:[#allocation58_spill] sm:$0xff] }
 0xc63   : > { %2904 = vperm.xlu2 %4314, %v6475_v52   ;;  %3477 = vperm.xlu1 %4308, %v6476_v29   ;;  %v2065_v16 = vpop.f32.mrf.mxu2 }
 0xc64   : > { %4148 = vmatmul.msk.f32.vlgmr.msrb.gmra.mxu2 %vm764_vm1, %v2065_v16 }
 0xc65   : > { %v2893_v14 = vpop.permute.xlu2 %2892  ;;  %v2763_v58 = vpop.permute.xlu1 %2762 }
 0xc66   : > { %v2911_v41 = vsel %vm2855_vm13, %v2893_v14, 0.0  ;;  %v2796_v1 = vsel %vm2740_vm6, %v2763_v58, 0.0  ;;  %v5805_v25 = vpop.permute.xlu0 %3144  ;;  %vm2973_vm13 = vcmp.eq.s32.totalorder %v5442_v8, %v6484_v13  ;;  %vm2971_vm6 = vcmp.eq.s32.totalorder %v5442_v8, %v6485_v26  ;;  %v6495_v26 = vld [vmem:[#allocation26_spill] sm:$0xff] }
 0xc67   : > { %v5795_v42 = vadd.f32 %v2911_v41, %v2799_v33  ;;  %v2916_v6 = vadd.f32 %v2908_v28, %v2796_v1  ;;  %v6488_v28 = vld [vmem:[#allocation48_spill] sm:$0xff] }
 0xc68   : > { %vm3448_vm11 = vcmp.eq.s32.totalorder %v5442_v8, %v6488_v28 }
 0xc69   : > { %v3036_v24 = vadd.f32 %v3028_v63, %v2916_v6  ;;  %v3504_v41 = vsel %vm3448_vm11, %v5755_v7, 0.0  ;;  %v6491_v6 = vld [vmem:[#allocation102_spill] sm:$0xff] }
 0xc6b   : > { %4316 = vset.pattern.permute.xlu2 %v6412_v18  ;;  %3579 = vperm.xlu1 %4308, %v6428_v57  }
 0xc6d   : > { %v3001_v3 = vpop.permute.xlu2 %3000  ;;  %v2769_v46 = vpop.permute.xlu1 %2768 }
 0xc6e   : > { %v2797_v34 = vsel %vm2741_vm12, %v2769_v46, 0.0  ;;  %v3029_v30 = vsel %vm2973_vm13, %v3001_v3, 0.0 }
 0xc6f   : > { %v2917_v48 = vadd.f32 %v2909_v59, %v2797_v34  ;;  %v6493_v34 = vld [vmem:[#allocation124_spill] sm:$0xff] }
 0xc70   : > { %vm3092_vm11 = vcmp.eq.s32.totalorder %v5442_v8, %v6493_v34 }
 0xc71   : > { %v5809_v10 = vadd.f32 %v3029_v30, %v2917_v48 }
 0xc73   : > { %3489 = vperm.xlu2 %4316, %v6441_v43   ;;  %4309 = vset.pattern.permute.xlu1 %v5407_v36  ;;  %v6487_v43 = vld [vmem:[#allocation100_spill] sm:$0xff] }
 0xc75   : > { %v3109_v57 = vpop.permute.xlu2 %3108  ;;  %v2989_v29 = vpop.permute.xlu1 %2988 }
 0xc76   : > { %v3027_v32 = vsel %vm2971_vm6, %v2989_v29, 0.0  ;;  %v5815_v16 = vpop.permute.xlu0 %3729  ;;  %v3147_v19 = vsel %vm3091_vm9, %v3109_v57, 0.0  ;;  %vm3568_vm6 = vcmp.eq.s32.totalorder %v5442_v8, %v6491_v6  ;;  %vm3447_vm9 = vcmp.eq.s32.totalorder %v5442_v8, %v6492_v37  ;;  %v6494_v57 = vld [vmem:[#allocation25_spill] sm:$0xff] }
 0xc77   : > { %v3035_v17 = vadd.f32 %v3027_v32, %v5717_v53  ;;  %v6489_v53 = vld [vmem:[#allocation24_spill] sm:$0xff]  ;;  %v6496_v32 = vld [vmem:[#allocation107_spill] sm:$0xff] }
 0xc78   : > { %vm3336_vm12 = vcmp.eq.s32.totalorder %v5442_v8, %v6489_v53 }
 0xc79   : > { %v3155_v14 = vadd.f32 %v3147_v19, %v3035_v17  ;;  %v6498_v19 = vld [vmem:[#allocation27_spill] sm:$0xff] }
 0xc7b   : > { %3597 = vperm.xlu2 %4316, %v5328_v44   ;;  %2786 = vperm.xlu1 %4309, %v6487_v43  }
 0xc7e   : > { %v4333_v5 = vpop.permute.xlu0 %4332 }
 0xc7f   : > { %v4334_v58 = vunpack.i.l.bf16 %v4333_v5  ;;  %v4335_v23 = vunpack.i.h.bf16 %v4333_v5  ;;  %v6499_v5 = vld [vmem:[#allocation28_spill] sm:$0xff] }
 0xc81   : > { %3852 = vmatpush.msra.mxu0 %v4334_v58 }
 0xc83   : > { %3853 = vmatpush.msra.mxu0 %v4335_v23  ;;  %3705 = vperm.xlu2 %4316, %v5352_v62   ;;  %v6490_v62 = vld [vmem:[#allocation46_spill] sm:$0xff] }
 0xc84   : > { %2898 = vperm.xlu1 %4309, %v6423_v47   ;;  %vm3335_vm13 = vcmp.eq.s32.totalorder %v5442_v8, %v6490_v62 }
 0xc85   : > { %v5826_v33 = vpop.permute.xlu2 %3365  ;;  %v3354_v44 = vpop.permute.xlu1 %3353  ;;  %v3391_v3 = vsel %vm3335_vm13, %v5677_v49, 0.0  ;;  %vm2854_vm13 = vcmp.eq.s32.totalorder %v5442_v8, %v6495_v26 }
 0xc86   : > { %v3392_v1 = vsel %vm3336_vm12, %v3354_v44, 0.0  ;;  %vm2742_vm12 = vcmp.eq.s32.totalorder %v5442_v8, %v6494_v57 }
 0xc87   : > { %v3512_v11 = vadd.f32 %v3504_v41, %v3392_v1 }
 0xc8b   : > { %4318 = vset.pattern.permute.xlu2 %v5407_v36 }
 0xc8c   : > { %4312 = vset.pattern.permute.xlu1 %v6412_v18 }
 0xc8d   : > { %v3586_v47 = vpop.permute.xlu2 %3585  ;;  %v3460_v63 = vpop.permute.xlu1 %3459 }
 0xc8e   : > { %v3624_v7 = vsel %vm3568_vm6, %v3586_v47, 0.0  ;;  %v3503_v46 = vsel %vm3447_vm9, %v3460_v63, 0.0  ;;  %vm2974_vm6 = vcmp.eq.s32.totalorder %v5442_v8, %v6496_v32  ;;  %vm3337_vm9 = vcmp.eq.s32.totalorder %v5442_v8, %v6498_v19  ;;  %v6500_v47 = vld [vmem:[#allocation98_spill] sm:$0xff] }
 0xc8f   : > { %v5840_v4 = vadd.f32 %v3624_v7, %v3512_v11  ;;  %v5842_v59 = vadd.f32 %v3503_v46, %v3391_v3  ;;  %v3030_v17 = vsel %vm2974_vm6, %v5732_v38, 0.0  ;;  %v3393_v23 = vsel %vm3337_vm9, %v5765_v61, 0.0  ;;  %v6503_v19 = vld [vmem:[#allocation74_spill] sm:$0xff] }
 0xc90   : > { %vm3450_vm9 = vcmp.eq.s32.totalorder %v5442_v8, %v6503_v19 }
 0xc93   : > { %3018 = vperm.xlu2 %4318, %v5342_v60  }
 0xc94   : > { %3483 = vperm.xlu1 %4312, %v6462_v20  }
 0xc9b   : > { %4321 = vset.pattern.permute.xlu2 %v6412_v18 }
 0xc9c   : > { %3591 = vperm.xlu1 %4312, %v5313_v15  }
 0xc9d   : > { %v3115_v13 = vpop.permute.xlu2 %3114  ;;  %v2775_v48 = vpop.permute.xlu1 %2774 }
 0xc9e   : > { %v3148_v49 = vsel %vm3092_vm11, %v3115_v13, 0.0  ;;  %v2798_v29 = vsel %vm2742_vm12, %v2775_v48, 0.0  ;;  %vm3449_vm11 = vcmp.eq.s32.totalorder %v5442_v8, %v6499_v5  ;;  %vm3090_vm12 = vcmp.eq.s32.totalorder %v5442_v8, %v6500_v47  ;;  %v6501_v13 = vld [vmem:[#allocation83_spill] sm:$0xff]  ;;  %v6502_v48 = vld [vmem:[#allocation60_spill] sm:$0xff]  ;;  %v6507_v47 = vld [vmem:[#allocation66_spill] sm:$0xff] }
 0xc9f   : > { %v3156_v30 = vadd.f32 %v3148_v49, %v3036_v24  ;;  %vm3340_vm6 = vcmp.eq.s32.totalorder %v5442_v8, %v6502_v48  ;;  %v6504_v5 = vld [vmem:[#allocation51_spill] sm:$0xff] }
 0xca1   : > { %v3176_v44 = vsel %vm1967_vm8, %v3156_v30, 0.0 }
 0xca2   : > { %v3177_v1 = vrot.slane %v3176_v44, 4 }
 0xca3   : > { %3603 = vperm.xlu2 %4321, %v5326_v21   ;;  %v6497_v21 = vld [vmem:[#allocation99_spill] sm:$0xff] }
 0xca4   : > { %4313 = vset.pattern.permute.xlu1 %v5407_v36  ;;  %v3178_v61 = vadd.f32 %v3177_v1, %v3176_v44  ;;  %v6505_v44 = vld [vmem:[#allocation73_spill] sm:$0xff] }
 0xca5   : > { %v2887_v20 = vpop.permute.xlu1 %2886 }
 0xca6   : > { %v2910_v15 = vsel %vm2854_vm13, %v2887_v20, 0.0  ;;  %v3179_v37 = vrot.slane %v3178_v61, 2  ;;  %vm3452_vm13 = vcmp.eq.s32.totalorder %v5442_v8, %v6501_v13  ;;  %v6512_v13 = vld [vmem:[#allocation127_spill] sm:$0xff] }
 0xca7   : > { %v2918_v31 = vadd.f32 %v2910_v15, %v2798_v29 }
 0xca8   : > { %v3180_v49 = vadd.f32 %v3179_v37, %v3178_v61  ;;  %v6506_v61 = vld [vmem:[#allocation126_spill] sm:$0xff] }
 0xca9   : > { %v5859_v24 = vadd.f32 %v3030_v17, %v2918_v31 }
 0xcaa   : > { %v3181_v15 = vrot.slane %v3180_v49, 1 }
 0xcab   : > { %3711 = vperm.xlu2 %4321, %v5350_v0   ;;  %v3169_v0 = vsel %vm1967_vm8, %v3155_v14, 0.0 }
 0xcac   : > { %2792 = vperm.xlu1 %4313, %v6497_v21   ;;  %v3170_v41 = vrot.slane %v3169_v0, 4 }
 0xcad   : > { %v5875_v53 = vpop.permute.xlu2 %3371 }
 0xcae   : > { %v3171_v11 = vadd.f32 %v3170_v41, %v3169_v0 }
 0xcb0   : > { %v3172_v63 = vrot.slane %v3171_v11, 2 }
 0xcb2   : > { %v3173_v46 = vadd.f32 %v3172_v63, %v3171_v11 }
 0xcb3   : > { %4323 = vset.pattern.permute.xlu2 %v5407_v36 }
 0xcb4   : > { %3012 = vperm.xlu1 %4313, %v5305_v54   ;;  %v3174_v29 = vrot.slane %v3173_v46, 1 }
 0xcb5   : > { %v3472_v58 = vpop.permute.xlu1 %3471 }
 0xcb6   : > { %v3505_v38 = vsel %vm3449_vm11, %v3472_v58, 0.0  ;;  %vm3338_vm11 = vcmp.eq.s32.totalorder %v5442_v8, %v6504_v5 }
 0xcb7   : > { %v5870_v28 = vadd.f32 %v3505_v38, %v3393_v23  ;;  %v3394_v38 = vsel %vm3338_vm11, %v5826_v33, 0.0 }
 0xcbb   : > { %3132 = vperm.xlu2 %4323, %v6419_v35  }
 0xcbc   : > { %3120 = vperm.xlu1 %4313, %v5363_v50  }
 0xcbd   : > { %v5880_v62 = vpop.permute.xlu2 %2904 }
 0xcc3   : > { %4324 = vset.pattern.permute.xlu2 %v6412_v18 }
 0xcc4   : > { %4317 = vset.pattern.permute.xlu1 %v6412_v18 }
 0xcc5   : > { %v3103_v35 = vpop.permute.xlu1 %3102 }
 0xcc6   : > { %v3146_v6 = vsel %vm3090_vm12, %v3103_v35, 0.0  ;;  %vm3570_vm12 = vcmp.eq.s32.totalorder %v5442_v8, %v6505_v44 }
 0xcc7   : > { %v3154_v14 = vadd.f32 %v3146_v6, %v5773_v22  ;;  %v3396_v22 = vsel %vm3340_vm6, %v5746_v56, 0.0  ;;  %v3182_v56 = vadd.f32 %v3181_v15, %v3180_v49  ;;  %vm3567_vm6 = vcmp.eq.s32.totalorder %v5442_v8, %v6507_v47  ;;  %v6522_v47 = vld [vmem:[#allocation71_spill] sm:$0xff] }
 0xcc9   : > { %v3162_v3 = vsel %vm1967_vm8, %v3154_v14, 0.0 }
 0xcca   : > { %v3163_v7 = vrot.slane %v3162_v3, 4 }
 0xccb   : > { %3501 = vperm.xlu2 %4324, %v6475_v52  }
 0xccc   : > { %v3164_v34 = vadd.f32 %v3163_v7, %v3162_v3  ;;  %3699 = vperm.xlu1 %4317, %v5317_v39   ;;  %v3175_v39 = vadd.f32 %v3174_v29, %v3173_v46 }
 0xccd   : > { %v3490_v30 = vpop.permute.xlu2 %3489 }
 0xcce   : > { %v3165_v57 = vrot.slane %v3164_v34, 2  ;;  %v3508_v26 = vsel %vm3452_vm13, %v3490_v30, 0.0  ;;  %vm3688_vm13 = vcmp.eq.s32.totalorder %v5442_v8, %v6506_v61  ;;  %v6513_v30 = vld [vmem:[#allocation133_spill] sm:$0xff] }
 0xccf   : > { %v5893_v20 = vadd.f32 %v3508_v26, %v3396_v22  ;;  %v6515_v26 = vld [vmem:[#allocation57_spill] sm:$0xff] }
 0xcd0   : > { %v3166_v52 = vadd.f32 %v3165_v57, %v3164_v34  ;;  %v6514_v57 = vld [vmem:[#allocation77_spill] sm:$0xff] }
 0xcd2   : > { %v3167_v32 = vrot.slane %v3166_v52, 1 }
 0xcd3   : > { %3615 = vperm.xlu2 %4324, %v5342_v60  }
 0xcd4   : > { %v3168_v31 = vadd.f32 %v3167_v32, %v3166_v52  ;;  %4319 = vset.pattern.permute.xlu1 %v5407_v36  ;;  %v2639_v17 = vpop.f32.mrf.mxu1  ;;  %v6516_v32 = vld [vmem:[#allocation116_spill] sm:$0xff] }
 0xcd5   : > { %v3598_v58 = vpop.permute.xlu2 %3597  ;;  %v3478_v23 = vpop.permute.xlu1 %3477  ;;  %4147 = vmatmul.msk.f32.vlgmr.msrb.gmra.mxu0 %vm764_vm1, %v2639_v17 }
 0xcd6   : > { %v3226_v60 = vsel %vm2032_vm15, %v3175_v39, %v3168_v31  ;;  %v3506_v0 = vsel %vm3450_vm9, %v3478_v23, 0.0  ;;  %v3626_v1 = vsel %vm3570_vm12, %v3598_v58, 0.0  ;;  %v6517_v31 = vld [vmem:[#allocation68_spill] sm:$0xff] }
 0xcd7   : > { %v3514_v36 = vadd.f32 %v3506_v0, %v3394_v38  ;;  %v5907_v41 = vsel %vm2034_vm2, %v3182_v56, %v3226_v60  ;;  %v6518_v58 = vld [vmem:[#allocation80_spill] sm:$0xff]  ;;  %v6520_v0 = vld [vmem:[#allocation119_spill] sm:$0xff] }
 0xcd8   : > { %v6519_v23 = vld [vmem:[#allocation32_spill] sm:$0xff] }
 0xcd9   : > { %v5909_v11 = vadd.f32 %v3626_v1, %v3514_v36  ;;  %v6521_v36 = vld [vmem:[#allocation84_spill] sm:$0xff] }
 0xcdb   : > { %3723 = vperm.xlu2 %4324, %v6411_v55  }
 0xcdc   : > { %3126 = vperm.xlu1 %4319, %v6411_v55   ;;  %v6509_v55 = vld [vmem:[#allocation129_spill] sm:$0xff] }
 0xcdd   : > { %v3706_v33 = vpop.permute.xlu2 %3705  ;;  %v3580_v35 = vpop.permute.xlu1 %3579  ;;  %vm2976_vm9 = vcmp.eq.s32.totalorder %v5442_v8, %v6509_v55 }
 0xcde   : > { %v3744_v6 = vsel %vm3688_vm13, %v3706_v33, 0.0  ;;  %v3623_v14 = vsel %vm3567_vm6, %v3580_v35, 0.0  ;;  %vm3096_vm13 = vcmp.eq.s32.totalorder %v5442_v8, %v6512_v13  ;;  %vm3689_vm6 = vcmp.eq.s32.totalorder %v5442_v8, %v6513_v30 }
 0xcdf   : > { %v5918_v63 = vadd.f32 %v3744_v6, %v5840_v4  ;;  %v5921_v37 = vadd.f32 %v3623_v14, %v5842_v59  ;;  %v6510_v4 = vld [vmem:[#allocation31_spill] sm:$0xff]  ;;  %v6511_v59 = vld [vmem:[#allocation54_spill] sm:$0xff]  ;;  %v3152_v48 = vsel %vm3096_vm13, %v5777_v45, 0.0  ;;  %vm3569_vm13 = vcmp.eq.s32.totalorder %v5442_v8, %v6517_v31 }
 0xce0   : > { %vm2744_vm11 = vcmp.eq.s32.totalorder %v5442_v8, %v6510_v4  ;;  %vm2856_vm12 = vcmp.eq.s32.totalorder %v5442_v8, %v6511_v59  ;;  %v6523_v6 = vld [vmem:[#allocation135_spill] sm:$0xff] }
 0xce3   : > { %3735 = vperm.xlu2 %4324, %v6431_v9  }
 0xce4   : > { %4320 = vset.pattern.permute.xlu1 %v6412_v18 }
 0xceb   : > { %4327 = vrot.lane.b32.xlu2 %v6443_v2, %s6508_s25  ;;  %s4025_s25 = scalar_lea.sflag [#allocation3], %s714_s28 }
 0xcec   : > { %3383 = vperm.xlu1 %4320, %v6487_v43  }
 0xced   : > { %v3019_v3 = vpop.permute.xlu2 %3018  ;;  %v2787_v7 = vpop.permute.xlu1 %2786 }
 0xcee   : > { %v3032_v46 = vsel %vm2976_vm9, %v3019_v3, 0.0  ;;  %v2800_v9 = vsel %vm2744_vm11, %v2787_v7, 0.0  ;;  %vm3451_vm9 = vcmp.eq.s32.totalorder %v5442_v8, %v6514_v57  ;;  %vm3339_vm11 = vcmp.eq.s32.totalorder %v5442_v8, %v6515_v26  ;;  %v6524_v7 = vld [vmem:[#allocation112_spill] sm:$0xff] }
 0xcef   : > { %v3395_v45 = vsel %vm3339_vm11, %v5875_v53, 0.0  ;;  %vm2977_vm11 = vcmp.eq.s32.totalorder %v5442_v8, %v6520_v0 }
 0xcf4   : > { %3389 = vperm.xlu1 %4320, %v6497_v21  }
 0xcf6   : > { %v2899_v18 = vpop.permute.xlu1 %2898 }
 0xcf7   : > { %v2912_v34 = vsel %vm2856_vm12, %v2899_v18, 0.0  ;;  %vm3571_vm12 = vcmp.eq.s32.totalorder %v5442_v8, %v6516_v32 }
 0xcf8   : > { %v2920_v2 = vadd.f32 %v2912_v34, %v2800_v9  ;;  %v6525_v34 = vld [vmem:[#allocation81_spill] sm:$0xff] }
 0xcfa   : > { %v3040_v43 = vadd.f32 %v3032_v46, %v2920_v2 }
 0xcfc   : > { %v5938_v49 = vadd.f32 %v3152_v48, %v3040_v43  ;;  %3609 = vperm.xlu1 %4320, %v5305_v54  }
 0xcfd   : > { %v3604_v21 = vpop.permute.xlu2 %3603 }
 0xd04   : > { %3717 = vperm.xlu1 %4320, %v5363_v50   ;;  %v3627_v50 = vsel %vm3571_vm12, %v3604_v21, 0.0  ;;  %vm3097_vm12 = vcmp.eq.s32.totalorder %v5442_v8, %v6521_v36 }
 0xd05   : > { %v3712_v22 = vpop.permute.xlu2 %3711  ;;  %v3153_v1 = vsel %vm3097_vm12, %v5805_v25, 0.0 }
 0xd06   : > { %v3745_v29 = vsel %vm3689_vm6, %v3712_v22, 0.0  ;;  %v3484_v52 = vpop.permute.xlu1 %3483  ;;  %vm2745_vm6 = vcmp.eq.s32.totalorder %v5442_v8, %v6518_v58 }
 0xd07   : > { %v3507_v15 = vsel %vm3451_vm9, %v3484_v52, 0.0  ;;  %vm2857_vm9 = vcmp.eq.s32.totalorder %v5442_v8, %v6519_v23 }
 0xd08   : > { %v3515_v54 = vadd.f32 %v3507_v15, %v3395_v45  ;;  %v6526_v15 = vld [vmem:[#allocation76_spill] sm:$0xff] }
 0xd09   : > { %vm3687_vm12 = vcmp.eq.s32.totalorder %v5442_v8, %v6526_v15 }
 0xd0a   : > { %v3635_v39 = vadd.f32 %v3627_v50, %v3515_v54 }
 0xd0c   : > { %3621 = vperm.xlu1 %4320, %v6410_v27   ;;  %v2913_v27 = vsel %vm2857_vm9, %v5880_v62, 0.0  ;;  %vm3093_vm9 = vcmp.eq.s32.totalorder %v5442_v8, %v6524_v7 }
 0xd0e   : > { %v3592_v17 = vpop.permute.xlu1 %3591 }
 0xd0f   : > { %v3625_v19 = vsel %vm3569_vm13, %v3592_v17, 0.0  ;;  %vm2975_vm13 = vcmp.eq.s32.totalorder %v5442_v8, %v6522_v47 }
 0xd10   : > { %v3633_v5 = vadd.f32 %v3625_v19, %v5870_v28  ;;  %v3033_v28 = vsel %vm2977_vm11, %v5761_v51, 0.0  ;;  %vm3691_vm11 = vcmp.eq.s32.totalorder %v5442_v8, %v6525_v34 }
 0xd12   : > { %v3753_v56 = vadd.f32 %v3745_v29, %v3633_v5 }
 0xd14   : > { %3741 = vperm.xlu1 %4320, %v6422_v12   ;;  %v3773_v43 = vsel %vm1967_vm8, %v3753_v56, 0.0 }
 0xd15   : > { %v3133_v53 = vpop.permute.xlu2 %3132 }
 0xd1e   : > { %v2793_v38 = vpop.permute.xlu1 %2792 }
 0xd1f   : > { %v2801_v60 = vsel %vm2745_vm6, %v2793_v38, 0.0  ;;  %vm3095_vm6 = vcmp.eq.s32.totalorder %v5442_v8, %v6523_v6 }
 0xd20   : > { %v2921_v44 = vadd.f32 %v2913_v27, %v2801_v60  ;;  %v3151_v51 = vsel %vm3095_vm6, %v3133_v53, 0.0  ;;  %v3204_v60 = vsel %vm1967_vm8, %v5938_v49, 0.0 }
 0xd22   : > { %v3041_v12 = vadd.f32 %v3033_v28, %v2921_v44 }
 0xd24   : > { %v3161_v61 = vadd.f32 %v3153_v1, %v3041_v12  ;;  %v3205_v12 = vrot.slane %v3204_v60, 4 }
 0xd25   : > { %v5967_v33 = vpop.permute.xlu2 %3501 }
 0xd26   : > { %v3013_v62 = vpop.permute.xlu1 %3012 }
 0xd27   : > { %v3031_v35 = vsel %vm2975_vm13, %v3013_v62, 0.0 }
 0xd28   : > { %v3039_v14 = vadd.f32 %v3031_v35, %v5795_v42  ;;  %v3766_v42 = vsel %vm1967_vm8, %v5918_v63, 0.0 }
 0xd29   : > { %v3767_v30 = vrot.slane %v3766_v42, 4 }
 0xd2a   : > { %v3159_v55 = vadd.f32 %v3151_v51, %v3039_v14  ;;  %v6527_v51 = vld [vmem:[#allocation78_spill] sm:$0xff] }
 0xd2b   : > { %v3768_v26 = vadd.f32 %v3767_v30, %v3766_v42  ;;  %vm3094_vm13 = vcmp.eq.s32.totalorder %v5442_v8, %v6527_v51  ;;  %v6534_v51 = vld [vmem:[#allocation125_spill] sm:$0xff] }
 0xd2c   : > { %v3197_v38 = vsel %vm1967_vm8, %v3159_v55, 0.0  ;;  %v3206_v55 = vadd.f32 %v3205_v12, %v3204_v60 }
 0xd2d   : > { %v5974_v3 = vpop.permute.xlu2 %3615  ;;  %v3198_v36 = vrot.slane %v3197_v38, 4 }
 0xd2e   : > { %v3121_v25 = vpop.permute.xlu1 %3120 }
 0xd2f   : > { %v3149_v46 = vsel %vm3093_vm9, %v3121_v25, 0.0  ;;  %v3199_v14 = vadd.f32 %v3198_v36, %v3197_v38  ;;  %v6531_v38 = vld [vmem:[#allocation86_spill] sm:$0xff] }
 0xd30   : > { %v3157_v4 = vadd.f32 %v3149_v46, %v5809_v10  ;;  %v3774_v10 = vrot.slane %v3773_v43, 4  ;;  %vm3693_vm9 = vcmp.eq.s32.totalorder %v5442_v8, %v6531_v38 }
 0xd32   : > { %v3183_v59 = vsel %vm1967_vm8, %v3157_v4, 0.0  ;;  %v3775_v45 = vadd.f32 %v3774_v10, %v3773_v43 }
 0xd33   : > { %v3184_v18 = vrot.slane %v3183_v59, 4 }
 0xd34   : > { %v3776_v31 = vrot.slane %v3775_v45, 2 }
 0xd35   : > { %v3185_v9 = vadd.f32 %v3184_v18, %v3183_v59  ;;  %v3724_v2 = vpop.permute.xlu2 %3723  ;;  %v3200_v59 = vrot.slane %v3199_v14, 2 }
 0xd36   : > { %v3747_v13 = vsel %vm3691_vm11, %v3724_v2, 0.0  ;;  %v3777_v58 = vadd.f32 %v3776_v31, %v3775_v45  ;;  %v6528_v45 = vld [vmem:[#allocation63_spill] sm:$0xff] }
 0xd37   : > { %v3186_v48 = vrot.slane %v3185_v9, 2  ;;  %v5985_v21 = vadd.f32 %v3747_v13, %v3635_v39  ;;  %v3769_v39 = vrot.slane %v3768_v26, 2  ;;  %v3201_v13 = vadd.f32 %v3200_v59, %v3199_v14 }
 0xd38   : > { %v3778_v28 = vrot.slane %v3777_v58, 1 }
 0xd39   : > { %v3187_v22 = vadd.f32 %v3186_v48, %v3185_v9  ;;  %v3770_v5 = vadd.f32 %v3769_v39, %v3768_v26  ;;  %v3207_v9 = vrot.slane %v3206_v55, 2  ;;  %v3202_v10 = vrot.slane %v3201_v13, 1 }
 0xd3a   : > { %v3779_v6 = vadd.f32 %v3778_v28, %v3777_v58  ;;  %v6533_v28 = vld [vmem:[#allocation134_spill] sm:$0xff] }
 0xd3b   : > { %v3188_v57 = vrot.slane %v3187_v22, 1  ;;  %v3771_v0 = vrot.slane %v3770_v5, 1  ;;  %v3208_v43 = vadd.f32 %v3207_v9, %v3206_v55  ;;  %v3203_v15 = vadd.f32 %v3202_v10, %v3201_v13  ;;  %v6537_v10 = vld [vmem:[#allocation130_spill] sm:$0xff] }
 0xd3d   : > { %v3189_v29 = vadd.f32 %v3188_v57, %v3187_v22  ;;  %v5987_v52 = vpop.permute.xlu2 %3735  ;;  %v3772_v62 = vadd.f32 %v3771_v0, %v3770_v5  ;;  %v3209_v57 = vrot.slane %v3208_v43, 1  ;;  %v6532_v0 = vld [vmem:[#allocation122_spill] sm:$0xff] }
 0xd3e   : > { %v3700_v32 = vpop.permute.xlu1 %3699  ;;  %v3749_v60 = vsel %vm3693_vm9, %v5987_v52, 0.0  ;;  %vm3572_vm11 = vcmp.eq.s32.totalorder %v5442_v8, %v6532_v0 }
 0xd3f   : > { %v3228_v63 = vsel %vm2036_vm3, %v3189_v29, %v5907_v41  ;;  %v3743_v54 = vsel %vm3687_vm12, %v3700_v32, 0.0  ;;  %v6529_v32 = vld [vmem:[#allocation33_spill] sm:$0xff]  ;;  %v3210_v31 = vadd.f32 %v3209_v57, %v3208_v43  ;;  %vm3692_vm12 = vcmp.eq.s32.totalorder %v5442_v8, %v6533_v28  ;;  %v6535_v43 = vld [vmem:[#allocation35_spill] sm:$0xff] }
 0xd40   : > { %v3751_v50 = vadd.f32 %v3743_v54, %v5921_v37  ;;  %v3211_v37 = vsel %vm1967_vm8, %v3161_v61, 0.0  ;;  %v3748_v12 = vsel %vm3692_vm12, %v5815_v16, 0.0 }
 0xd41   : > { %v3212_v47 = vrot.slane %v3211_v37, 4 }
 0xd42   : > { %v3759_v17 = vsel %vm1967_vm8, %v3751_v50, 0.0 }
 0xd43   : > { %v3760_v19 = vrot.slane %v3759_v17, 4  ;;  %v3213_v61 = vadd.f32 %v3212_v47, %v3211_v37 }
 0xd45   : > { %v3761_v56 = vadd.f32 %v3760_v19, %v3759_v17  ;;  %v4328_v53 = vpop.permute.xlu2 %4327  ;;  %v3214_v2 = vrot.slane %v3213_v61, 2  ;;  %v6530_v19 = vld [vmem:[#allocation137_spill] sm:$0xff] }
 0xd46   : > { %v4329_v23 = vunpack.i.l.bf16 %v4328_v53  ;;  %v4330_v41 = vunpack.i.h.bf16 %v4328_v53  ;;  %vm3573_vm6 = vcmp.eq.s32.totalorder %v5442_v8, %v6530_v19 }
 0xd47   : > { %v3762_v27 = vrot.slane %v3761_v56, 2  ;;  %v3215_v30 = vadd.f32 %v3214_v2, %v3213_v61  ;;  %v3629_v58 = vsel %vm3573_vm6, %v5974_v3, 0.0  ;;  %v3787_v3 = vsel %vm1967_vm8, %v5985_v21, 0.0 }
 0xd48   : > { %3255 = vmatpush.msrb.mxu1 %v4329_v23  ;;  %vm3574_vm6 = vcmp.eq.s32.totalorder %v5442_v8, %v6537_v10 }
 0xd49   : > { %v3763_v44 = vadd.f32 %v3762_v27, %v3761_v56  ;;  %v3216_v29 = vrot.slane %v3215_v30, 1 }
 0xd4a   : > { %3256 = vmatpush.msrb.mxu1 %v4330_v41 }
 0xd4b   : > { %v3764_v1 = vrot.slane %v3763_v44, 1  ;;  %v3217_v56 = vadd.f32 %v3216_v29, %v3215_v30 }
 0xd4d   : > { %v3765_v35 = vadd.f32 %v3764_v1, %v3763_v44  ;;  %v3788_v1 = vrot.slane %v3787_v3, 4 }
 0xd4e   : > { %v3127_v49 = vpop.permute.xlu1 %3126 }
 0xd4f   : > { %v3823_v7 = vsel %vm2032_vm15, %v3772_v62, %v3765_v35  ;;  %v3150_v25 = vsel %vm3094_vm13, %v3127_v49, 0.0  ;;  %vm3453_vm15 = vcmp.eq.s32.totalorder %v5442_v8, %v6528_v45  ;;  %v3789_v14 = vadd.f32 %v3788_v1, %v3787_v3  ;;  %v4153_v3 = vld [vmem:[%s6174_s12 + $0x18] sm:$0xff] }
 0xd50   : > { %v3158_v46 = vadd.f32 %v3150_v25, %v5859_v24  ;;  %v6004_v4 = vsel %vm2034_vm2, %v3779_v6, %v3823_v7  ;;  %vm3341_vm2 = vcmp.eq.s32.totalorder %v5442_v8, %v6529_v32  ;;  %v3509_v50 = vsel %vm3453_vm15, %v5753_v40, 0.0  ;;  %3878 = vmatpush.msra.mxu2 %v4153_v3 }
 0xd51   : > { %vm3690_vm13 = vcmp.eq.s32.totalorder %v5442_v8, %v6534_v51  ;;  %v3790_v25 = vrot.slane %v3789_v14, 2  ;;  %vm3342_vm15 = vcmp.eq.s32.totalorder %v5442_v8, %v6535_v43  ;;  %v3958_v43 = vld [vmem:[%s6181_s19 + $0x20] sm:$0xff] }
 0xd52   : > { %v3190_v18 = vsel %vm1967_vm8, %v3158_v46, 0.0 }
 0xd53   : > { %v3191_v34 = vrot.slane %v3190_v18, 4  ;;  %v3791_v9 = vadd.f32 %v3790_v25, %v3789_v14 }
 0xd55   : > { %v3192_v42 = vadd.f32 %v3191_v34, %v3190_v18 }
 0xd57   : > { %v3193_v48 = vrot.slane %v3192_v42, 2 }
 0xd59   : > { %v3194_v22 = vadd.f32 %v3193_v48, %v3192_v42 }
 0xd5b   : > { %v3195_v26 = vrot.slane %v3194_v22, 1 }
 0xd5d   : > { %v3196_v24 = vadd.f32 %v3195_v26, %v3194_v22  ;;  %v6536_v22 = vld [vmem:[#allocation37_spill] sm:$0xff] }
 0xd5e   : > { %v3384_v54 = vpop.permute.xlu1 %3383 }
 0xd5f   : > { %v3397_v39 = vsel %vm3341_vm2, %v3384_v54, 0.0  ;;  %v3229_v17 = vsel %vm2038_vm4, %v3196_v24, %v3228_v63  ;;  %vm3454_vm2 = vcmp.eq.s32.totalorder %v5442_v8, %v6536_v22 }
 0xd60   : > { %v3517_v5 = vadd.f32 %v3509_v50, %v3397_v39  ;;  %v3230_v53 = vsel %vm2040_vm5, %v3203_v15, %v3229_v17  ;;  %v3510_v57 = vsel %vm3454_vm2, %v5967_v33, 0.0  ;;  %v6538_v39 = vld [vmem:[#allocation136_spill] sm:$0xff] }
 0xd61   : > { %v3231_v23 = vsel %vm2042_vm7, %v3210_v31, %v3230_v53  ;;  %vm3694_vm9 = vcmp.eq.s32.totalorder %v5442_v8, %v6538_v39  ;;  %v3956_v39 = vld [vmem:[%s6181_s19 + $0x10] sm:$0xff] }
 0xd62   : > { %v3637_v27 = vadd.f32 %v3629_v58, %v3517_v5  ;;  %v3232_v40 = vsel %vm2044_vm10, %v3217_v56, %v3231_v23 }
 0xd63   : > { %4149 = vmatmul.msk.f32.vlgmr.msrb.gmra.mxu1 %vm1318_vm14, %v3232_v40 }
 0xd64   : > { %v3757_v63 = vadd.f32 %v3749_v60, %v3637_v27 }
 0xd66   : > { %v3390_v41 = vpop.permute.xlu1 %3389  ;;  %v3801_v52 = vsel %vm1967_vm8, %v3757_v63, 0.0 }
 0xd67   : > { %v3802_v62 = vrot.slane %v3801_v52, 4  ;;  %v3398_v48 = vsel %vm3342_vm15, %v3390_v41, 0.0 }
 0xd68   : > { %v3518_v15 = vadd.f32 %v3510_v57, %v3398_v48 }
 0xd69   : > { %v3803_v7 = vadd.f32 %v3802_v62, %v3801_v52 }
 0xd6b   : > { %v3804_v59 = vrot.slane %v3803_v7, 2 }
 0xd6d   : > { %v3805_v13 = vadd.f32 %v3804_v59, %v3803_v7  ;;  %v3923_v59 = vld [vmem:[%s6179_s17 + $0x8] sm:$0xff] }
 0xd6e   : > { %v3610_v37 = vpop.permute.xlu1 %3609 }
 0xd6f   : > { %v3628_v44 = vsel %vm3572_vm11, %v3610_v37, 0.0  ;;  %v3806_v45 = vrot.slane %v3805_v13, 1 }
 0xd70   : > { %v3636_v36 = vadd.f32 %v3628_v44, %v5893_v20  ;;  %v2664_v44 = vpop.f32.mrf.mxu0 }
 0xd71   : > { %v3807_v53 = vadd.f32 %v3806_v45, %v3805_v13 }
 0xd72   : > { %v3756_v47 = vadd.f32 %v3748_v12, %v3636_v36  ;;  %v2687_v36 = vpop.f32.mrf.mxu2 }
 0xd73   : > { %v2688_v52 = vadd.f32 %v2687_v36, %v2664_v44 }
 0xd74   : > { %v3794_v35 = vsel %vm1967_vm8, %v3756_v47, 0.0 }
 0xd75   : > { %v3795_v6 = vrot.slane %v3794_v35, 4 }
 0xd76   : > { %v3718_v21 = vpop.permute.xlu1 %3717 }
 0xd77   : > { %v3796_v49 = vadd.f32 %v3795_v6, %v3794_v35  ;;  %v3746_v55 = vsel %vm3690_vm13, %v3718_v21, 0.0  ;;  %v4342_v35 = vld [vmem:[%s6175_s13] ss:$0 sm:$0xff] }
 0xd78   : > { %v3754_v20 = vadd.f32 %v3746_v55, %v5909_v11  ;;  %v3792_v11 = vrot.slane %v3791_v9, 1  ;;  %v6539_v6 = vld [vmem:[#allocation14_spill] sm:$0xff]  ;;  %v6540_v55 = vld [vmem:[#allocation13_spill] sm:$0xff] }
 0xd79   : > { %v3797_v61 = vrot.slane %v3796_v49, 2 }
 0xd7a   : > { %v3780_v16 = vsel %vm1967_vm8, %v3754_v20, 0.0  ;;  %v3793_v54 = vadd.f32 %v3792_v11, %v3791_v9  ;;  %v3961_v9 = vld [vmem:[%s6181_s19 + $0x38] sm:$0xff] }
 0xd7b   : > { %v3781_v46 = vrot.slane %v3780_v16, 4  ;;  %v3798_v2 = vadd.f32 %v3797_v61, %v3796_v49  ;;  %v3925_v61 = vld [vmem:[%s6179_s17 + $0x18] sm:$0xff] }
 0xd7c   : > { %3945 = vmatpush.msra.mxu1 %v3925_v61 }
 0xd7d   : > { %v3782_v18 = vadd.f32 %v3781_v46, %v3780_v16  ;;  %v3799_v26 = vrot.slane %v3798_v2, 1  ;;  %v3924_v46 = vld [vmem:[%s6179_s17 + $0x10] sm:$0xff] }
 0xd7e   : > { %v3622_v34 = vpop.permute.xlu1 %3621  ;;  %3946 = vmatpush.msra.mxu1 %v3924_v46 }
 0xd7f   : > { %v3783_v42 = vrot.slane %v3782_v18, 2  ;;  %v3630_v24 = vsel %vm3574_vm6, %v3622_v34, 0.0  ;;  %v3800_v17 = vadd.f32 %v3799_v26, %v3798_v2  ;;  %v3960_v34 = vld [vmem:[%s6181_s19 + $0x30] sm:$0xff]  ;;  %v3959_v2 = vld [vmem:[%s6181_s19 + $0x28] sm:$0xff] }
 0xd80   : > { %v3638_v50 = vadd.f32 %v3630_v24, %v3518_v15  ;;  %3947 = vmatpush.msra.mxu1 %v3923_v59  ;;  %v4343_v24 = vld [vmem:[%s6177_s15] ss:$0 sm:$0xff] }
 0xd81   : > { %v3784_v30 = vadd.f32 %v3783_v42, %v3782_v18  ;;  %v3922_v18 = vld [vmem:[%s6179_s17] sm:$0xff] }
 0xd82   : > { %3948 = vmatpush.msra.mxu1 %v3922_v18 }
 0xd83   : > { %v3785_v29 = vrot.slane %v3784_v30, 1 }
 0xd85   : > { %v3786_v32 = vadd.f32 %v3785_v29, %v3784_v30  ;;  %v3957_v30 = vld [vmem:[%s6181_s19 + $0x18] sm:$0xff] }
 0xd86   : > { %v3742_v31 = vpop.permute.xlu1 %3741 }
 0xd87   : > { %v3825_v19 = vsel %vm2036_vm3, %v3786_v32, %v6004_v4  ;;  %v3750_v5 = vsel %vm3694_vm9, %v3742_v31, 0.0  ;;  %v4150_v4 = vld [vmem:[%s6174_s12 + $0x10] sm:$0xff]  ;;  %v4344_v32 = vld [vmem:[%s6178_s16] ss:$0 sm:$0xff]  ;;  %v3955_v31 = vld [vmem:[%s6181_s19 + $0x8] sm:$0xff]  ;;  %vm3966_vm3 = vcmask 523264  }
 0xd88   : > { %v3758_v56 = vadd.f32 %v3750_v5, %v3638_v50  ;;  %v3826_v33 = vsel %vm2038_vm4, %v3793_v54, %v3825_v19  ;;  %3281 = vmatpush.msrb.mxu3 %v4150_v4  ;;  %v4345_v19 = vld [vmem:[%s6180_s18] ss:$0 sm:$0xff] }
 0xd89   : > { %v3827_v58 = vsel %vm2040_vm5, %v3800_v17, %v3826_v33  ;;  %v3954_v17 = vld [vmem:[%s6181_s19] sm:$0xff] }
 0xd8a   : > { %v3808_v23 = vsel %vm1967_vm8, %v3758_v56, 0.0  ;;  %v3828_v38 = vsel %vm2042_vm7, %v3807_v53, %v3827_v58  ;;  %3978 = vmatpush.msra.mxu3 %v3961_v9  ;;  %v4346_v33 = vld [vmem:[%s6182_s20] ss:$0 sm:$0xff] }
 0xd8b   : > { %v3809_v27 = vrot.slane %v3808_v23, 4 }
 0xd8c   : > { %3979 = vmatpush.msra.mxu3 %v3960_v34 }
 0xd8d   : > { %v3810_v40 = vadd.f32 %v3809_v27, %v3808_v23 }
 0xd8e   : > { %3980 = vmatpush.msra.mxu3 %v3959_v2 }
 0xd8f   : > { %v3811_v60 = vrot.slane %v3810_v40, 2 }
 0xd90   : > { %3981 = vmatpush.msra.mxu3 %v3958_v43 }
 0xd91   : > { %v3812_v8 = vadd.f32 %v3811_v60, %v3810_v40 }
 0xd92   : > { %3982 = vmatpush.msra.mxu3 %v3957_v30 }
 0xd93   : > { %v3813_v63 = vrot.slane %v3812_v8, 1 }
 0xd94   : > { %3983 = vmatpush.msra.mxu3 %v3956_v39 }
 0xd95   : > { %v3814_v41 = vadd.f32 %v3813_v63, %v3812_v8 }
 0xd96   : > { %3984 = vmatpush.msra.mxu3 %v3955_v31 }
 0xd97   : > { %v3829_v0 = vsel %vm2044_vm10, %v3814_v41, %v3828_v38 }
 0xd98   : > { %4152 = vmatmul.msk.f32.vlgmr.msra.gmra.mxu0 %vm1318_vm14, %v3829_v0  ;;  %3985 = vmatpush.msra.mxu3 %v3954_v17 }
 0xde0   : > { %v3258_v37 = vpop.f32.mrf.mxu1 }
 0xde1   : > { %4151 = vmatmul.msk.f32.vlgmr.msrb.gmra.mxu3 %vm764_vm1, %v3258_v37 }
 0xe15   : > { %v3855_v28 = vpop.f32.mrf.mxu0 }
 0xe16   : > { %4154 = vmatmul.msk.f32.vlgmr.msra.gmra.mxu2 %vm764_vm1, %v3855_v28 }
 0xe64   : > { %v3283_v12 = vpop.f32.mrf.mxu3 }
 0xe65   : > { %v3286_v1 = vadd.f32 %v3283_v12, %v2688_v52 }
 0xe99   : > { %v3880_v47 = vpop.f32.mrf.mxu2 }
 0xe9a   : > { %v3883_v62 = vadd.f32 %v3880_v47, %v3286_v1  ;;  %v4347_v1 = vld [vmem:[%s6183_s21] ss:$0 sm:$0xff] }
 0xe9c   : > { %v3884_v14 = vadd.f32 %v3883_v62, %v6539_v6 }
 0xe9e   : > { %v3889_v51 = vadd.f32 %v4342_v35, %v3884_v14  ;;  %v4348_v35 = vld [vmem:[%s6543_s7] ss:$0 sm:$0xff] }
 0xea0   : > { %v3890_v21 = vsel %vm737_vm0, %v3889_v51, 0.0 }
 0xea1   : > { %3891 = vadd.xlane.f32.xlu1 %v3890_v21 }
 0xf14   : > { %v3892_v49 = vpop.xlane.xlu1 %3891 }
 0xf15   : > { %v3893_v7 = vmul.f32 %v3892_v49, %v6540_v55 }
 0xf17   : > { %v3894_v20 = vsub.f32 %v3889_v51, %v3893_v7 }
 0xf19   : > { %v3895_v25 = vmul.f32 %v3894_v20, %v3894_v20 }
 0xf1b   : > { %v3896_v16 = vsel %vm737_vm0, %v3895_v25, 0.0 }
 0xf1c   : > { %3897 = vadd.xlane.f32.xlu2 %v3896_v16 }
 0xf8f   : > { %v3898_v42 = vpop.xlane.xlu2 %3897 }
 0xf90   : > { %v3899_v13 = vmul.f32 %v3898_v42, %v6540_v55 }
 0xf92   : > { %v3900_v48 = vadd.f32 1e-05, %v3899_v13 }
 0xf94   : > { %4377 = vrsqrt.f32 %v3900_v48  ;;  %vm3907_vm14 = vweird.f32 %v3900_v48 }
 0xf9a   : > { %v4378_v22 = vpop.eup %4377 }
 0xf9b   : > { %v3902_v11 = vmul.f32 %v4378_v22, %v3900_v48  ;;  %vm3908_vm1 = vweird.f32 %v4378_v22 }
 0xf9c   : > { %vm3909_vm8 = vmor %vm3907_vm14, %vm3908_vm1 }
 0xf9d   : > { %v3903_v10 = vmul.f32 %v4378_v22, %v3902_v11 }
 0xf9f   : > { %v3904_v57 = vmul.f32 0.5, %v3903_v10 }
 0xfa1   : > { %v3905_v26 = vsub.f32 1.5, %v3904_v57 }
 0xfa3   : > { %v3906_v29 = vmul.f32 %v4378_v22, %v3905_v26 }
 0xfa5   : > { %v3910_v45 = vsel %vm3909_vm8, %v4378_v22, %v3906_v29 }
 0xfa6   : > { %v3911_v15 = vmul.f32 %v3910_v45, %v3894_v20 }
 0xfa8   : > { %v3916_v54 = vmul.f32 %v4343_v24, %v3911_v15 }
 0xfaa   : > { %v3921_v50 = vadd.f32 %v4344_v32, %v3916_v54 }
 0xfac   : > { %4155 = vmatmul.msk.f32.vlgmr.msra.gmra.mxu1 %vm737_vm0, %v3921_v50 }
0x1029   : > { %v3950_v5 = vpop.f32.mrf.mxu1 }
0x102a   : > { %v3951_v56 = vadd.f32 %v4345_v19, %v3950_v5 }
0x102c   : > { %v3953_v53 = vmax.f32 %v3951_v56, 0.0 }
0x102e   : > { %4156 = vmatmul.msk.f32.vlgmr.msra.gmra.mxu3 %vm3966_vm3, %v3953_v53 }
0x10b1   : > { %v3987_v58 = vpop.f32.mrf.mxu3 }
0x10b2   : > { %v3988_v23 = vadd.f32 %v4346_v33, %v3987_v58 }
0x10b4   : > { %v3990_v38 = vadd.f32 %v3988_v23, %v3921_v50 }
0x10b6   : > { %v3991_v27 = vsel %vm737_vm0, %v3990_v38, 0.0 }
0x10b7   : > { %3992 = vadd.xlane.f32.xlu0 %v3991_v27 }
0x112a   : > { %v3993_v40 = vpop.xlane.xlu0 %3992 }
0x112b   : > { %v3994_v60 = vmul.f32 %v3993_v40, %v6540_v55 }
0x112d   : > { %v3995_v8 = vsub.f32 %v3990_v38, %v3994_v60 }
0x112f   : > { %v3996_v63 = vmul.f32 %v3995_v8, %v3995_v8 }
0x1131   : > { %v3997_v41 = vsel %vm737_vm0, %v3996_v63, 0.0 }
0x1132   : > { %3998 = vadd.xlane.f32.xlu1 %v3997_v41 }
0x11a5   : > { %v3999_v0 = vpop.xlane.xlu1 %3998 }
0x11a6   : > { %v4000_v4 = vmul.f32 %v3999_v0, %v6540_v55 }
0x11a8   : > { %v4001_v37 = vadd.f32 1e-05, %v4000_v4 }
0x11aa   : > { %4379 = vrsqrt.f32 %v4001_v37  ;;  %vm4008_vm5 = vweird.f32 %v4001_v37 }
0x11b0   : > { %v4380_v3 = vpop.eup %4379 }
0x11b1   : > { %v4003_v44 = vmul.f32 %v4380_v3, %v4001_v37  ;;  %vm4009_vm4 = vweird.f32 %v4380_v3 }
0x11b2   : > { %vm4010_vm7 = vmor %vm4008_vm5, %vm4009_vm4 }
0x11b3   : > { %v4004_v28 = vmul.f32 %v4380_v3, %v4003_v44 }
0x11b5   : > { %v4005_v36 = vmul.f32 0.5, %v4004_v28 }
0x11b7   : > { %v4006_v12 = vsub.f32 1.5, %v4005_v36 }
0x11b9   : > { %v4007_v52 = vmul.f32 %v4380_v3, %v4006_v12 }
0x11bb   : > { %v4011_v47 = vsel %vm4010_vm7, %v4380_v3, %v4007_v52 }
0x11bc   : > { %v4012_v62 = vmul.f32 %v4011_v47, %v3995_v8 }
0x11be   : > { %v4017_v6 = vmul.f32 %v4347_v1, %v4012_v62 }
0x11c0   : > { %v4022_v14 = vadd.f32 %v4348_v35, %v4017_v6 }
0x11c2   : > { %4023 = vst.msk [vmem:[%s716_s0] sm:$0xff] %vm737_vm0, %v4022_v14 }
0x11c3   : > { %4408 = shalt.err (!%p4405_p3)
}
0x11c4   : > { %4176 = dma.vmem_to_hbm [thread:$0]  (%p4621_p5), %s4038_s5, 128, %s4040_s8, %s4025_s25  }
0x11c5 PF: > { %s6544_s28 = sld [smem:[#allocation7_spill]] }
0x11c6   : > { %s6545_s23 = sld [smem:[#allocation5_spill]] }
0x11cb   : > { %p4182_p4 = scmp.ge.s32.totalorder %s6544_s28, 2 }
0x11cc   : > { %s4051_s0 = sand.u32 1, %s6545_s23  }
0x11cd   : > { %p4179_p7 = pnand %p4182_p4, %p4625_p6  ;;  %s4052_s2 = scalar_lea.sflag [#allocation3], %s4051_s0 }
0x11cf   : > { %p4180_p8 = pneg %p4179_p7 }
0x11d1   : > { %4426 = dma.done.wait (%p4180_p8), %s4052_s2, 128  }
0x11d2   : > { %4428 = vsyncadd (%p4180_p8), %s4052_s2, 4294967168  ;;  %s6547_s25 = sld [smem:[#allocation8_spill]]  ;;  %s6550_s4 = smov %s4435_s30 }
0x11d3   : > { %s6548_s1 = sld [smem:[#allocation6_spill]] }
0x11d4   : > { %s6549_s24 = sld [smem:[#allocation9_spill]] }
0x11d8   : > { %p33_p9 = scmp.ge.s32.totalorder %s6547_s25, 4  }
0x11d9   : > { %s6551_s30 = smov %s6548_s1 }
0x11da   :  { %35 = sbr.rel (!%p33_p9) target bundleno = 15 (0xf), region = 156 }
0x11df   :  { %4058 = vsyncpa [#allocation3], 1 }
0x11e0   :  { %4060 = vsyncpa [#allocation3 + $0x1], 1 }

</bundles_post_ra>
